<compile_context>
chip_gen: v7x
topology: tpu7x:2x2x1
jax: 0.10.0
libtpu: 0.0.40
codegen_flags: <defaults>
</compile_context>

<pallas_src>
import jax
import jax.numpy as jnp
from jax.experimental import pallas as pl
from jax.experimental.pallas import tpu as pltpu


# ---------------------------------------------------------------------------
# Fused forward kernel (one batch tile per grid step)
# ---------------------------------------------------------------------------
def _cnn_fused_kernel(x_ref, w1_ref, b1_ref, w2_ref, b2_ref, fw_ref, fb_ref, o_ref):
    cdt = w1_ref.dtype                      # MXU compute dtype (bf16 by default)
    tb = x_ref.shape[0]                     # batch tile

    x = x_ref[...]                          # (tb, 28, 28) f32

    # ---- conv1 (+bias+ReLU): one banded matmul on the MXU --------------------
    # lhs rows = (b, oh); K = (kh, iw) = 140; result cols = (ow, c) = 24*16.
    lhs1 = jnp.concatenate([x[:, kh:kh + 24, :] for kh in range(5)], axis=-1)
    lhs1 = lhs1.reshape(tb * 24, 5 * 28)                       # (tb*24, 140)
    r1 = jnp.dot(lhs1.astype(cdt), w1_ref[...],
                 preferred_element_type=jnp.float32)           # (tb*24, 384)
    r1 = jnp.maximum(r1 + b1_ref[...], 0.0)

    # ---- maxpool1 2x2 (rows = oh pairs; cols = ow pairs of 16-wide chunks) ----
    r1 = r1.reshape(tb, 24, 384)
    r1 = jnp.concatenate(
        [jnp.maximum(r1[:, 2 * j:2 * j + 1, :], r1[:, 2 * j + 1:2 * j + 2, :])
         for j in range(12)], axis=1)                          # (tb, 12, 384)
    h1 = jnp.concatenate(
        [jnp.maximum(r1[:, :, 32 * j:32 * j + 16], r1[:, :, 32 * j + 16:32 * j + 32])
         for j in range(12)], axis=-1)                         # (tb, 12, 192) = (iw, ci)

    # ---- conv2 (+bias+ReLU): one banded matmul --------------------------------
    # lhs rows = (b, oh); K = (kh, iw, ci) = 960; result cols = (ow, co) = 8*32.
    lhs2 = jnp.concatenate([h1[:, kh:kh + 8, :] for kh in range(5)], axis=-1)
    lhs2 = lhs2.reshape(tb * 8, 5 * 192)                       # (tb*8, 960)
    r2 = jnp.dot(lhs2.astype(cdt), w2_ref[...],
                 preferred_element_type=jnp.float32)           # (tb*8, 256)
    r2 = jnp.maximum(r2 + b2_ref[...], 0.0)

    # ---- maxpool2 2x2 ----------------------------------------------------------
    r2 = r2.reshape(tb, 8, 256)
    r2 = jnp.concatenate(
        [jnp.maximum(r2[:, 2 * j:2 * j + 1, :], r2[:, 2 * j + 1:2 * j + 2, :])
         for j in range(4)], axis=1)                           # (tb, 4, 256)
    h2 = jnp.concatenate(
        [jnp.maximum(r2[:, :, 64 * j:64 * j + 32], r2[:, :, 64 * j + 32:64 * j + 64])
         for j in range(4)], axis=-1)                          # (tb, 4, 128) = (ow, co)

    # ---- fc1: flatten (h, ow, co) along lanes, one matmul into 128-wide logits -
    flat = jnp.concatenate([h2[:, hh] for hh in range(4)], axis=-1)   # (tb, 512)
    logits = jnp.dot(flat.astype(cdt), fw_ref[...],
                     preferred_element_type=jnp.float32)       # (tb, 128) lane-dense
    o_ref[...] = logits + fb_ref[...]


# ---------------------------------------------------------------------------
# Weight preprocessing (plain JAX, tiny): banded conv weights, tiled biases,
# lane-padded fc weight/bias. Column layouts match the kernel exactly.
# ---------------------------------------------------------------------------
def _prep_params(params, compute_dtype):
    w1 = params["cnn1_w"].astype(jnp.float32)    # (16, 1, 5, 5)
    b1 = params["cnn1_b"].astype(jnp.float32)    # (16,)
    w2 = params["cnn2_w"].astype(jnp.float32)    # (32, 16, 5, 5)
    b2 = params["cnn2_b"].astype(jnp.float32)    # (32,)
    fw = params["fc1_w"].astype(jnp.float32)     # (10, 512)  torch: (out, c*h*w)
    fb = params["fc1_b"].astype(jnp.float32)     # (10,)

    # conv1 banded weight: rows = (kh, iw) = 5*28, cols = (ow, c) = 24*16.
    eyes1 = jnp.stack([jnp.eye(28, 24, k=-kw, dtype=jnp.float32) for kw in range(5)])
    w1_t = w1[:, 0].transpose(1, 2, 0)                       # (kh, kw, c)
    w1_big = jnp.einsum("kio,hkc->hioc", eyes1, w1_t)        # (5, 28, 24, 16)
    w1_big = w1_big.reshape(5 * 28, 24 * 16)
    b1_t = jnp.tile(b1, 24).reshape(1, 384)

    # conv2 banded weight: rows = (kh, iw, ci) = 5*12*16, cols = (ow, co) = 8*32.
    eyes2 = jnp.stack([jnp.eye(12, 8, k=-kw, dtype=jnp.float32) for kw in range(5)])
    w2_t = w2.transpose(2, 3, 1, 0)                          # (kh, kw, ci, co)
    w2_big = jnp.einsum("kio,hkcd->hicod", eyes2, w2_t)      # (5, 12, 16, 8, 32)
    w2_big = w2_big.reshape(5 * 12 * 16, 8 * 32)
    b2_t = jnp.tile(b2, 8).reshape(1, 256)

    # fc1: reorder input index (c, h, w) -> (h, w, c) to match the kernel's
    # pooled layout, pad output 10 -> 128 for lane-dense stores.
    fw_r = fw.reshape(10, 32, 4, 4).transpose(2, 3, 1, 0).reshape(512, 10)
    fw_pad = jnp.zeros((512, 128), jnp.float32).at[:, :10].set(fw_r)
    fb_pad = jnp.zeros((1, 128), jnp.float32).at[0, :10].set(fb)

    return (w1_big.astype(compute_dtype), b1_t,
            w2_big.astype(compute_dtype), b2_t,
            fw_pad.astype(compute_dtype), fb_pad)


# ---------------------------------------------------------------------------
# Forward pass
# ---------------------------------------------------------------------------
def cnn_forward(params, x, *, batch_tile=8, compute_dtype=jnp.bfloat16):
    n = x.shape[0]
    assert x.shape[1:] == (1, 28, 28), "CNNModel requires (N, 1, 28, 28) input"
    x2 = x.reshape(n, 28, 28).astype(jnp.float32)            # C_in == 1, squeeze

    n_pad = -n % batch_tile
    if n_pad:
        x2 = jnp.pad(x2, ((0, n_pad), (0, 0), (0, 0)))
    n_full = n + n_pad

    w1, b1t, w2, b2t, fwp, fbp = _prep_params(params, compute_dtype)

    out = pl.pallas_call(
        _cnn_fused_kernel,
        out_shape=jax.ShapeDtypeStruct((n_full, 128), jnp.float32),
        grid=(n_full // batch_tile,),
        in_specs=[
            pl.BlockSpec((batch_tile, 28, 28), lambda i: (i, 0, 0)),
            pl.BlockSpec((140, 384), lambda i: (0, 0)),   # broadcast weight blocks
            pl.BlockSpec((1, 384), lambda i: (0, 0)),
            pl.BlockSpec((960, 256), lambda i: (0, 0)),
            pl.BlockSpec((1, 256), lambda i: (0, 0)),
            pl.BlockSpec((512, 128), lambda i: (0, 0)),
            pl.BlockSpec((1, 128), lambda i: (0, 0)),
        ],
        out_specs=pl.BlockSpec((batch_tile, 128), lambda i: (i, 0)),
        compiler_params=pltpu.CompilerParams(
            dimension_semantics=("parallel",),
            vmem_limit_bytes=32 * 1024 * 1024,
        ),
    )(x2, w1, b1t, w2, b2t, fwp, fbp)

    return out[:n, :10]


# ---------------------------------------------------------------------------
# Reference & init
# ---------------------------------------------------------------------------
def reference_forward(params, x, fake_quant=None):
    """Pure JAX/XLA reference. If fake_quant is set, matmul operands are rounded
    to that dtype (and back to f32) to mirror the kernel's bf16 MXU path."""
    if fake_quant is not None:
        q = lambda a: a.astype(fake_quant).astype(jnp.float32)
    else:
        q = lambda a: a
    dn = ("NCHW", "OIHW", "NCHW")
    out = jax.lax.conv_general_dilated(q(x.astype(jnp.float32)), q(params["cnn1_w"]),
                                       (1, 1), "VALID", dimension_numbers=dn)
    out = jnp.maximum(out + params["cnn1_b"][None, :, None, None], 0.0)
    out = jax.lax.reduce_window(out, -jnp.inf, jax.lax.max,
                                (1, 1, 2, 2), (1, 1, 2, 2), "VALID")
    out = jax.lax.conv_general_dilated(q(out), q(params["cnn2_w"]),
                                       (1, 1), "VALID", dimension_numbers=dn)
    out = jnp.maximum(out + params["cnn2_b"][None, :, None, None], 0.0)
    out = jax.lax.reduce_window(out, -jnp.inf, jax.lax.max,
                                (1, 1, 2, 2), (1, 1, 2, 2), "VALID")
    out = out.reshape(out.shape[0], -1)
    return q(out) @ q(params["fc1_w"]).T + params["fc1_b"]


def init_params(key):
    k1, k2, k3, k4, k5, k6 = jax.random.split(key, 6)

    def uni(k, shape, fan_in):
        bound = 1.0 / jnp.sqrt(fan_in)
        return jax.random.uniform(k, shape, jnp.float32, -bound, bound)

    return {
        "cnn1_w": uni(k1, (16, 1, 5, 5), 1 * 5 * 5),
        "cnn1_b": uni(k2, (16,), 1 * 5 * 5),
        "cnn2_w": uni(k3, (32, 16, 5, 5), 16 * 5 * 5),
        "cnn2_b": uni(k4, (32,), 16 * 5 * 5),
        "fc1_w": uni(k5, (10, 32 * 4 * 4), 32 * 4 * 4),     # torch Linear: (out, in)
        "fc1_b": uni(k6, (10,), 32 * 4 * 4),
    }


if __name__ == "__main__":
    key = jax.random.PRNGKey(0)
    kp, kx = jax.random.split(key)
    params = init_params(kp)
    # MNIST-shaped input: fc1 (32*4*4 inputs) pins the spatial size to 28x28.
    x = jax.random.normal(kx, (2, 1, 28, 28), jnp.float32)

    fwd = jax.jit(cnn_forward, static_argnames=("batch_tile", "compute_dtype"))
    logits = jax.block_until_ready(fwd(params, x))
    assert logits.shape == (2, 10)

    # Tight structural check: reference with identical bf16 operand rounding.
    ref_q = reference_forward(params, x, fake_quant=jnp.bfloat16)
    err_q = float(jnp.max(jnp.abs(logits - ref_q)))
    assert jnp.allclose(logits, ref_q, atol=5e-3, rtol=5e-3), \
        f"mismatch vs bf16-quantized reference (max abs diff {err_q:.3e})"

    # Loose sanity check vs full-f32 reference (covers only bf16 rounding error).
    ref_f = reference_forward(params, x)
    err_f = float(jnp.max(jnp.abs(logits - ref_f)))
    assert jnp.allclose(logits, ref_f, atol=8e-2, rtol=8e-2), \
        f"mismatch vs f32 reference (max abs diff {err_f:.3e})"

    print("KERNEL_OK")
</pallas_src>

<mosaic_0001>
module attributes {stable_mosaic.version = 11 : i64} {
  func.func @_cnn_fused_kernel(%arg0: i32, %arg1: memref<8x28x28xf32, #tpu.memory_space<vmem>>, %arg2: memref<140x384xbf16, #tpu.memory_space<vmem>>, %arg3: memref<1x384xf32, #tpu.memory_space<vmem>>, %arg4: memref<960x256xbf16, #tpu.memory_space<vmem>>, %arg5: memref<1x256xf32, #tpu.memory_space<vmem>>, %arg6: memref<512x128xbf16, #tpu.memory_space<vmem>>, %arg7: memref<1x128xf32, #tpu.memory_space<vmem>>, %arg8: memref<8x128xf32, #tpu.memory_space<vmem>>) attributes {dimension_semantics = [#tpu.dimension_semantics<parallel>], iteration_bounds = array<i64: 1>, scalar_prefetch = 0 : i64, scratch_operands = 0 : i64, tpu.core_type = #tpu.core_type<tc>, window_params = [{transform_indices = @transform_0, window_bounds = array<i64: 8, 28, 28>}, {pipeline_mode = #tpu.pipeline_mode<synchronous>, transform_indices = @transform_1, window_bounds = array<i64: 140, 384>}, {pipeline_mode = #tpu.pipeline_mode<synchronous>, transform_indices = @transform_2, window_bounds = array<i64: 1, 384>}, {pipeline_mode = #tpu.pipeline_mode<synchronous>, transform_indices = @transform_3, window_bounds = array<i64: 960, 256>}, {pipeline_mode = #tpu.pipeline_mode<synchronous>, transform_indices = @transform_4, window_bounds = array<i64: 1, 256>}, {pipeline_mode = #tpu.pipeline_mode<synchronous>, transform_indices = @transform_5, window_bounds = array<i64: 512, 128>}, {pipeline_mode = #tpu.pipeline_mode<synchronous>, transform_indices = @transform_6, window_bounds = array<i64: 1, 128>}, {transform_indices = @transform_7, window_bounds = array<i64: 8, 128>}]} {
    %c0 = arith.constant 0 : index
    %c0_0 = arith.constant 0 : index
    %c0_1 = arith.constant 0 : index
    %0 = vector.load %arg1[%c0, %c0_0, %c0_1] : memref<8x28x28xf32, #tpu.memory_space<vmem>>, vector<8x28x28xf32>
    %1 = vector.extract_strided_slice %0 {offsets = [0, 0, 0], sizes = [8, 24, 28], strides = [1, 1, 1]} : vector<8x28x28xf32> to vector<8x24x28xf32>
    %2 = vector.extract_strided_slice %0 {offsets = [0, 1, 0], sizes = [8, 24, 28], strides = [1, 1, 1]} : vector<8x28x28xf32> to vector<8x24x28xf32>
    %3 = vector.extract_strided_slice %0 {offsets = [0, 2, 0], sizes = [8, 24, 28], strides = [1, 1, 1]} : vector<8x28x28xf32> to vector<8x24x28xf32>
    %4 = vector.extract_strided_slice %0 {offsets = [0, 3, 0], sizes = [8, 24, 28], strides = [1, 1, 1]} : vector<8x28x28xf32> to vector<8x24x28xf32>
    %5 = vector.extract_strided_slice %0 {offsets = [0, 4, 0], sizes = [8, 24, 28], strides = [1, 1, 1]} : vector<8x28x28xf32> to vector<8x24x28xf32>
    %6 = tpu.concatenate %1, %2, %3, %4, %5 in 2 : vector<8x24x28xf32>, vector<8x24x28xf32>, vector<8x24x28xf32>, vector<8x24x28xf32>, vector<8x24x28xf32> -> vector<8x24x140xf32>
    %7 = vector.shape_cast %6 : vector<8x24x140xf32> to vector<192x140xf32>
    %8 = arith.truncf %7 : vector<192x140xf32> to vector<192x140xbf16>
    %c0_2 = arith.constant 0 : index
    %c0_3 = arith.constant 0 : index
    %9 = vector.load %arg2[%c0_2, %c0_3] : memref<140x384xbf16, #tpu.memory_space<vmem>>, vector<140x384xbf16>
    %cst = arith.constant dense<0.000000e+00> : vector<192x384xf32>
    %10 = tpu.matmul %8, %9, %cst {dimension_numbers = #tpu.dot_dimension_numbers<[1], [0], [0], [1], [0, 0, 1, 1], [], []>} : vector<192x140xbf16>, vector<140x384xbf16>, vector<192x384xf32> -> vector<192x384xf32>
    %c0_4 = arith.constant 0 : index
    %c0_5 = arith.constant 0 : index
    %11 = vector.load %arg3[%c0_4, %c0_5] : memref<1x384xf32, #tpu.memory_space<vmem>>, vector<1x384xf32>
    %12 = vector.broadcast %11 : vector<1x384xf32> to vector<192x384xf32>
    %13 = arith.addf %10, %12 : vector<192x384xf32>
    %cst_6 = arith.constant 0.000000e+00 : f32
    %14 = vector.broadcast %cst_6 : f32 to vector<192x384xf32>
    %15 = arith.maximumf %13, %14 : vector<192x384xf32>
    %16 = vector.shape_cast %15 : vector<192x384xf32> to vector<8x24x384xf32>
    %17 = vector.extract_strided_slice %16 {offsets = [0, 0, 0], sizes = [8, 1, 384], strides = [1, 1, 1]} : vector<8x24x384xf32> to vector<8x1x384xf32>
    %18 = vector.extract_strided_slice %16 {offsets = [0, 1, 0], sizes = [8, 1, 384], strides = [1, 1, 1]} : vector<8x24x384xf32> to vector<8x1x384xf32>
    %19 = arith.maximumf %17, %18 : vector<8x1x384xf32>
    %20 = vector.extract_strided_slice %16 {offsets = [0, 2, 0], sizes = [8, 1, 384], strides = [1, 1, 1]} : vector<8x24x384xf32> to vector<8x1x384xf32>
    %21 = vector.extract_strided_slice %16 {offsets = [0, 3, 0], sizes = [8, 1, 384], strides = [1, 1, 1]} : vector<8x24x384xf32> to vector<8x1x384xf32>
    %22 = arith.maximumf %20, %21 : vector<8x1x384xf32>
    %23 = vector.extract_strided_slice %16 {offsets = [0, 4, 0], sizes = [8, 1, 384], strides = [1, 1, 1]} : vector<8x24x384xf32> to vector<8x1x384xf32>
    %24 = vector.extract_strided_slice %16 {offsets = [0, 5, 0], sizes = [8, 1, 384], strides = [1, 1, 1]} : vector<8x24x384xf32> to vector<8x1x384xf32>
    %25 = arith.maximumf %23, %24 : vector<8x1x384xf32>
    %26 = vector.extract_strided_slice %16 {offsets = [0, 6, 0], sizes = [8, 1, 384], strides = [1, 1, 1]} : vector<8x24x384xf32> to vector<8x1x384xf32>
    %27 = vector.extract_strided_slice %16 {offsets = [0, 7, 0], sizes = [8, 1, 384], strides = [1, 1, 1]} : vector<8x24x384xf32> to vector<8x1x384xf32>
    %28 = arith.maximumf %26, %27 : vector<8x1x384xf32>
    %29 = vector.extract_strided_slice %16 {offsets = [0, 8, 0], sizes = [8, 1, 384], strides = [1, 1, 1]} : vector<8x24x384xf32> to vector<8x1x384xf32>
    %30 = vector.extract_strided_slice %16 {offsets = [0, 9, 0], sizes = [8, 1, 384], strides = [1, 1, 1]} : vector<8x24x384xf32> to vector<8x1x384xf32>
    %31 = arith.maximumf %29, %30 : vector<8x1x384xf32>
    %32 = vector.extract_strided_slice %16 {offsets = [0, 10, 0], sizes = [8, 1, 384], strides = [1, 1, 1]} : vector<8x24x384xf32> to vector<8x1x384xf32>
    %33 = vector.extract_strided_slice %16 {offsets = [0, 11, 0], sizes = [8, 1, 384], strides = [1, 1, 1]} : vector<8x24x384xf32> to vector<8x1x384xf32>
    %34 = arith.maximumf %32, %33 : vector<8x1x384xf32>
    %35 = vector.extract_strided_slice %16 {offsets = [0, 12, 0], sizes = [8, 1, 384], strides = [1, 1, 1]} : vector<8x24x384xf32> to vector<8x1x384xf32>
    %36 = vector.extract_strided_slice %16 {offsets = [0, 13, 0], sizes = [8, 1, 384], strides = [1, 1, 1]} : vector<8x24x384xf32> to vector<8x1x384xf32>
    %37 = arith.maximumf %35, %36 : vector<8x1x384xf32>
    %38 = vector.extract_strided_slice %16 {offsets = [0, 14, 0], sizes = [8, 1, 384], strides = [1, 1, 1]} : vector<8x24x384xf32> to vector<8x1x384xf32>
    %39 = vector.extract_strided_slice %16 {offsets = [0, 15, 0], sizes = [8, 1, 384], strides = [1, 1, 1]} : vector<8x24x384xf32> to vector<8x1x384xf32>
    %40 = arith.maximumf %38, %39 : vector<8x1x384xf32>
    %41 = vector.extract_strided_slice %16 {offsets = [0, 16, 0], sizes = [8, 1, 384], strides = [1, 1, 1]} : vector<8x24x384xf32> to vector<8x1x384xf32>
    %42 = vector.extract_strided_slice %16 {offsets = [0, 17, 0], sizes = [8, 1, 384], strides = [1, 1, 1]} : vector<8x24x384xf32> to vector<8x1x384xf32>
    %43 = arith.maximumf %41, %42 : vector<8x1x384xf32>
    %44 = vector.extract_strided_slice %16 {offsets = [0, 18, 0], sizes = [8, 1, 384], strides = [1, 1, 1]} : vector<8x24x384xf32> to vector<8x1x384xf32>
    %45 = vector.extract_strided_slice %16 {offsets = [0, 19, 0], sizes = [8, 1, 384], strides = [1, 1, 1]} : vector<8x24x384xf32> to vector<8x1x384xf32>
    %46 = arith.maximumf %44, %45 : vector<8x1x384xf32>
    %47 = vector.extract_strided_slice %16 {offsets = [0, 20, 0], sizes = [8, 1, 384], strides = [1, 1, 1]} : vector<8x24x384xf32> to vector<8x1x384xf32>
    %48 = vector.extract_strided_slice %16 {offsets = [0, 21, 0], sizes = [8, 1, 384], strides = [1, 1, 1]} : vector<8x24x384xf32> to vector<8x1x384xf32>
    %49 = arith.maximumf %47, %48 : vector<8x1x384xf32>
    %50 = vector.extract_strided_slice %16 {offsets = [0, 22, 0], sizes = [8, 1, 384], strides = [1, 1, 1]} : vector<8x24x384xf32> to vector<8x1x384xf32>
    %51 = vector.extract_strided_slice %16 {offsets = [0, 23, 0], sizes = [8, 1, 384], strides = [1, 1, 1]} : vector<8x24x384xf32> to vector<8x1x384xf32>
    %52 = arith.maximumf %50, %51 : vector<8x1x384xf32>
    %53 = tpu.concatenate %19, %22, %25, %28, %31, %34, %37, %40, %43, %46, %49, %52 in 1 : vector<8x1x384xf32>, vector<8x1x384xf32>, vector<8x1x384xf32>, vector<8x1x384xf32>, vector<8x1x384xf32>, vector<8x1x384xf32>, vector<8x1x384xf32>, vector<8x1x384xf32>, vector<8x1x384xf32>, vector<8x1x384xf32>, vector<8x1x384xf32>, vector<8x1x384xf32> -> vector<8x12x384xf32>
    %54 = vector.extract_strided_slice %53 {offsets = [0, 0, 0], sizes = [8, 12, 16], strides = [1, 1, 1]} : vector<8x12x384xf32> to vector<8x12x16xf32>
    %55 = vector.extract_strided_slice %53 {offsets = [0, 0, 16], sizes = [8, 12, 16], strides = [1, 1, 1]} : vector<8x12x384xf32> to vector<8x12x16xf32>
    %56 = arith.maximumf %54, %55 : vector<8x12x16xf32>
    %57 = vector.extract_strided_slice %53 {offsets = [0, 0, 32], sizes = [8, 12, 16], strides = [1, 1, 1]} : vector<8x12x384xf32> to vector<8x12x16xf32>
    %58 = vector.extract_strided_slice %53 {offsets = [0, 0, 48], sizes = [8, 12, 16], strides = [1, 1, 1]} : vector<8x12x384xf32> to vector<8x12x16xf32>
    %59 = arith.maximumf %57, %58 : vector<8x12x16xf32>
    %60 = vector.extract_strided_slice %53 {offsets = [0, 0, 64], sizes = [8, 12, 16], strides = [1, 1, 1]} : vector<8x12x384xf32> to vector<8x12x16xf32>
    %61 = vector.extract_strided_slice %53 {offsets = [0, 0, 80], sizes = [8, 12, 16], strides = [1, 1, 1]} : vector<8x12x384xf32> to vector<8x12x16xf32>
    %62 = arith.maximumf %60, %61 : vector<8x12x16xf32>
    %63 = vector.extract_strided_slice %53 {offsets = [0, 0, 96], sizes = [8, 12, 16], strides = [1, 1, 1]} : vector<8x12x384xf32> to vector<8x12x16xf32>
    %64 = vector.extract_strided_slice %53 {offsets = [0, 0, 112], sizes = [8, 12, 16], strides = [1, 1, 1]} : vector<8x12x384xf32> to vector<8x12x16xf32>
    %65 = arith.maximumf %63, %64 : vector<8x12x16xf32>
    %66 = vector.extract_strided_slice %53 {offsets = [0, 0, 128], sizes = [8, 12, 16], strides = [1, 1, 1]} : vector<8x12x384xf32> to vector<8x12x16xf32>
    %67 = vector.extract_strided_slice %53 {offsets = [0, 0, 144], sizes = [8, 12, 16], strides = [1, 1, 1]} : vector<8x12x384xf32> to vector<8x12x16xf32>
    %68 = arith.maximumf %66, %67 : vector<8x12x16xf32>
    %69 = vector.extract_strided_slice %53 {offsets = [0, 0, 160], sizes = [8, 12, 16], strides = [1, 1, 1]} : vector<8x12x384xf32> to vector<8x12x16xf32>
    %70 = vector.extract_strided_slice %53 {offsets = [0, 0, 176], sizes = [8, 12, 16], strides = [1, 1, 1]} : vector<8x12x384xf32> to vector<8x12x16xf32>
    %71 = arith.maximumf %69, %70 : vector<8x12x16xf32>
    %72 = vector.extract_strided_slice %53 {offsets = [0, 0, 192], sizes = [8, 12, 16], strides = [1, 1, 1]} : vector<8x12x384xf32> to vector<8x12x16xf32>
    %73 = vector.extract_strided_slice %53 {offsets = [0, 0, 208], sizes = [8, 12, 16], strides = [1, 1, 1]} : vector<8x12x384xf32> to vector<8x12x16xf32>
    %74 = arith.maximumf %72, %73 : vector<8x12x16xf32>
    %75 = vector.extract_strided_slice %53 {offsets = [0, 0, 224], sizes = [8, 12, 16], strides = [1, 1, 1]} : vector<8x12x384xf32> to vector<8x12x16xf32>
    %76 = vector.extract_strided_slice %53 {offsets = [0, 0, 240], sizes = [8, 12, 16], strides = [1, 1, 1]} : vector<8x12x384xf32> to vector<8x12x16xf32>
    %77 = arith.maximumf %75, %76 : vector<8x12x16xf32>
    %78 = vector.extract_strided_slice %53 {offsets = [0, 0, 256], sizes = [8, 12, 16], strides = [1, 1, 1]} : vector<8x12x384xf32> to vector<8x12x16xf32>
    %79 = vector.extract_strided_slice %53 {offsets = [0, 0, 272], sizes = [8, 12, 16], strides = [1, 1, 1]} : vector<8x12x384xf32> to vector<8x12x16xf32>
    %80 = arith.maximumf %78, %79 : vector<8x12x16xf32>
    %81 = vector.extract_strided_slice %53 {offsets = [0, 0, 288], sizes = [8, 12, 16], strides = [1, 1, 1]} : vector<8x12x384xf32> to vector<8x12x16xf32>
    %82 = vector.extract_strided_slice %53 {offsets = [0, 0, 304], sizes = [8, 12, 16], strides = [1, 1, 1]} : vector<8x12x384xf32> to vector<8x12x16xf32>
    %83 = arith.maximumf %81, %82 : vector<8x12x16xf32>
    %84 = vector.extract_strided_slice %53 {offsets = [0, 0, 320], sizes = [8, 12, 16], strides = [1, 1, 1]} : vector<8x12x384xf32> to vector<8x12x16xf32>
    %85 = vector.extract_strided_slice %53 {offsets = [0, 0, 336], sizes = [8, 12, 16], strides = [1, 1, 1]} : vector<8x12x384xf32> to vector<8x12x16xf32>
    %86 = arith.maximumf %84, %85 : vector<8x12x16xf32>
    %87 = vector.extract_strided_slice %53 {offsets = [0, 0, 352], sizes = [8, 12, 16], strides = [1, 1, 1]} : vector<8x12x384xf32> to vector<8x12x16xf32>
    %88 = vector.extract_strided_slice %53 {offsets = [0, 0, 368], sizes = [8, 12, 16], strides = [1, 1, 1]} : vector<8x12x384xf32> to vector<8x12x16xf32>
    %89 = arith.maximumf %87, %88 : vector<8x12x16xf32>
    %90 = tpu.concatenate %56, %59, %62, %65, %68, %71, %74, %77, %80, %83, %86, %89 in 2 : vector<8x12x16xf32>, vector<8x12x16xf32>, vector<8x12x16xf32>, vector<8x12x16xf32>, vector<8x12x16xf32>, vector<8x12x16xf32>, vector<8x12x16xf32>, vector<8x12x16xf32>, vector<8x12x16xf32>, vector<8x12x16xf32>, vector<8x12x16xf32>, vector<8x12x16xf32> -> vector<8x12x192xf32>
    %91 = vector.extract_strided_slice %90 {offsets = [0, 0, 0], sizes = [8, 8, 192], strides = [1, 1, 1]} : vector<8x12x192xf32> to vector<8x8x192xf32>
    %92 = vector.extract_strided_slice %90 {offsets = [0, 1, 0], sizes = [8, 8, 192], strides = [1, 1, 1]} : vector<8x12x192xf32> to vector<8x8x192xf32>
    %93 = vector.extract_strided_slice %90 {offsets = [0, 2, 0], sizes = [8, 8, 192], strides = [1, 1, 1]} : vector<8x12x192xf32> to vector<8x8x192xf32>
    %94 = vector.extract_strided_slice %90 {offsets = [0, 3, 0], sizes = [8, 8, 192], strides = [1, 1, 1]} : vector<8x12x192xf32> to vector<8x8x192xf32>
    %95 = vector.extract_strided_slice %90 {offsets = [0, 4, 0], sizes = [8, 8, 192], strides = [1, 1, 1]} : vector<8x12x192xf32> to vector<8x8x192xf32>
    %96 = tpu.concatenate %91, %92, %93, %94, %95 in 2 : vector<8x8x192xf32>, vector<8x8x192xf32>, vector<8x8x192xf32>, vector<8x8x192xf32>, vector<8x8x192xf32> -> vector<8x8x960xf32>
    %97 = vector.shape_cast %96 : vector<8x8x960xf32> to vector<64x960xf32>
    %98 = arith.truncf %97 : vector<64x960xf32> to vector<64x960xbf16>
    %c0_7 = arith.constant 0 : index
    %c0_8 = arith.constant 0 : index
    %99 = vector.load %arg4[%c0_7, %c0_8] : memref<960x256xbf16, #tpu.memory_space<vmem>>, vector<960x256xbf16>
    %cst_9 = arith.constant dense<0.000000e+00> : vector<64x256xf32>
    %100 = tpu.matmul %98, %99, %cst_9 {dimension_numbers = #tpu.dot_dimension_numbers<[1], [0], [0], [1], [0, 0, 1, 1], [], []>} : vector<64x960xbf16>, vector<960x256xbf16>, vector<64x256xf32> -> vector<64x256xf32>
    %c0_10 = arith.constant 0 : index
    %c0_11 = arith.constant 0 : index
    %101 = vector.load %arg5[%c0_10, %c0_11] : memref<1x256xf32, #tpu.memory_space<vmem>>, vector<1x256xf32>
    %102 = vector.broadcast %101 : vector<1x256xf32> to vector<64x256xf32>
    %103 = arith.addf %100, %102 : vector<64x256xf32>
    %cst_12 = arith.constant 0.000000e+00 : f32
    %104 = vector.broadcast %cst_12 : f32 to vector<64x256xf32>
    %105 = arith.maximumf %103, %104 : vector<64x256xf32>
    %106 = vector.shape_cast %105 : vector<64x256xf32> to vector<8x8x256xf32>
    %107 = vector.extract_strided_slice %106 {offsets = [0, 0, 0], sizes = [8, 1, 256], strides = [1, 1, 1]} : vector<8x8x256xf32> to vector<8x1x256xf32>
    %108 = vector.extract_strided_slice %106 {offsets = [0, 1, 0], sizes = [8, 1, 256], strides = [1, 1, 1]} : vector<8x8x256xf32> to vector<8x1x256xf32>
    %109 = arith.maximumf %107, %108 : vector<8x1x256xf32>
    %110 = vector.extract_strided_slice %106 {offsets = [0, 2, 0], sizes = [8, 1, 256], strides = [1, 1, 1]} : vector<8x8x256xf32> to vector<8x1x256xf32>
    %111 = vector.extract_strided_slice %106 {offsets = [0, 3, 0], sizes = [8, 1, 256], strides = [1, 1, 1]} : vector<8x8x256xf32> to vector<8x1x256xf32>
    %112 = arith.maximumf %110, %111 : vector<8x1x256xf32>
    %113 = vector.extract_strided_slice %106 {offsets = [0, 4, 0], sizes = [8, 1, 256], strides = [1, 1, 1]} : vector<8x8x256xf32> to vector<8x1x256xf32>
    %114 = vector.extract_strided_slice %106 {offsets = [0, 5, 0], sizes = [8, 1, 256], strides = [1, 1, 1]} : vector<8x8x256xf32> to vector<8x1x256xf32>
    %115 = arith.maximumf %113, %114 : vector<8x1x256xf32>
    %116 = vector.extract_strided_slice %106 {offsets = [0, 6, 0], sizes = [8, 1, 256], strides = [1, 1, 1]} : vector<8x8x256xf32> to vector<8x1x256xf32>
    %117 = vector.extract_strided_slice %106 {offsets = [0, 7, 0], sizes = [8, 1, 256], strides = [1, 1, 1]} : vector<8x8x256xf32> to vector<8x1x256xf32>
    %118 = arith.maximumf %116, %117 : vector<8x1x256xf32>
    %119 = tpu.concatenate %109, %112, %115, %118 in 1 : vector<8x1x256xf32>, vector<8x1x256xf32>, vector<8x1x256xf32>, vector<8x1x256xf32> -> vector<8x4x256xf32>
    %120 = vector.extract_strided_slice %119 {offsets = [0, 0, 0], sizes = [8, 4, 32], strides = [1, 1, 1]} : vector<8x4x256xf32> to vector<8x4x32xf32>
    %121 = vector.extract_strided_slice %119 {offsets = [0, 0, 32], sizes = [8, 4, 32], strides = [1, 1, 1]} : vector<8x4x256xf32> to vector<8x4x32xf32>
    %122 = arith.maximumf %120, %121 : vector<8x4x32xf32>
    %123 = vector.extract_strided_slice %119 {offsets = [0, 0, 64], sizes = [8, 4, 32], strides = [1, 1, 1]} : vector<8x4x256xf32> to vector<8x4x32xf32>
    %124 = vector.extract_strided_slice %119 {offsets = [0, 0, 96], sizes = [8, 4, 32], strides = [1, 1, 1]} : vector<8x4x256xf32> to vector<8x4x32xf32>
    %125 = arith.maximumf %123, %124 : vector<8x4x32xf32>
    %126 = vector.extract_strided_slice %119 {offsets = [0, 0, 128], sizes = [8, 4, 32], strides = [1, 1, 1]} : vector<8x4x256xf32> to vector<8x4x32xf32>
    %127 = vector.extract_strided_slice %119 {offsets = [0, 0, 160], sizes = [8, 4, 32], strides = [1, 1, 1]} : vector<8x4x256xf32> to vector<8x4x32xf32>
    %128 = arith.maximumf %126, %127 : vector<8x4x32xf32>
    %129 = vector.extract_strided_slice %119 {offsets = [0, 0, 192], sizes = [8, 4, 32], strides = [1, 1, 1]} : vector<8x4x256xf32> to vector<8x4x32xf32>
    %130 = vector.extract_strided_slice %119 {offsets = [0, 0, 224], sizes = [8, 4, 32], strides = [1, 1, 1]} : vector<8x4x256xf32> to vector<8x4x32xf32>
    %131 = arith.maximumf %129, %130 : vector<8x4x32xf32>
    %132 = tpu.concatenate %122, %125, %128, %131 in 2 : vector<8x4x32xf32>, vector<8x4x32xf32>, vector<8x4x32xf32>, vector<8x4x32xf32> -> vector<8x4x128xf32>
    %133 = vector.extract_strided_slice %132 {offsets = [0, 0, 0], sizes = [8, 1, 128], strides = [1, 1, 1]} : vector<8x4x128xf32> to vector<8x1x128xf32>
    %134 = vector.shape_cast %133 : vector<8x1x128xf32> to vector<8x128xf32>
    %135 = vector.extract_strided_slice %132 {offsets = [0, 1, 0], sizes = [8, 1, 128], strides = [1, 1, 1]} : vector<8x4x128xf32> to vector<8x1x128xf32>
    %136 = vector.shape_cast %135 : vector<8x1x128xf32> to vector<8x128xf32>
    %137 = vector.extract_strided_slice %132 {offsets = [0, 2, 0], sizes = [8, 1, 128], strides = [1, 1, 1]} : vector<8x4x128xf32> to vector<8x1x128xf32>
    %138 = vector.shape_cast %137 : vector<8x1x128xf32> to vector<8x128xf32>
    %139 = vector.extract_strided_slice %132 {offsets = [0, 3, 0], sizes = [8, 1, 128], strides = [1, 1, 1]} : vector<8x4x128xf32> to vector<8x1x128xf32>
    %140 = vector.shape_cast %139 : vector<8x1x128xf32> to vector<8x128xf32>
    %141 = tpu.concatenate %134, %136, %138, %140 in 1 : vector<8x128xf32>, vector<8x128xf32>, vector<8x128xf32>, vector<8x128xf32> -> vector<8x512xf32>
    %142 = arith.truncf %141 : vector<8x512xf32> to vector<8x512xbf16>
    %c0_13 = arith.constant 0 : index
    %c0_14 = arith.constant 0 : index
    %143 = vector.load %arg6[%c0_13, %c0_14] : memref<512x128xbf16, #tpu.memory_space<vmem>>, vector<512x128xbf16>
    %cst_15 = arith.constant dense<0.000000e+00> : vector<8x128xf32>
    %144 = tpu.matmul %142, %143, %cst_15 {dimension_numbers = #tpu.dot_dimension_numbers<[1], [0], [0], [1], [0, 0, 1, 1], [], []>} : vector<8x512xbf16>, vector<512x128xbf16>, vector<8x128xf32> -> vector<8x128xf32>
    %c0_16 = arith.constant 0 : index
    %c0_17 = arith.constant 0 : index
    %145 = vector.load %arg7[%c0_16, %c0_17] : memref<1x128xf32, #tpu.memory_space<vmem>>, vector<1x128xf32>
    %146 = vector.broadcast %145 : vector<1x128xf32> to vector<8x128xf32>
    %147 = arith.addf %144, %146 : vector<8x128xf32>
    %c0_18 = arith.constant 0 : index
    %c0_19 = arith.constant 0 : index
    %148 = vector.load %arg8[%c0_18, %c0_19] : memref<8x128xf32, #tpu.memory_space<vmem>>, vector<8x128xf32>
    tpu.vector_store %arg8[%c0_18, %c0_19], %147 {strides = array<i32>} : memref<8x128xf32, #tpu.memory_space<vmem>>, vector<8x128xf32>,
    return
  }
  func.func @transform_0(%arg0: i32) -> (i32, i32, i32) {
    %c0_i32 = arith.constant 0 : i32
    %c0_i32_0 = arith.constant 0 : i32
    %c0_i32_1 = arith.constant 0 : i32
    return %arg0, %c0_i32, %c0_i32_0 : i32, i32, i32
  }
  func.func @transform_1(%arg0: i32) -> (i32, i32) {
    %c0_i32 = arith.constant 0 : i32
    %c0_i32_0 = arith.constant 0 : i32
    %c0_i32_1 = arith.constant 0 : i32
    return %c0_i32, %c0_i32_0 : i32, i32
  }
  func.func @transform_2(%arg0: i32) -> (i32, i32) {
    %c0_i32 = arith.constant 0 : i32
    %c0_i32_0 = arith.constant 0 : i32
    %c0_i32_1 = arith.constant 0 : i32
    return %c0_i32, %c0_i32_0 : i32, i32
  }
  func.func @transform_3(%arg0: i32) -> (i32, i32) {
    %c0_i32 = arith.constant 0 : i32
    %c0_i32_0 = arith.constant 0 : i32
    %c0_i32_1 = arith.constant 0 : i32
    return %c0_i32, %c0_i32_0 : i32, i32
  }
  func.func @transform_4(%arg0: i32) -> (i32, i32) {
    %c0_i32 = arith.constant 0 : i32
    %c0_i32_0 = arith.constant 0 : i32
    %c0_i32_1 = arith.constant 0 : i32
    return %c0_i32, %c0_i32_0 : i32, i32
  }
  func.func @transform_5(%arg0: i32) -> (i32, i32) {
    %c0_i32 = arith.constant 0 : i32
    %c0_i32_0 = arith.constant 0 : i32
    %c0_i32_1 = arith.constant 0 : i32
    return %c0_i32, %c0_i32_0 : i32, i32
  }
  func.func @transform_6(%arg0: i32) -> (i32, i32) {
    %c0_i32 = arith.constant 0 : i32
    %c0_i32_0 = arith.constant 0 : i32
    %c0_i32_1 = arith.constant 0 : i32
    return %c0_i32, %c0_i32_0 : i32, i32
  }
  func.func @transform_7(%arg0: i32) -> (i32, i32) {
    %c0_i32 = arith.constant 0 : i32
    %c0_i32_0 = arith.constant 0 : i32
    return %arg0, %c0_i32 : i32, i32
  }
}

</mosaic_0001>

<bundles_post_ra>
// kernel: tile.13
= control target key start
LH: loop header
LB: loop body
LE: loop exit
PB: predicated region body
PF: predicated region fallthrough
CT: control target
= control target key end

     0   :  { %s34_s0 = inlined_call_operand.vmem [shape: f32[16], index: 0, kind: input, shape index: {}]   ;;  %s35_s1 = inlined_call_operand.vmem [shape: f32[24,16], index: 1, kind: output, shape index: {}]  }
   0x1   :  { %v4_v0 = vld [vmem:[%s34_s0] ss:$0 sm:$0xff] }
   0x2   :  { %5 = vst [vmem:[%s35_s1] sm:$0xff] %v4_v0  ;;  %10 = vst [vmem:[%s35_s1 + $0x8] sm:$0xff] %v4_v0 }
   0x3   :  { %11 = vst [vmem:[%s35_s1 + $0x10] sm:$0xff] %v4_v0 }

// kernel: tile.14
= control target key start
LH: loop header
LB: loop body
LE: loop exit
PB: predicated region body
PF: predicated region fallthrough
CT: control target
= control target key end

     0   :  { %s81_s8 = smov 112   ;;  %s82_s11 = smov 80   ;;  %vm3_vm0 = vcmask 130048   ;;  %vm9_vm1 = vcmask 1048448   ;;  %vm15_vm2 = vcmask 917248   ;;  %vm21_vm3 = vcmask 786048   ;;  %s131_s0 = inlined_call_operand.vmem [shape: f32[24,16], index: 0, kind: input, shape index: {}]   ;;  %s132_s1 = inlined_call_operand.vmem [shape: f32[1,384], index: 1, kind: output, shape index: {}]  }
   0x1   :  { %v65_v0 = vld [vmem:[%s131_s0 + $0x7] ss:$8 sm:$0x7]   ;;  %v67_v1 = vld [vmem:[%s131_s0 + $0x5] ss:$8 sm:$0x7]  }
   0x2   :  { %7 = vrot.lane.b32.xlu0 %v65_v0, %s81_s8  ;;  %19 = vrot.lane.b32.xlu1 %v67_v1, %s82_s11  ;;  %v66_v2 = vld [vmem:[%s131_s0 + $0x6] ss:$8 sm:$0x7]   ;;  %v68_v3 = vld [vmem:[%s131_s0 + $0x4] ss:$8 sm:$0x7]  }
   0x3   :  { %s83_s16 = smov 96   ;;  %v2_v4 = vld [vmem:[%s131_s0] ss:$8 sm:$0x7]   ;;  %s84_s19 = smov 64   ;;  %vm27_vm4 = vcmask 654848  }
   0x4   :  { %v69_v5 = vld [vmem:[%s131_s0 + $0x3] ss:$8 sm:$0x7]   ;;  %4 = vst.msk [vmem:[#allocation0] ss:$8 sm:$0x7] %vm3_vm0, %v2_v4  }
   0x5   :  { %v70_v6 = vld [vmem:[%s131_s0 + $0x2] ss:$8 sm:$0x7]   ;;  %s85_s24 = smov 48   ;;  %s86_s25 = smov 32   ;;  %vm33_vm5 = vcmask 523648  }
   0x6   :  { %13 = vrot.lane.b32.xlu0 %v66_v2, %s83_s16  ;;  %25 = vrot.lane.b32.xlu1 %v68_v3, %s84_s19  ;;  %v71_v7 = vld [vmem:[%s131_s0 + $0x1] ss:$8 sm:$0x7]   ;;  %s87_s0 = smov 16   ;;  %vm39_vm6 = vcmask 392448   ;;  %vm45_vm7 = vcmask 261248  }
   0xa   :  { %31 = vrot.lane.b32.xlu0 %v69_v5, %s85_s24  ;;  %37 = vrot.lane.b32.xlu1 %v70_v6, %s86_s25 }
   0xe   :  { %43 = vrot.lane.b32.xlu0 %v71_v7, %s87_s0 }
  0x74   :  { %v8_v8 = vpop.permute.xlu0 %7   ;;  %v20_v9 = vpop.permute.xlu1 %19  }
  0x75   :  { %10 = vst.msk [vmem:[#allocation0] ss:$8 sm:$0x7] %vm9_vm1, %v8_v8  }
  0x78   :  { %v14_v10 = vpop.permute.xlu0 %13   ;;  %v26_v11 = vpop.permute.xlu1 %25  }
  0x79   :  { %16 = vst.msk [vmem:[#allocation0] ss:$8 sm:$0x7] %vm15_vm2, %v14_v10  }
  0x7a   :  { %22 = vst.msk [vmem:[#allocation0] ss:$8 sm:$0x7] %vm21_vm3, %v20_v9  }
  0x7b   :  { %28 = vst.msk [vmem:[#allocation0] ss:$8 sm:$0x7] %vm27_vm4, %v26_v11  }
  0x7c   :  { %v32_v12 = vpop.permute.xlu0 %31   ;;  %v38_v13 = vpop.permute.xlu1 %37  }
  0x7d   :  { %34 = vst.msk [vmem:[#allocation0] ss:$8 sm:$0x7] %vm33_vm5, %v32_v12  }
  0x7e   :  { %40 = vst.msk [vmem:[#allocation0] ss:$8 sm:$0x7] %vm39_vm6, %v38_v13  }
  0x80   :  { %v44_v14 = vpop.permute.xlu0 %43  }
  0x81   :  { %46 = vst.msk [vmem:[#allocation0] ss:$8 sm:$0x7] %vm45_vm7, %v44_v14  }
  0x88   :  { %v50_v15 = vld [vmem:[#allocation0] sm:$0x1]  ;;  %v54_v16 = vld [vmem:[#allocation0 + $0x8] sm:$0x1]  ;;  %v59_v17 = vld [vmem:[#allocation0 + $0x10] sm:$0x1] }
  0x89   :  { %52 = vst [vmem:[%s132_s1] sm:$0x1] %v50_v15  ;;  %72 = vst [vmem:[%s132_s1 + $0x1] sm:$0x1] %v54_v16 }
  0x8a   :  { %73 = vst [vmem:[%s132_s1 + $0x2] sm:$0x1] %v59_v17 }

// kernel: tile.18
= control target key start
LH: loop header
LB: loop body
LE: loop exit
PB: predicated region body
PF: predicated region fallthrough
CT: control target
= control target key end

     0   :  { %s22_s0 = inlined_call_operand.vmem [shape: f32[32], index: 0, kind: input, shape index: {}]   ;;  %s23_s1 = inlined_call_operand.vmem [shape: f32[8,32], index: 1, kind: output, shape index: {}]  }
   0x1   :  { %v4_v0 = vld [vmem:[%s22_s0] ss:$0 sm:$0xff] }
   0x2   :  { %5 = vst [vmem:[%s23_s1] sm:$0xff] %v4_v0 }

// kernel: tile.19
= control target key start
LH: loop header
LB: loop body
LE: loop exit
PB: predicated region body
PF: predicated region fallthrough
CT: control target
= control target key end

     0   :  { %s7_s6 = smov 3  ;;  %s14_s9 = smov 3  ;;  %vm4_vm0 = vcmask 261120   ;;  %vm11_vm1 = vcmask 1048320   ;;  %vm18_vm2 = vcmask 785920   ;;  %vm25_vm3 = vcmask 523520   ;;  %s76_s0 = inlined_call_operand.vmem [shape: f32[8,32], index: 0, kind: input, shape index: {}]   ;;  %s77_s1 = inlined_call_operand.vmem [shape: f32[1,256], index: 1, kind: output, shape index: {}]  }
   0x1   :  { %v38_v0 = vld [vmem:[%s76_s0 + $0x3] ss:$4 sm:%s7_s6]   ;;  %s45_s10 = smov 96   ;;  %s21_s11 = smov 3  ;;  %v39_v1 = vld [vmem:[%s76_s0 + $0x2] ss:$4 sm:%s14_s9]  }
   0x2   :  { %9 = vrot.lane.b32.xlu0 %v38_v0, %s45_s10  ;;  %v40_v2 = vld [vmem:[%s76_s0 + $0x1] ss:$4 sm:%s21_s11]   ;;  %s2_s16 = smov 3  ;;  %s46_s17 = smov 32  }
   0x3   :  { %23 = vrot.lane.b32.xlu1 %v40_v2, %s46_s17  ;;  %v3_v3 = vld [vmem:[%s76_s0] ss:$4 sm:%s2_s16]   ;;  %s47_s0 = smov 64  }
   0x4   :  { %5 = vst.msk [vmem:[#allocation0] ss:$8 sm:$0x3] %vm4_vm0, %v3_v3  }
   0x6   :  { %16 = vrot.lane.b32.xlu0 %v39_v1, %s47_s0 }
  0x74   :  { %v10_v4 = vpop.permute.xlu0 %9  }
  0x75   :  { %12 = vst.msk [vmem:[#allocation0] ss:$8 sm:$0x3] %vm11_vm1, %v10_v4   ;;  %v24_v5 = vpop.permute.xlu1 %23  }
  0x78   :  { %v17_v6 = vpop.permute.xlu0 %16  }
  0x79   :  { %19 = vst.msk [vmem:[#allocation0] ss:$8 sm:$0x3] %vm18_vm2, %v17_v6  }
  0x7a   :  { %26 = vst.msk [vmem:[#allocation0] ss:$8 sm:$0x3] %vm25_vm3, %v24_v5  }
  0x81   :  { %v30_v7 = vld [vmem:[#allocation0] sm:$0x1]  ;;  %v34_v8 = vld [vmem:[#allocation0 + $0x8] sm:$0x1] }
  0x82   :  { %32 = vst [vmem:[%s77_s1] sm:$0x1] %v30_v7  ;;  %41 = vst [vmem:[%s77_s1 + $0x1] sm:$0x1] %v34_v8 }

// kernel: cnn_forward.1
= control target key start
LH: loop header
LB: loop body
LE: loop exit
PB: predicated region body
PF: predicated region fallthrough
CT: control target
= control target key end

     0   :  { %vm91_vm0 = vcmask 1046528   ;;  %vm349_vm1 = vcmask 1044480   ;;  %vm220_vm2 = vcmask 1045504   ;;  %vm478_vm3 = vcmask 1043456   ;;  %s7169_s13 = smov 28   ;;  %s7170_s14 = smov 84   ;;  %s10764_s0 = inlined_call_operand.vmem [shape: f32[8,28,28], index: 0, kind: input, shape index: {}]   ;;  %s10765_s1 = inlined_call_operand.vmem [shape: bf16[140,384], index: 1, kind: input, shape index: {}]   ;;  %s10766_s2 = inlined_call_operand.vmem [shape: f32[1,384], index: 2, kind: input, shape index: {}]   ;;  %s10767_s3 = inlined_call_operand.vmem [shape: bf16[960,256], index: 3, kind: input, shape index: {}]   ;;  %s10768_s4 = inlined_call_operand.vmem [shape: f32[1,256], index: 4, kind: input, shape index: {}]   ;;  %s10769_s5 = inlined_call_operand.vmem [shape: bf16[512,128], index: 5, kind: input, shape index: {}]   ;;  %s10770_s6 = inlined_call_operand.vmem [shape: f32[1,128], index: 6, kind: input, shape index: {}]   ;;  %s10771_s7 = inlined_call_operand.vmem [shape: f32[8,128], index: 7, kind: output, shape index: {}]  }
   0x1   :  { %v7223_v0 = vld [vmem:[%s10764_s0] sm:$0xff]  ;;  %v7228_v1 = vld [vmem:[%s10764_s0 + $0x8] sm:$0xff]  ;;  %v7233_v2 = vld [vmem:[%s10764_s0 + $0x10] sm:$0xff]  ;;  %s7171_s19 = smov 56   ;;  %s7172_s20 = smov 112   ;;  %vm607_vm4 = vcmask 228352  }
   0x2   :  { %v92_v3 = vrot.slane %v7223_v0, 1  ;;  %v93_v4 = vrot.slane %v7228_v1, 1  ;;  %v95_v5 = vrot.slane %v7233_v2, 1  ;;  %v350_v6 = vrot.slane %v7223_v0, 3  ;;  %v30_v15 = vld [vmem:[%s10764_s0 + $0x18] sm:$0xf] }
   0x3   :  { %v351_v7 = vrot.slane %v7228_v1, 3  ;;  %v353_v8 = vrot.slane %v7233_v2, 3  ;;  %v221_v9 = vrot.slane %v7223_v0, 2  ;;  %v222_v10 = vrot.slane %v7228_v1, 2  ;;  %v7253_v16 = vld [vmem:[%s10764_s0 + $0x20] sm:$0xff]  ;;  %v7258_v17 = vld [vmem:[%s10764_s0 + $0x28] sm:$0xff] }
   0x4   :  { %v94_v11 = vsel %vm91_vm0, %v92_v3, %v93_v4  ;;  %v96_v12 = vsel %vm91_vm0, %v93_v4, %v95_v5  ;;  %v224_v13 = vrot.slane %v7233_v2, 2  ;;  %v479_v14 = vrot.slane %v7223_v0, 4  ;;  %v7279_v38 = vld [vmem:[%s10764_s0 + $0x30] sm:$0xff]  ;;  %v34_v43 = vld [vmem:[%s10764_s0 + $0x38] sm:$0xf]  ;;  %v7297_v52 = vld [vmem:[%s10764_s0 + $0x40] sm:$0xff] }
   0x5   :  { %v5981_v18 = vpack.i.bf16 %v96_v12, %v94_v11  ;;  %v352_v19 = vsel %vm349_vm1, %v350_v6, %v351_v7  ;;  %v354_v20 = vsel %vm349_vm1, %v351_v7, %v353_v8  ;;  %v223_v21 = vsel %vm220_vm2, %v221_v9, %v222_v10  ;;  %v7305_v57 = vld [vmem:[%s10764_s0 + $0x48] sm:$0xff]  ;;  %v6921_v60 = vld [vmem:[%s10765_s1 + $0x4] ss:$12 sps:$4 sm:$0xff]   ;;  %s7175_s25 = smov 96   ;;  %s7176_s26 = smov 16  }
   0x6   :  { %v5991_v22 = vpack.i.bf16 %v354_v20, %v352_v19  ;;  %v225_v23 = vsel %vm220_vm2, %v222_v10, %v224_v13  ;;  %v480_v24 = vrot.slane %v7228_v1, 4  ;;  %v482_v25 = vrot.slane %v7233_v2, 4  ;;  %v6923_v61 = vld [vmem:[%s10765_s1] ss:$12 sps:$4 sm:$0xff]   ;;  %v7320_v4 = vld [vmem:[%s10764_s0 + $0x50] sm:$0xff]  ;;  %971 = vmatprep.subr.bf16.mxu1 %v6921_v60  ;;  %s7177_s27 = smov 80  }
   0x7   :  { %5982 = vrot.lane.b32.xlu0 %v5981_v18, %s7169_s13  ;;  %v5986_v26 = vpack.i.bf16 %v225_v23, %v223_v21  ;;  %v97_v27 = vrot.slane %v30_v15, 1  ;;  %v99_v28 = vrot.slane %v7253_v16, 1  ;;  %v100_v29 = vrot.slane %v7258_v17, 1  ;;  %v6926_v10 = vld [vmem:[%s10765_s1 + $0x18] ss:$12 sps:$4 sm:$0xff]   ;;  %972 = vmatpush1.bf16.msra.mxu1 %v6923_v61  ;;  %s7178_s28 = smov 64  }
   0x8   :  { %5992 = vrot.lane.b32.xlu1 %v5991_v22, %s7170_s14  ;;  %v481_v30 = vsel %vm478_vm3, %v479_v14, %v480_v24  ;;  %v483_v31 = vsel %vm478_vm3, %v480_v24, %v482_v25  ;;  %v226_v32 = vrot.slane %v30_v15, 2  ;;  %v228_v33 = vrot.slane %v7253_v16, 2  ;;  %v6927_v21 = vld [vmem:[%s10765_s1 + $0x34] ss:$12 sps:$4 sm:$0xff]  }
   0x9   :  { %v5996_v34 = vpack.i.bf16 %v483_v31, %v481_v30  ;;  %v98_v35 = vsel %vm91_vm0, %v95_v5, %v97_v27  ;;  %v101_v36 = vsel %vm91_vm0, %v99_v28, %v100_v29  ;;  %v229_v37 = vrot.slane %v7258_v17, 2  ;;  %v6924_v5 = vld [vmem:[%s10765_s1 + $0x1c] ss:$12 sps:$4 sm:$0xff]  }
   0xa   :  { %v6001_v39 = vpack.i.bf16 %v101_v36, %v98_v35  ;;  %v227_v40 = vsel %vm220_vm2, %v224_v13, %v226_v32  ;;  %v355_v41 = vrot.slane %v30_v15, 3  ;;  %v357_v42 = vrot.slane %v7253_v16, 3  ;;  %973 = vmatprep.subr.bf16.mxu1 %v6924_v5  ;;  %v6929_v31 = vld [vmem:[%s10765_s1 + $0x30] ss:$12 sps:$4 sm:$0xff]   ;;  %v6930_v32 = vld [vmem:[%s10765_s1 + $0x4c] ss:$12 sps:$4 sm:$0xff]  }
   0xb   :  { %5987 = vrot.lane.b32.xlu0 %v5986_v26, %s7171_s19  ;;  %v230_v44 = vsel %vm220_vm2, %v228_v33, %v229_v37  ;;  %v358_v45 = vrot.slane %v7258_v17, 3  ;;  %v484_v46 = vrot.slane %v30_v15, 4  ;;  %v486_v47 = vrot.slane %v7253_v16, 4  ;;  %974 = vmatpush1.bf16.msra.mxu1 %v6926_v10  ;;  %v6936_v5 = vld [vmem:[%s10765_s1 + $0x7c] ss:$12 sps:$4 sm:$0xff]   ;;  %v7411_v10 = vld [vmem:[%s10764_s0 + $0x70] sm:$0xff] }
   0xc   :  { %5997 = vrot.lane.b32.xlu1 %v5996_v34, %s7172_s20  ;;  %v6006_v48 = vpack.i.bf16 %v230_v44, %v227_v40  ;;  %v356_v49 = vsel %vm349_vm1, %v353_v8, %v355_v41  ;;  %v487_v50 = vrot.slane %v7258_v17, 4  ;;  %v102_v51 = vrot.slane %v7279_v38, 1  ;;  %975 = vmatprep.subr.bf16.mxu1 %v6927_v21 }
   0xd   :  { %v359_v53 = vsel %vm349_vm1, %v357_v42, %v358_v45  ;;  %v485_v54 = vsel %vm478_vm3, %v482_v25, %v484_v46  ;;  %v104_v55 = vrot.slane %v34_v43, 1  ;;  %v231_v56 = vrot.slane %v7279_v38, 2  ;;  %v38_v42 = vld [vmem:[%s10764_s0 + $0x58] sm:$0xf]  ;;  %v7377_v46 = vld [vmem:[%s10764_s0 + $0x68] sm:$0xff] }
   0xe   :  { %v488_v58 = vsel %vm478_vm3, %v486_v47, %v487_v50  ;;  %v233_v59 = vrot.slane %v34_v43, 2  ;;  %v6011_v62 = vpack.i.bf16 %v359_v53, %v356_v49  ;;  %v103_v63 = vsel %vm91_vm0, %v100_v29, %v102_v51  ;;  %v6932_v47 = vld [vmem:[%s10765_s1 + $0x48] ss:$12 sps:$4 sm:$0xff]  }
   0xf   :  { %6002 = vrot.lane.b32.xlu0 %v6001_v39, %s7169_s13  ;;  %v360_v3 = vrot.slane %v7279_v38, 3  ;;  %v6016_v6 = vpack.i.bf16 %v488_v58, %v485_v54  ;;  %v105_v7 = vsel %vm91_vm0, %v102_v51, %v104_v55  ;;  %v232_v8 = vsel %vm220_vm2, %v229_v37, %v231_v56  ;;  %976 = vmatpush1.bf16.msra.mxu1 %v6929_v31 }
  0x10   :  { %6007 = vrot.lane.b32.xlu1 %v6006_v48, %s7171_s19  ;;  %v362_v9 = vrot.slane %v34_v43, 3  ;;  %v234_v11 = vsel %vm220_vm2, %v231_v56, %v233_v59  ;;  %v489_v12 = vrot.slane %v7279_v38, 4  ;;  %v491_v13 = vrot.slane %v34_v43, 4  ;;  %977 = vmatprep.subr.bf16.mxu1 %v6930_v32 }
  0x11   :  { %v106_v14 = vrot.slane %v7297_v52, 1  ;;  %v361_v15 = vsel %vm349_vm1, %v358_v45, %v360_v3  ;;  %v107_v19 = vrot.slane %v7305_v57, 1  ;;  %v109_v20 = vrot.slane %v7320_v4, 1  ;;  %v7372_v45 = vld [vmem:[%s10764_s0 + $0x60] sm:$0xff] }
  0x12   :  { %v363_v18 = vsel %vm349_vm1, %v360_v3, %v362_v9  ;;  %v6021_v22 = vpack.i.bf16 %v105_v7, %v103_v63  ;;  %v235_v23 = vrot.slane %v7297_v52, 2  ;;  %v236_v24 = vrot.slane %v7305_v57, 2  ;;  %v7398_v63 = vld [vmem:[%s10764_s0 + $0x78] sm:$0xf]  ;;  %v6935_v3 = vld [vmem:[%s10765_s1 + $0x60] ss:$12 sps:$4 sm:$0xff]  }
  0x13   :  { %6012 = vrot.lane.b32.xlu0 %v6011_v62, %s7170_s14  ;;  %v6026_v25 = vpack.i.bf16 %v234_v11, %v232_v8  ;;  %v238_v26 = vrot.slane %v7320_v4, 2  ;;  %v6031_v27 = vpack.i.bf16 %v363_v18, %v361_v15  ;;  %v490_v28 = vsel %vm478_vm3, %v487_v50, %v489_v12  ;;  %v6933_v50 = vld [vmem:[%s10765_s1 + $0x64] ss:$12 sps:$4 sm:$0xff]   ;;  %978 = vmatpush1.bf16.msra.mxu1 %v6932_v47  ;;  %v6939_v18 = vld [vmem:[%s10765_s1 + $0x94] ss:$12 sps:$4 sm:$0xff]  }
  0x14   :  { %6017 = vrot.lane.b32.xlu1 %v6016_v6, %s7172_s20  ;;  %v492_v29 = vsel %vm478_vm3, %v489_v12, %v491_v13  ;;  %v108_v30 = vsel %vm91_vm0, %v106_v14, %v107_v19  ;;  %v110_v33 = vsel %vm91_vm0, %v107_v19, %v109_v20  ;;  %v237_v34 = vsel %vm220_vm2, %v235_v23, %v236_v24  ;;  %v6938_v11 = vld [vmem:[%s10765_s1 + $0x78] ss:$12 sps:$4 sm:$0xff]   ;;  %v7463_v47 = vld [vmem:[%s10764_s0 + $0x90] sm:$0xff] }
  0x15   :  { %v364_v35 = vrot.slane %v7297_v52, 3  ;;  %v365_v36 = vrot.slane %v7305_v57, 3  ;;  %v239_v37 = vsel %vm220_vm2, %v236_v24, %v238_v26  ;;  %v367_v39 = vrot.slane %v7320_v4, 3  ;;  %979 = vmatprep.subr.bf16.mxu1 %v6933_v50 }
  0x16   :  { %v493_v40 = vrot.slane %v7297_v52, 4  ;;  %v494_v41 = vrot.slane %v7305_v57, 4  ;;  %v6036_v43 = vpack.i.bf16 %v492_v29, %v490_v28  ;;  %v496_v44 = vrot.slane %v7320_v4, 4 }
  0x17   :  { %6022 = vrot.lane.b32.xlu0 %v6021_v22, %s7169_s13  ;;  %v6041_v48 = vpack.i.bf16 %v110_v33, %v108_v30  ;;  %v6046_v49 = vpack.i.bf16 %v239_v37, %v237_v34  ;;  %v366_v51 = vsel %vm349_vm1, %v364_v35, %v365_v36  ;;  %v368_v53 = vsel %vm349_vm1, %v365_v36, %v367_v39 }
  0x18   :  { %6027 = vrot.lane.b32.xlu1 %v6026_v25, %s7171_s19  ;;  %v495_v54 = vsel %vm478_vm3, %v493_v40, %v494_v41  ;;  %v111_v55 = vrot.slane %v38_v42, 1  ;;  %v497_v56 = vsel %vm478_vm3, %v494_v41, %v496_v44  ;;  %v113_v58 = vrot.slane %v7372_v45, 1  ;;  %980 = vmatpush1.bf16.msra.mxu1 %v6935_v3  ;;  %v7451_v41 = vld [vmem:[%s10764_s0 + $0x80] sm:$0xff] }
  0x19   :  { %v114_v59 = vrot.slane %v7377_v46, 1  ;;  %v240_v60 = vrot.slane %v38_v42, 2  ;;  %v242_v61 = vrot.slane %v7372_v45, 2  ;;  %v243_v62 = vrot.slane %v7377_v46, 2  ;;  %981 = vmatprep.subr.bf16.mxu1 %v6936_v5 }
  0x1a   :  { %v6051_v6 = vpack.i.bf16 %v368_v53, %v366_v51  ;;  %v6056_v7 = vpack.i.bf16 %v497_v56, %v495_v54  ;;  %v112_v8 = vsel %vm91_vm0, %v109_v20, %v111_v55  ;;  %v369_v9 = vrot.slane %v38_v42, 3  ;;  %v6944_v53 = vld [vmem:[%s10765_s1 + $0xa8] ss:$12 sps:$4 sm:$0xff]  }
  0x1b   :  { %6032 = vrot.lane.b32.xlu0 %v6031_v27, %s7170_s14  ;;  %v115_v12 = vsel %vm91_vm0, %v113_v58, %v114_v59  ;;  %v241_v13 = vsel %vm220_vm2, %v238_v26, %v240_v60  ;;  %v371_v14 = vrot.slane %v7372_v45, 3  ;;  %v372_v15 = vrot.slane %v7377_v46, 3  ;;  %v6941_v26 = vld [vmem:[%s10765_s1 + $0x90] ss:$12 sps:$4 sm:$0xff]  }
  0x1c   :  { %6037 = vrot.lane.b32.xlu1 %v6036_v43, %s7172_s20  ;;  %v244_v19 = vsel %vm220_vm2, %v242_v61, %v243_v62  ;;  %v498_v20 = vrot.slane %v38_v42, 4  ;;  %v500_v21 = vrot.slane %v7372_v45, 4  ;;  %v501_v22 = vrot.slane %v7377_v46, 4  ;;  %982 = vmatpush1.bf16.msra.mxu1 %v6938_v11  ;;  %v7456_v42 = vld [vmem:[%s10764_s0 + $0x88] sm:$0xff] }
  0x1d   :  { %v116_v23 = vrot.slane %v7411_v10, 1  ;;  %v118_v24 = vrot.slane %v7398_v63, 1  ;;  %v6061_v25 = vpack.i.bf16 %v115_v12, %v112_v8  ;;  %v6066_v27 = vpack.i.bf16 %v244_v19, %v241_v13  ;;  %983 = vmatprep.subr.bf16.mxu1 %v6939_v18  ;;  %v46_v18 = vld [vmem:[%s10764_s0 + $0x98] sm:$0xf] }
  0x1e   :  { %v370_v28 = vsel %vm349_vm1, %v367_v39, %v369_v9  ;;  %v373_v29 = vsel %vm349_vm1, %v371_v14, %v372_v15  ;;  %v245_v30 = vrot.slane %v7411_v10, 2  ;;  %v499_v31 = vsel %vm478_vm3, %v496_v44, %v498_v20  ;;  %v6942_v39 = vld [vmem:[%s10765_s1 + $0xac] ss:$12 sps:$4 sm:$0xff]  }
  0x1f   :  { %6042 = vrot.lane.b32.xlu0 %v6041_v48, %s7169_s13  ;;  %v502_v32 = vsel %vm478_vm3, %v500_v21, %v501_v22  ;;  %v247_v33 = vrot.slane %v7398_v63, 2  ;;  %v117_v34 = vsel %vm91_vm0, %v114_v59, %v116_v23  ;;  %v119_v35 = vsel %vm91_vm0, %v116_v23, %v118_v24  ;;  %v6945_v59 = vld [vmem:[%s10765_s1 + $0xc4] ss:$12 sps:$4 sm:$0x3f]   ;;  %v7510_v24 = vld [vmem:[%s10764_s0 + $0xa8] sm:$0xff] }
  0x20   :  { %6047 = vrot.lane.b32.xlu1 %v6046_v49, %s7171_s19  ;;  %v374_v36 = vrot.slane %v7411_v10, 3  ;;  %v376_v37 = vrot.slane %v7398_v63, 3  ;;  %v6071_v40 = vpack.i.bf16 %v373_v29, %v370_v28  ;;  %v6076_v43 = vpack.i.bf16 %v502_v32, %v499_v31  ;;  %984 = vmatpush1.bf16.msra.mxu1 %v6941_v26  ;;  %v7505_v23 = vld [vmem:[%s10764_s0 + $0xa0] sm:$0xff] }
  0x21   :  { %v246_v44 = vsel %vm220_vm2, %v243_v62, %v245_v30  ;;  %v6081_v48 = vpack.i.bf16 %v119_v35, %v117_v34  ;;  %v248_v49 = vsel %vm220_vm2, %v245_v30, %v247_v33  ;;  %v503_v50 = vrot.slane %v7411_v10, 4  ;;  %985 = vmatprep.subr.bf16.mxu1 %v6942_v39 }
  0x22   :  { %v505_v51 = vrot.slane %v7398_v63, 4  ;;  %v375_v54 = vsel %vm349_vm1, %v372_v15, %v374_v36  ;;  %v377_v55 = vsel %vm349_vm1, %v374_v36, %v376_v37  ;;  %v120_v56 = vrot.slane %v7451_v41, 1 }
  0x23   :  { %6052 = vrot.lane.b32.xlu0 %v6051_v6, %s7170_s14  ;;  %v121_v58 = vrot.slane %v7456_v42, 1  ;;  %v123_v60 = vrot.slane %v7463_v47, 1  ;;  %v249_v61 = vrot.slane %v7451_v41, 2  ;;  %v250_v62 = vrot.slane %v7456_v42, 2 }
  0x24   :  { %6057 = vrot.lane.b32.xlu1 %v6056_v7, %s7172_s20  ;;  %v252_v63 = vrot.slane %v7463_v47, 2  ;;  %v6086_v3 = vpack.i.bf16 %v248_v49, %v246_v44  ;;  %v504_v5 = vsel %vm478_vm3, %v501_v22, %v503_v50  ;;  %v506_v6 = vsel %vm478_vm3, %v503_v50, %v505_v51  ;;  %986 = vmatpush1.bf16.msra.mxu1 %v6944_v53 }
  0x25   :  { %v6091_v7 = vpack.i.bf16 %v377_v55, %v375_v54  ;;  %v122_v8 = vsel %vm91_vm0, %v120_v56, %v121_v58  ;;  %v378_v9 = vrot.slane %v7451_v41, 3  ;;  %v379_v11 = vrot.slane %v7456_v42, 3  ;;  %5680 = vmatprep.subr.msk.bf16.mxu1 %vm220_vm2, %v6945_v59  ;;  %v7533_v54 = vld [vmem:[%s10764_s0 + $0xb0] sm:$0xff] }
  0x26   :  { %v124_v12 = vsel %vm91_vm0, %v121_v58, %v123_v60  ;;  %v251_v13 = vsel %vm220_vm2, %v249_v61, %v250_v62  ;;  %v253_v14 = vsel %vm220_vm2, %v250_v62, %v252_v63  ;;  %v381_v15 = vrot.slane %v7463_v47, 3  ;;  %v50_v58 = vld [vmem:[%s10764_s0 + $0xb8] sm:$0xf] }
  0x27   :  { %6062 = vrot.lane.b32.xlu0 %v6061_v25, %s7169_s13  ;;  %v6096_v19 = vpack.i.bf16 %v506_v6, %v504_v5  ;;  %v507_v20 = vrot.slane %v7451_v41, 4  ;;  %v508_v21 = vrot.slane %v7456_v42, 4  ;;  %v510_v22 = vrot.slane %v7463_v47, 4 }
  0x28   :  { %6067 = vrot.lane.b32.xlu1 %v6066_v27, %s7171_s19  ;;  %v6101_v25 = vpack.i.bf16 %v124_v12, %v122_v8  ;;  %v6106_v26 = vpack.i.bf16 %v253_v14, %v251_v13  ;;  %v380_v27 = vsel %vm349_vm1, %v378_v9, %v379_v11  ;;  %v125_v28 = vrot.slane %v46_v18, 1  ;;  %v7552_v12 = vld [vmem:[%s10764_s0 + $0xc0] sm:$0xff] }
  0x29   :  { %v382_v29 = vsel %vm349_vm1, %v379_v11, %v381_v15  ;;  %v127_v30 = vrot.slane %v7505_v23, 1  ;;  %v128_v31 = vrot.slane %v7510_v24, 1  ;;  %v254_v32 = vrot.slane %v46_v18, 2 }
  0x2a   :  { %v509_v33 = vsel %vm478_vm3, %v507_v20, %v508_v21  ;;  %v511_v34 = vsel %vm478_vm3, %v508_v21, %v510_v22  ;;  %v256_v35 = vrot.slane %v7505_v23, 2  ;;  %v257_v36 = vrot.slane %v7510_v24, 2 }
  0x2b   :  { %6072 = vrot.lane.b32.xlu0 %v6071_v40, %s7170_s14  ;;  %v6111_v37 = vpack.i.bf16 %v382_v29, %v380_v27  ;;  %v126_v39 = vsel %vm91_vm0, %v123_v60, %v125_v28  ;;  %v6116_v40 = vpack.i.bf16 %v511_v34, %v509_v33  ;;  %v255_v44 = vsel %vm220_vm2, %v252_v63, %v254_v32 }
  0x2c   :  { %6077 = vrot.lane.b32.xlu1 %v6076_v43, %s7172_s20  ;;  %v129_v43 = vsel %vm91_vm0, %v127_v30, %v128_v31  ;;  %v258_v49 = vsel %vm220_vm2, %v256_v35, %v257_v36  ;;  %v385_v50 = vrot.slane %v7505_v23, 3  ;;  %v386_v51 = vrot.slane %v7510_v24, 3  ;;  %v6947_v30 = vld [vmem:[%s10765_s1 + $0xc0] ss:$12 sps:$4 sm:$0x3f]  }
  0x2d   :  { %v512_v53 = vrot.slane %v46_v18, 4  ;;  %v514_v55 = vrot.slane %v7505_v23, 4  ;;  %v515_v56 = vrot.slane %v7510_v24, 4  ;;  %v6121_v59 = vpack.i.bf16 %v129_v43, %v126_v39 }
  0x2e   :  { %v6126_v60 = vpack.i.bf16 %v258_v49, %v255_v44  ;;  %v130_v62 = vrot.slane %v7533_v54, 1  ;;  %v387_v63 = vsel %vm349_vm1, %v385_v50, %v386_v51  ;;  %v132_v5 = vrot.slane %v50_v58, 1 }
  0x2f   :  { %6082 = vrot.lane.b32.xlu0 %v6081_v48, %s7169_s13  ;;  %v383_v48 = vrot.slane %v46_v18, 3  ;;  %v259_v6 = vrot.slane %v7533_v54, 2  ;;  %v261_v8 = vrot.slane %v50_v58, 2  ;;  %v388_v9 = vrot.slane %v7533_v54, 3  ;;  %v7559_v18 = vld [vmem:[%s10764_s0 + $0xc8] sm:$0xff] }
  0x30   :  { %6087 = vrot.lane.b32.xlu1 %v6086_v3, %s7171_s19  ;;  %v513_v3 = vsel %vm478_vm3, %v510_v22, %v512_v53  ;;  %v390_v11 = vrot.slane %v50_v58, 3  ;;  %v517_v14 = vrot.slane %v7533_v54, 4  ;;  %v131_v21 = vsel %vm91_vm0, %v128_v31, %v130_v62 }
  0x31   :  { %v384_v61 = vsel %vm349_vm1, %v381_v15, %v383_v48  ;;  %v519_v15 = vrot.slane %v50_v58, 4  ;;  %v133_v22 = vsel %vm91_vm0, %v130_v62, %v132_v5  ;;  %v389_v27 = vsel %vm349_vm1, %v386_v51, %v388_v9  ;;  %v54_v58 = vld [vmem:[%s10764_s0 + $0xd8] sm:$0xf] }
  0x32   :  { %v6131_v13 = vpack.i.bf16 %v387_v63, %v384_v61  ;;  %v391_v28 = vsel %vm349_vm1, %v388_v9, %v390_v11  ;;  %v134_v29 = vrot.slane %v7552_v12, 1  ;;  %v135_v32 = vrot.slane %v7559_v18, 1  ;;  %v7605_v63 = vld [vmem:[%s10764_s0 + $0xe0] sm:$0xff] }
  0x33   :  { %6092 = vrot.lane.b32.xlu0 %v6091_v7, %s7170_s14  ;;  %v516_v7 = vsel %vm478_vm3, %v514_v55, %v515_v56  ;;  %v263_v33 = vrot.slane %v7552_v12, 2  ;;  %v264_v34 = vrot.slane %v7559_v18, 2  ;;  %v6141_v35 = vpack.i.bf16 %v133_v22, %v131_v21 }
  0x34   :  { %6097 = vrot.lane.b32.xlu1 %v6096_v19, %s7172_s20  ;;  %v7564_v19 = vld [vmem:[%s10764_s0 + $0xd0] sm:$0xff]  ;;  %v6136_v20 = vpack.i.bf16 %v516_v7, %v513_v3  ;;  %v6151_v43 = vpack.i.bf16 %v391_v28, %v389_v27  ;;  %v963_v44 = vsel %vm220_vm2, %v6947_v30, 0  ;;  %v136_v49 = vsel %vm91_vm0, %v134_v29, %v135_v32  ;;  %v7610_v3 = vld [vmem:[%s10764_s0 + $0xe8] sm:$0xff] }
  0x35   :  { %v137_v31 = vrot.slane %v7564_v19, 1  ;;  %v266_v39 = vrot.slane %v7564_v19, 2  ;;  %v265_v51 = vsel %vm220_vm2, %v263_v33, %v264_v34  ;;  %988 = vmatpush1.bf16.msra.mxu1 %v963_v44  ;;  %v392_v55 = vrot.slane %v7552_v12, 3 }
  0x36   :  { %v522_v61 = vrot.slane %v7559_v18, 4  ;;  %v524_v62 = vrot.slane %v7564_v19, 4  ;;  %v7173_v5 = vmov 0   ;;  %v139_v9 = vrot.slane %v54_v58, 1 }
  0x37   :  { %6102 = vrot.lane.b32.xlu0 %v6101_v25, %s7169_s13  ;;  %v260_v25 = vsel %vm220_vm2, %v257_v36, %v259_v6  ;;  %v518_v36 = vsel %vm478_vm3, %v515_v56, %v517_v14  ;;  %v138_v50 = vsel %vm91_vm0, %v135_v32, %v137_v31  ;;  %v267_v53 = vsel %vm220_vm2, %v264_v34, %v266_v39 }
  0x38   :  { %6107 = vrot.lane.b32.xlu1 %v6106_v26, %s7171_s19  ;;  %v262_v26 = vsel %vm220_vm2, %v259_v6, %v261_v8  ;;  %v393_v56 = vrot.slane %v7559_v18, 3  ;;  %1124 = vmatprep.subr.bf16.mxu1 %v7173_v5  ;;  %v6161_v6 = vpack.i.bf16 %v138_v50, %v136_v49  ;;  %v6166_v7 = vpack.i.bf16 %v267_v53, %v265_v51 }
  0x39   :  { %v141_v11 = vrot.slane %v7605_v63, 1  ;;  %v268_v21 = vrot.slane %v54_v58, 2  ;;  %v270_v22 = vrot.slane %v7605_v63, 2  ;;  %v140_v28 = vsel %vm91_vm0, %v137_v31, %v139_v9 }
  0x3a   :  { %v394_v8 = vsel %vm349_vm1, %v392_v55, %v393_v56  ;;  %v397_v32 = vrot.slane %v54_v58, 3  ;;  %v399_v33 = vrot.slane %v7605_v63, 3  ;;  %v400_v34 = vrot.slane %v7610_v3, 3 }
  0x3b   :  { %6112 = vrot.lane.b32.xlu0 %v6111_v37, %s7170_s14  ;;  %v520_v37 = vsel %vm478_vm3, %v517_v14, %v519_v15  ;;  %v269_v30 = vsel %vm220_vm2, %v266_v39, %v268_v21  ;;  %v528_v31 = vrot.slane %v7605_v63, 4  ;;  %v58_v39 = vld [vmem:[%s10764_s0 + $0xf8] sm:$0xf]  ;;  %vm632_vm5 = vcmask 457728  }
  0x3c   :  { %6117 = vrot.lane.b32.xlu1 %v6116_v40, %s7172_s20  ;;  %v6146_v40 = vpack.i.bf16 %v262_v26, %v260_v25  ;;  %v6156_v48 = vpack.i.bf16 %v520_v37, %v518_v36  ;;  %v271_v25 = vrot.slane %v7610_v3, 2  ;;  %v526_v37 = vrot.slane %v54_v58, 4 }
  0x3d   :  { %v401_v50 = vsel %vm349_vm1, %v399_v33, %v400_v34  ;;  %v146_v51 = vrot.slane %v58_v39, 1  ;;  %v275_v58 = vrot.slane %v58_v39, 2  ;;  %vm657_vm6 = vcmask 687104  }
  0x3e   :  { %v272_v36 = vsel %vm220_vm2, %v270_v22, %v271_v25  ;;  %v527_v53 = vsel %vm478_vm3, %v524_v62, %v526_v37  ;;  %vm682_vm7 = vcmask 916480   ;;  %vm925_vm8 = vcmask 97280  }
  0x3f   :  { %6122 = vrot.lane.b32.xlu0 %v6121_v59, %s7169_s13  ;;  %v395_v59 = vrot.slane %v7564_v19, 3  ;;  %vm2165_vm9 = vcmask 1040384   ;;  %vm2190_vm10 = vcmask 1041408   ;;  %vm2215_vm11 = vcmask 1042432  }
  0x40   :  { %6127 = vrot.lane.b32.xlu1 %v6126_v60, %s7171_s19  ;;  %v521_v60 = vrot.slane %v7552_v12, 4  ;;  %vm3176_vm12 = vcmask 130048   ;;  %vm3193_vm13 = vcmask 261120   ;;  %vm3210_vm14 = vcmask 392192  }
  0x41   :  { %v396_v14 = vsel %vm349_vm1, %v393_v56, %v395_v59  ;;  %v398_v49 = vsel %vm349_vm1, %v395_v59, %v397_v32  ;;  %vm3227_vm15 = vcmask 523264  }
  0x42   :  { %v523_v15 = vsel %vm478_vm3, %v521_v60, %v522_v61  ;;  %v6171_v26 = vpack.i.bf16 %v396_v14, %v394_v8  ;;  %v6191_v60 = vpack.i.bf16 %v401_v50, %v398_v49  ;;  %v404_v8 = vrot.slane %v58_v39, 3 }
  0x43   :  { %6132 = vrot.lane.b32.xlu0 %v6131_v13, %s7170_s14  ;;  %v142_v13 = vrot.slane %v7610_v3, 1  ;;  %v533_v14 = vrot.slane %v58_v39, 4 }
  0x44   :  { %6137 = vrot.lane.b32.xlu1 %v6136_v20, %s7172_s20  ;;  %v525_v20 = vsel %vm478_vm3, %v522_v61, %v524_v62 }
  0x45   :  { %v6176_v27 = vpack.i.bf16 %v525_v20, %v523_v15  ;;  %v143_v29 = vsel %vm91_vm0, %v141_v11, %v142_v13 }
  0x47   :  { %6142 = vrot.lane.b32.xlu0 %v6141_v35, %s7169_s13  ;;  %v7633_v35 = vld [vmem:[%s10764_s0 + $0xf0] sm:$0xff]  ;;  %s7179_s0 = smov 48  }
  0x48   :  { %6147 = vrot.lane.b32.xlu1 %v6146_v40, %s7171_s19  ;;  %v529_v40 = vrot.slane %v7610_v3, 4  ;;  %v144_v44 = vrot.slane %v7633_v35, 1  ;;  %v273_v56 = vrot.slane %v7633_v35, 2  ;;  %v531_v11 = vrot.slane %v7633_v35, 4 }
  0x4a   :  { %v530_v55 = vsel %vm478_vm3, %v528_v31, %v529_v40  ;;  %v145_v61 = vsel %vm91_vm0, %v142_v13, %v144_v44  ;;  %v147_v59 = vsel %vm91_vm0, %v144_v44, %v146_v51  ;;  %v274_v62 = vsel %vm220_vm2, %v271_v25, %v273_v56 }
  0x4b   :  { %6152 = vrot.lane.b32.xlu0 %v6151_v43, %s7170_s14  ;;  %v6181_v43 = vpack.i.bf16 %v143_v29, %v140_v28  ;;  %v276_v9 = vsel %vm220_vm2, %v273_v56, %v275_v58  ;;  %v6201_v15 = vpack.i.bf16 %v147_v59, %v145_v61  ;;  %v532_v22 = vsel %vm478_vm3, %v529_v40, %v531_v11 }
  0x4c   :  { %6157 = vrot.lane.b32.xlu1 %v6156_v48, %s7172_s20  ;;  %v6186_v48 = vpack.i.bf16 %v272_v36, %v269_v30  ;;  %v6206_v13 = vpack.i.bf16 %v276_v9, %v274_v62 }
  0x4f   :  { %6162 = vrot.lane.b32.xlu0 %v6161_v6, %s7169_s13  ;;  %v6196_v6 = vpack.i.bf16 %v530_v55, %v527_v53 }
  0x50   :  { %6167 = vrot.lane.b32.xlu1 %v6166_v7, %s7171_s19  ;;  %v402_v7 = vrot.slane %v7633_v35, 3 }
  0x52   :  { %v403_v20 = vsel %vm349_vm1, %v400_v34, %v402_v7  ;;  %v405_v21 = vsel %vm349_vm1, %v402_v7, %v404_v8 }
  0x53   :  { %6172 = vrot.lane.b32.xlu0 %v6171_v26, %s7170_s14  ;;  %v534_v26 = vsel %vm478_vm3, %v531_v11, %v533_v14  ;;  %v6211_v25 = vpack.i.bf16 %v405_v21, %v403_v20 }
  0x54   :  { %6177 = vrot.lane.b32.xlu1 %v6176_v27, %s7172_s20  ;;  %v6216_v27 = vpack.i.bf16 %v534_v26, %v532_v22  ;;  %v6949_v22 = vld [vmem:[%s10765_s1 + $0x20] ss:$12 sps:$4 sm:$0xff]  }
  0x57   :  { %6182 = vrot.lane.b32.xlu0 %v6181_v43, %s7169_s13 }
  0x58   :  { %6187 = vrot.lane.b32.xlu1 %v6186_v48, %s7171_s19 }
  0x5b   :  { %6192 = vrot.lane.b32.xlu0 %v6191_v60, %s7170_s14 }
  0x5c   :  { %6197 = vrot.lane.b32.xlu1 %v6196_v6, %s7172_s20  ;;  %v6948_v6 = vld [vmem:[%s10765_s1 + $0x8] ss:$12 sps:$4 sm:$0xff]  }
  0x5f   :  { %6202 = vrot.lane.b32.xlu0 %v6201_v15, %s7169_s13 }
  0x60   :  { %6207 = vrot.lane.b32.xlu1 %v6206_v13, %s7171_s19 }
  0x63   :  { %6212 = vrot.lane.b32.xlu0 %v6211_v25, %s7170_s14 }
  0x64   :  { %6217 = vrot.lane.b32.xlu1 %v6216_v27, %s7172_s20 }
  0x79   :  { %v5983_v28 = vpop.permute.xlu0 %5982 }
  0x7a   :  { %v5993_v29 = vpop.permute.xlu1 %5992  ;;  %v5985_v30 = vunpack.i.h.bf16 %v5983_v28  ;;  %v5984_v32 = vunpack.i.l.bf16 %v5983_v28 }
  0x7b   :  { %v5995_v34 = vunpack.i.h.bf16 %v5993_v29  ;;  %v5994_v36 = vunpack.i.l.bf16 %v5993_v29 }
  0x7c   :  { %v609_v39 = vsel %vm607_vm4, %v7228_v1, %v5985_v30  ;;  %v608_v43 = vsel %vm607_vm4, %v7223_v0, %v5984_v32 }
  0x7d   :  { %v5988_v33 = vpop.permute.xlu0 %5987 }
  0x7e   :  { %v5990_v37 = vunpack.i.h.bf16 %v5988_v33  ;;  %v5989_v31 = vunpack.i.l.bf16 %v5988_v33  ;;  %v5998_v40 = vpop.permute.xlu1 %5997 }
  0x7f   :  { %v6000_v44 = vunpack.i.h.bf16 %v5998_v40  ;;  %v5999_v48 = vunpack.i.l.bf16 %v5998_v40 }
  0x80   :  { %v633_v49 = vsel %vm632_vm5, %v608_v43, %v5989_v31  ;;  %v634_v50 = vsel %vm632_vm5, %v609_v39, %v5990_v37  ;;  %v6950_v37 = vld [vmem:[%s10765_s1 + $0x38] ss:$12 sps:$4 sm:$0xff]  }
  0x81   :  { %v6003_v51 = vpop.permute.xlu0 %6002  ;;  %v7673_v53 = vpack.c.bf16 %v6000_v44, %v5999_v48  ;;  %v658_v55 = vsel %vm657_vm6, %v633_v49, %v5994_v36  ;;  %v659_v56 = vsel %vm657_vm6, %v634_v50, %v5995_v34 }
  0x82   :  { %v6005_v58 = vunpack.i.h.bf16 %v6003_v51  ;;  %v6004_v60 = vunpack.i.l.bf16 %v6003_v51  ;;  %v6008_v1 = vpop.permute.xlu1 %6007  ;;  %v683_v61 = vsel %vm682_vm7, %v658_v55, %v5999_v48  ;;  %v684_v0 = vsel %vm682_vm7, %v659_v56, %v6000_v44  ;;  %v6951_v56 = vld [vmem:[%s10765_s1 + $0x50] ss:$12 sps:$4 sm:$0xff]  }
  0x83   :  { %v6010_v59 = vunpack.i.h.bf16 %v6008_v1  ;;  %v6009_v7 = vunpack.i.l.bf16 %v6008_v1  ;;  %5681 = vmatprep.mubr.msk.bf16.mxu1 %vm925_vm8, %v7673_v53  ;;  %v7684_v8 = vpack.c.bf16 %v684_v0, %v683_v61 }
  0x84   :  { %v611_v62 = vsel %vm607_vm4, %v7253_v16, %v6005_v58  ;;  %v610_v9 = vsel %vm607_vm4, %v7233_v2, %v6004_v60 }
  0x85   :  { %v635_v11 = vsel %vm632_vm5, %v610_v9, %v6009_v7  ;;  %v636_v14 = vsel %vm632_vm5, %v611_v62, %v6010_v59  ;;  %v6013_v15 = vpop.permute.xlu0 %6012  ;;  %1004 = vmatmul.mubr.bf16.vlgmr.msra.gmra.mrb[0].mxu1 %v7684_v8 }
  0x86   :  { %v6015_v13 = vunpack.i.h.bf16 %v6013_v15  ;;  %v6014_v20 = vunpack.i.l.bf16 %v6013_v15  ;;  %v6018_v21 = vpop.permute.xlu1 %6017  ;;  %1125 = vmatpush1.bf16.msra.mxu1 %v6948_v6 }
  0x87   :  { %v6020_v26 = vunpack.i.h.bf16 %v6018_v21  ;;  %v6019_v16 = vunpack.i.l.bf16 %v6018_v21  ;;  %1126 = vmatprep.subr.bf16.mxu1 %v7173_v5 }
  0x88   :  { %v660_v2 = vsel %vm657_vm6, %v635_v11, %v6014_v20  ;;  %v661_v25 = vsel %vm657_vm6, %v636_v14, %v6015_v13  ;;  %v6952_v11 = vld [vmem:[%s10765_s1 + $0x68] ss:$12 sps:$4 sm:$0xff]  }
  0x89   :  { %v7699_v27 = vpack.c.bf16 %v6020_v26, %v6019_v16  ;;  %v6023_v28 = vpop.permute.xlu0 %6022  ;;  %v685_v29 = vsel %vm682_vm7, %v660_v2, %v6019_v16  ;;  %v686_v30 = vsel %vm682_vm7, %v661_v25, %v6020_v26 }
  0x8a   :  { %v6025_v32 = vunpack.i.h.bf16 %v6023_v28  ;;  %v6024_v33 = vunpack.i.l.bf16 %v6023_v28  ;;  %v6028_v34 = vpop.permute.xlu1 %6027  ;;  %v7703_v36 = vpack.c.bf16 %v686_v30, %v685_v29  ;;  %1127 = vmatpush1.bf16.msra.mxu1 %v6949_v22  ;;  %v6953_v28 = vld [vmem:[%s10765_s1 + $0x80] ss:$12 sps:$4 sm:$0xff]  }
  0x8b   :  { %v6030_v31 = vunpack.i.h.bf16 %v6028_v34  ;;  %v6029_v40 = vunpack.i.l.bf16 %v6028_v34  ;;  %5682 = vmatprep.mubr.msk.bf16.mxu1 %vm925_vm8, %v7699_v27  ;;  %1128 = vmatprep.subr.bf16.mxu1 %v7173_v5 }
  0x8c   :  { %v613_v39 = vsel %vm607_vm4, %v7279_v38, %v6025_v32  ;;  %v612_v43 = vsel %vm607_vm4, %v7258_v17, %v6024_v33 }
  0x8d   :  { %v637_v44 = vsel %vm632_vm5, %v612_v43, %v6029_v40  ;;  %v638_v48 = vsel %vm632_vm5, %v613_v39, %v6030_v31  ;;  %1014 = vmatmul.mubr.bf16.gmra.mrb[4].mxu1 %v7703_v36  ;;  %v6033_v49 = vpop.permute.xlu0 %6032 }
  0x8e   :  { %v6035_v50 = vunpack.i.h.bf16 %v6033_v49  ;;  %v6034_v51 = vunpack.i.l.bf16 %v6033_v49  ;;  %v6038_v55 = vpop.permute.xlu1 %6037  ;;  %1129 = vmatpush1.bf16.msra.mxu1 %v6950_v37 }
  0x8f   :  { %v6040_v58 = vunpack.i.h.bf16 %v6038_v55  ;;  %v6039_v38 = vunpack.i.l.bf16 %v6038_v55  ;;  %1130 = vmatprep.subr.bf16.mxu1 %v7173_v5 }
  0x90   :  { %v662_v17 = vsel %vm657_vm6, %v637_v44, %v6034_v51  ;;  %v663_v60 = vsel %vm657_vm6, %v638_v48, %v6035_v50  ;;  %v6954_v44 = vld [vmem:[%s10765_s1 + $0x98] ss:$12 sps:$4 sm:$0xff]  }
  0x91   :  { %v7724_v1 = vpack.c.bf16 %v6040_v58, %v6039_v38  ;;  %v6043_v61 = vpop.permute.xlu0 %6042  ;;  %v687_v0 = vsel %vm682_vm7, %v662_v17, %v6039_v38  ;;  %v688_v6 = vsel %vm682_vm7, %v663_v60, %v6040_v58 }
  0x92   :  { %v6045_v59 = vunpack.i.h.bf16 %v6043_v61  ;;  %v6044_v7 = vunpack.i.l.bf16 %v6043_v61  ;;  %v6048_v62 = vpop.permute.xlu1 %6047  ;;  %v7728_v9 = vpack.c.bf16 %v688_v6, %v687_v0  ;;  %1131 = vmatpush1.bf16.msra.mxu1 %v6951_v56  ;;  %v6955_v61 = vld [vmem:[%s10765_s1 + $0xb0] ss:$12 sps:$4 sm:$0xff]  }
  0x93   :  { %v6050_v14 = vunpack.i.h.bf16 %v6048_v62  ;;  %v6049_v15 = vunpack.i.l.bf16 %v6048_v62  ;;  %5683 = vmatprep.mubr.msk.bf16.mxu1 %vm925_vm8, %v7724_v1  ;;  %1132 = vmatprep.subr.bf16.mxu1 %v7173_v5 }
  0x94   :  { %v615_v13 = vsel %vm607_vm4, %v7305_v57, %v6045_v59  ;;  %v614_v20 = vsel %vm607_vm4, %v7297_v52, %v6044_v7 }
  0x95   :  { %v639_v21 = vsel %vm632_vm5, %v614_v20, %v6049_v15  ;;  %v640_v22 = vsel %vm632_vm5, %v615_v13, %v6050_v14  ;;  %1024 = vmatmul.mubr.bf16.gmra.mrb[8].mxu1 %v7728_v9  ;;  %v6053_v26 = vpop.permute.xlu0 %6052 }
  0x96   :  { %v6055_v16 = vunpack.i.h.bf16 %v6053_v26  ;;  %v6054_v2 = vunpack.i.l.bf16 %v6053_v26  ;;  %v6058_v25 = vpop.permute.xlu1 %6057  ;;  %1133 = vmatpush1.bf16.msra.mxu1 %v6952_v11 }
  0x97   :  { %v6060_v29 = vunpack.i.h.bf16 %v6058_v25  ;;  %v6059_v57 = vunpack.i.l.bf16 %v6058_v25  ;;  %1134 = vmatprep.subr.bf16.mxu1 %v7173_v5 }
  0x98   :  { %v664_v52 = vsel %vm657_vm6, %v639_v21, %v6054_v2  ;;  %v665_v30 = vsel %vm657_vm6, %v640_v22, %v6055_v16 }
  0x99   :  { %v7749_v32 = vpack.c.bf16 %v6060_v29, %v6059_v57  ;;  %v6063_v33 = vpop.permute.xlu0 %6062  ;;  %v689_v34 = vsel %vm682_vm7, %v664_v52, %v6059_v57  ;;  %v690_v37 = vsel %vm682_vm7, %v665_v30, %v6060_v29 }
  0x9a   :  { %v6065_v31 = vunpack.i.h.bf16 %v6063_v33  ;;  %v6064_v40 = vunpack.i.l.bf16 %v6063_v33  ;;  %v6068_v39 = vpop.permute.xlu1 %6067  ;;  %v7753_v43 = vpack.c.bf16 %v690_v37, %v689_v34  ;;  %1135 = vmatpush1.bf16.msra.mxu1 %v6953_v28 }
  0x9b   :  { %v6070_v48 = vunpack.i.h.bf16 %v6068_v39  ;;  %v6069_v49 = vunpack.i.l.bf16 %v6068_v39  ;;  %5684 = vmatprep.mubr.msk.bf16.mxu1 %vm925_vm8, %v7749_v32  ;;  %1136 = vmatprep.subr.bf16.mxu1 %v7173_v5 }
  0x9c   :  { %v617_v50 = vsel %vm607_vm4, %v7372_v45, %v6065_v31  ;;  %v616_v51 = vsel %vm607_vm4, %v7320_v4, %v6064_v40  ;;  %v6956_v4 = vld [vmem:[%s10765_s1 + $0xc8] ss:$12 sps:$4 sm:$0x3f]  }
  0x9d   :  { %v641_v55 = vsel %vm632_vm5, %v616_v51, %v6069_v49  ;;  %v642_v56 = vsel %vm632_vm5, %v617_v50, %v6070_v48  ;;  %1034 = vmatmul.mubr.bf16.gmra.mrb[12].mxu1 %v7753_v43  ;;  %v6073_v58 = vpop.permute.xlu0 %6072  ;;  %v969_v16 = vsel %vm220_vm2, %v6956_v4, 0 }
  0x9e   :  { %v6075_v38 = vunpack.i.h.bf16 %v6073_v58  ;;  %v6074_v17 = vunpack.i.l.bf16 %v6073_v58  ;;  %v6078_v60 = vpop.permute.xlu1 %6077  ;;  %1137 = vmatpush1.bf16.msra.mxu1 %v6954_v44 }
  0x9f   :  { %v6080_v0 = vunpack.i.h.bf16 %v6078_v60  ;;  %v6079_v45 = vunpack.i.l.bf16 %v6078_v60  ;;  %1138 = vmatprep.subr.bf16.mxu1 %v7173_v5 }
  0xa0   :  { %v666_v6 = vsel %vm657_vm6, %v641_v55, %v6074_v17  ;;  %v667_v59 = vsel %vm657_vm6, %v642_v56, %v6075_v38 }
  0xa1   :  { %v7777_v7 = vpack.c.bf16 %v6080_v0, %v6079_v45  ;;  %v6083_v62 = vpop.permute.xlu0 %6082  ;;  %v691_v11 = vsel %vm682_vm7, %v666_v6, %v6079_v45  ;;  %v692_v14 = vsel %vm682_vm7, %v667_v59, %v6080_v0 }
  0xa2   :  { %v6085_v15 = vunpack.i.h.bf16 %v6083_v62  ;;  %v6084_v13 = vunpack.i.l.bf16 %v6083_v62  ;;  %v6088_v20 = vpop.permute.xlu1 %6087  ;;  %v7781_v21 = vpack.c.bf16 %v692_v14, %v691_v11  ;;  %1139 = vmatpush1.bf16.msra.mxu1 %v6955_v61 }
  0xa3   :  { %v6090_v22 = vunpack.i.h.bf16 %v6088_v20  ;;  %v6089_v26 = vunpack.i.l.bf16 %v6088_v20  ;;  %5685 = vmatprep.mubr.msk.bf16.mxu1 %vm925_vm8, %v7777_v7  ;;  %1140 = vmatprep.subr.bf16.mxu1 %v7173_v5 }
  0xa4   :  { %v619_v2 = vsel %vm607_vm4, %v7411_v10, %v6085_v15  ;;  %v618_v25 = vsel %vm607_vm4, %v7377_v46, %v6084_v13 }
  0xa5   :  { %v643_v28 = vsel %vm632_vm5, %v618_v25, %v6089_v26  ;;  %v644_v29 = vsel %vm632_vm5, %v619_v2, %v6090_v22  ;;  %1044 = vmatmul.mubr.bf16.gmra.mrb[16].mxu1 %v7781_v21  ;;  %v6093_v57 = vpop.permute.xlu0 %6092 }
  0xa6   :  { %v6095_v52 = vunpack.i.h.bf16 %v6093_v57  ;;  %v6094_v30 = vunpack.i.l.bf16 %v6093_v57  ;;  %v6098_v33 = vpop.permute.xlu1 %6097  ;;  %1141 = vmatpush1.bf16.msra.mxu1 %v969_v16 }
  0xa7   :  { %v6100_v5 = vunpack.i.h.bf16 %v6098_v33  ;;  %v6099_v34 = vunpack.i.l.bf16 %v6098_v33 }
  0xa8   :  { %v668_v37 = vsel %vm657_vm6, %v643_v28, %v6094_v30  ;;  %v669_v10 = vsel %vm657_vm6, %v644_v29, %v6095_v52 }
  0xa9   :  { %v7796_v31 = vpack.c.bf16 %v6100_v5, %v6099_v34  ;;  %v6103_v46 = vpop.permute.xlu0 %6102  ;;  %v693_v40 = vsel %vm682_vm7, %v668_v37, %v6099_v34  ;;  %v694_v39 = vsel %vm682_vm7, %v669_v10, %v6100_v5 }
  0xaa   :  { %v6105_v44 = vunpack.i.h.bf16 %v6103_v46  ;;  %v6104_v48 = vunpack.i.l.bf16 %v6103_v46  ;;  %v6108_v49 = vpop.permute.xlu1 %6107  ;;  %v7800_v50 = vpack.c.bf16 %v694_v39, %v693_v40 }
  0xab   :  { %v6110_v51 = vunpack.i.h.bf16 %v6108_v49  ;;  %v6109_v55 = vunpack.i.l.bf16 %v6108_v49  ;;  %5686 = vmatprep.mubr.msk.bf16.mxu1 %vm925_vm8, %v7796_v31 }
  0xac   :  { %v621_v56 = vsel %vm607_vm4, %v7456_v42, %v6105_v44  ;;  %v620_v58 = vsel %vm607_vm4, %v7451_v41, %v6104_v48 }
  0xad   :  { %v645_v38 = vsel %vm632_vm5, %v620_v58, %v6109_v55  ;;  %v646_v17 = vsel %vm632_vm5, %v621_v56, %v6110_v51  ;;  %1054 = vmatmul.mubr.bf16.gmra.mrb[20].mxu1 %v7800_v50  ;;  %v6113_v60 = vpop.permute.xlu0 %6112 }
  0xae   :  { %v6115_v61 = vunpack.i.h.bf16 %v6113_v60  ;;  %v6114_v0 = vunpack.i.l.bf16 %v6113_v60  ;;  %v6118_v45 = vpop.permute.xlu1 %6117 }
  0xaf   :  { %v6120_v4 = vunpack.i.h.bf16 %v6118_v45  ;;  %v6119_v6 = vunpack.i.l.bf16 %v6118_v45 }
  0xb0   :  { %v670_v59 = vsel %vm657_vm6, %v645_v38, %v6114_v0  ;;  %v671_v62 = vsel %vm657_vm6, %v646_v17, %v6115_v61 }
  0xb1   :  { %v7813_v42 = vpack.c.bf16 %v6120_v4, %v6119_v6  ;;  %v6123_v11 = vpop.permute.xlu0 %6122  ;;  %v695_v41 = vsel %vm682_vm7, %v670_v59, %v6119_v6  ;;  %v696_v14 = vsel %vm682_vm7, %v671_v62, %v6120_v4 }
  0xb2   :  { %v6125_v15 = vunpack.i.h.bf16 %v6123_v11  ;;  %v6124_v13 = vunpack.i.l.bf16 %v6123_v11  ;;  %v6128_v20 = vpop.permute.xlu1 %6127  ;;  %v7817_v22 = vpack.c.bf16 %v696_v14, %v695_v41 }
  0xb3   :  { %v6130_v26 = vunpack.i.h.bf16 %v6128_v20  ;;  %v6129_v16 = vunpack.i.l.bf16 %v6128_v20  ;;  %5687 = vmatprep.mubr.msk.bf16.mxu1 %vm925_vm8, %v7813_v42 }
  0xb4   :  { %v623_v2 = vsel %vm607_vm4, %v7505_v23, %v6125_v15  ;;  %v622_v25 = vsel %vm607_vm4, %v7463_v47, %v6124_v13 }
  0xb5   :  { %v647_v28 = vsel %vm632_vm5, %v622_v25, %v6129_v16  ;;  %v648_v29 = vsel %vm632_vm5, %v623_v2, %v6130_v26  ;;  %1064 = vmatmul.mubr.bf16.gmra.mrb[24].mxu1 %v7817_v22  ;;  %v6133_v57 = vpop.permute.xlu0 %6132 }
  0xb6   :  { %v6135_v52 = vunpack.i.h.bf16 %v6133_v57  ;;  %v6134_v30 = vunpack.i.l.bf16 %v6133_v57  ;;  %v6138_v33 = vpop.permute.xlu1 %6137 }
  0xb7   :  { %v6140_v5 = vunpack.i.h.bf16 %v6138_v33  ;;  %v6139_v34 = vunpack.i.l.bf16 %v6138_v33 }
  0xb8   :  { %v672_v37 = vsel %vm657_vm6, %v647_v28, %v6134_v30  ;;  %v673_v10 = vsel %vm657_vm6, %v648_v29, %v6135_v52 }
  0xb9   :  { %v7830_v23 = vpack.c.bf16 %v6140_v5, %v6139_v34  ;;  %v6143_v46 = vpop.permute.xlu0 %6142  ;;  %v697_v47 = vsel %vm682_vm7, %v672_v37, %v6139_v34  ;;  %v698_v40 = vsel %vm682_vm7, %v673_v10, %v6140_v5 }
  0xba   :  { %v6145_v39 = vunpack.i.h.bf16 %v6143_v46  ;;  %v6144_v44 = vunpack.i.l.bf16 %v6143_v46  ;;  %v6148_v48 = vpop.permute.xlu1 %6147  ;;  %v7834_v49 = vpack.c.bf16 %v698_v40, %v697_v47 }
  0xbb   :  { %v6150_v51 = vunpack.i.h.bf16 %v6148_v48  ;;  %v6149_v55 = vunpack.i.l.bf16 %v6148_v48  ;;  %5688 = vmatprep.mubr.msk.bf16.mxu1 %vm925_vm8, %v7830_v23 }
  0xbc   :  { %v625_v56 = vsel %vm607_vm4, %v7533_v54, %v6145_v39  ;;  %v624_v58 = vsel %vm607_vm4, %v7510_v24, %v6144_v44 }
  0xbd   :  { %v649_v38 = vsel %vm632_vm5, %v624_v58, %v6149_v55  ;;  %v650_v17 = vsel %vm632_vm5, %v625_v56, %v6150_v51  ;;  %1074 = vmatmul.mubr.bf16.gmra.mrb[28].mxu1 %v7834_v49  ;;  %v6153_v60 = vpop.permute.xlu0 %6152 }
  0xbe   :  { %v6155_v61 = vunpack.i.h.bf16 %v6153_v60  ;;  %v6154_v0 = vunpack.i.l.bf16 %v6153_v60  ;;  %v6158_v45 = vpop.permute.xlu1 %6157 }
  0xbf   :  { %v6160_v4 = vunpack.i.h.bf16 %v6158_v45  ;;  %v6159_v6 = vunpack.i.l.bf16 %v6158_v45 }
  0xc0   :  { %v674_v59 = vsel %vm657_vm6, %v649_v38, %v6154_v0  ;;  %v675_v62 = vsel %vm657_vm6, %v650_v17, %v6155_v61 }
  0xc1   :  { %v7847_v54 = vpack.c.bf16 %v6160_v4, %v6159_v6  ;;  %v6163_v11 = vpop.permute.xlu0 %6162  ;;  %v699_v24 = vsel %vm682_vm7, %v674_v59, %v6159_v6  ;;  %v700_v41 = vsel %vm682_vm7, %v675_v62, %v6160_v4 }
  0xc2   :  { %v6165_v14 = vunpack.i.h.bf16 %v6163_v11  ;;  %v6164_v15 = vunpack.i.l.bf16 %v6163_v11  ;;  %v6168_v13 = vpop.permute.xlu1 %6167  ;;  %v7851_v20 = vpack.c.bf16 %v700_v41, %v699_v24 }
  0xc3   :  { %v6170_v26 = vunpack.i.h.bf16 %v6168_v13  ;;  %v6169_v16 = vunpack.i.l.bf16 %v6168_v13  ;;  %5689 = vmatprep.mubr.msk.bf16.mxu1 %vm925_vm8, %v7847_v54 }
  0xc4   :  { %v627_v2 = vsel %vm607_vm4, %v7559_v18, %v6165_v14  ;;  %v626_v25 = vsel %vm607_vm4, %v7552_v12, %v6164_v15 }
  0xc5   :  { %v651_v28 = vsel %vm632_vm5, %v626_v25, %v6169_v16  ;;  %v652_v29 = vsel %vm632_vm5, %v627_v2, %v6170_v26  ;;  %1084 = vmatmul.mubr.bf16.gmra.mrb[32].mxu1 %v7851_v20  ;;  %v6173_v57 = vpop.permute.xlu0 %6172 }
  0xc6   :  { %v6175_v52 = vunpack.i.h.bf16 %v6173_v57  ;;  %v6174_v30 = vunpack.i.l.bf16 %v6173_v57  ;;  %v6178_v33 = vpop.permute.xlu1 %6177 }
  0xc7   :  { %v6180_v5 = vunpack.i.h.bf16 %v6178_v33  ;;  %v6179_v34 = vunpack.i.l.bf16 %v6178_v33 }
  0xc8   :  { %v676_v37 = vsel %vm657_vm6, %v651_v28, %v6174_v30  ;;  %v677_v10 = vsel %vm657_vm6, %v652_v29, %v6175_v52 }
  0xc9   :  { %v7864_v18 = vpack.c.bf16 %v6180_v5, %v6179_v34  ;;  %v6183_v46 = vpop.permute.xlu0 %6182  ;;  %v701_v12 = vsel %vm682_vm7, %v676_v37, %v6179_v34  ;;  %v702_v47 = vsel %vm682_vm7, %v677_v10, %v6180_v5 }
  0xca   :  { %v6185_v40 = vunpack.i.h.bf16 %v6183_v46  ;;  %v6184_v39 = vunpack.i.l.bf16 %v6183_v46  ;;  %v6188_v44 = vpop.permute.xlu1 %6187  ;;  %v7868_v48 = vpack.c.bf16 %v702_v47, %v701_v12 }
  0xcb   :  { %v6190_v51 = vunpack.i.h.bf16 %v6188_v44  ;;  %v6189_v55 = vunpack.i.l.bf16 %v6188_v44  ;;  %5690 = vmatprep.mubr.msk.bf16.mxu1 %vm925_vm8, %v7864_v18 }
  0xcc   :  { %v629_v56 = vsel %vm607_vm4, %v7605_v63, %v6185_v40  ;;  %v628_v58 = vsel %vm607_vm4, %v7564_v19, %v6184_v39 }
  0xcd   :  { %v653_v38 = vsel %vm632_vm5, %v628_v58, %v6189_v55  ;;  %v654_v17 = vsel %vm632_vm5, %v629_v56, %v6190_v51  ;;  %1094 = vmatmul.mubr.bf16.gmra.mrb[36].mxu1 %v7868_v48  ;;  %v6193_v60 = vpop.permute.xlu0 %6192 }
  0xce   :  { %v6195_v61 = vunpack.i.h.bf16 %v6193_v60  ;;  %v6194_v0 = vunpack.i.l.bf16 %v6193_v60  ;;  %v6198_v45 = vpop.permute.xlu1 %6197 }
  0xcf   :  { %v6200_v4 = vunpack.i.h.bf16 %v6198_v45  ;;  %v6199_v6 = vunpack.i.l.bf16 %v6198_v45 }
  0xd0   :  { %v678_v59 = vsel %vm657_vm6, %v653_v38, %v6194_v0  ;;  %v679_v62 = vsel %vm657_vm6, %v654_v17, %v6195_v61 }
  0xd1   :  { %v728_v63 = vpack.c.bf16 %v6200_v4, %v6199_v6  ;;  %v6203_v11 = vpop.permute.xlu0 %6202  ;;  %v703_v19 = vsel %vm682_vm7, %v678_v59, %v6199_v6  ;;  %v704_v24 = vsel %vm682_vm7, %v679_v62, %v6200_v4 }
  0xd2   :  { %v6205_v41 = vunpack.i.h.bf16 %v6203_v11  ;;  %v6204_v14 = vunpack.i.l.bf16 %v6203_v11  ;;  %v6208_v15 = vpop.permute.xlu1 %6207  ;;  %v727_v13 = vpack.c.bf16 %v704_v24, %v703_v19 }
  0xd3   :  { %v6210_v26 = vunpack.i.h.bf16 %v6208_v15  ;;  %v6209_v16 = vunpack.i.l.bf16 %v6208_v15  ;;  %5691 = vmatprep.mubr.msk.bf16.mxu1 %vm925_vm8, %v728_v63 }
  0xd4   :  { %v631_v2 = vsel %vm607_vm4, %v7633_v35, %v6205_v41  ;;  %v630_v25 = vsel %vm607_vm4, %v7610_v3, %v6204_v14  ;;  %vm3244_vm4 = vcmask 654336  }
  0xd5   :  { %v655_v28 = vsel %vm632_vm5, %v630_v25, %v6209_v16  ;;  %v656_v29 = vsel %vm632_vm5, %v631_v2, %v6210_v26  ;;  %1104 = vmatmul.mubr.bf16.gmra.mrb[40].mxu1 %v727_v13  ;;  %v6213_v57 = vpop.permute.xlu0 %6212  ;;  %vm3261_vm5 = vcmask 785408  }
  0xd6   :  { %v6215_v52 = vunpack.i.h.bf16 %v6213_v57  ;;  %v6214_v30 = vunpack.i.l.bf16 %v6213_v57  ;;  %v6218_v33 = vpop.permute.xlu1 %6217 }
  0xd7   :  { %v6220_v5 = vunpack.i.h.bf16 %v6218_v33  ;;  %v6219_v34 = vunpack.i.l.bf16 %v6218_v33 }
  0xd8   :  { %v680_v37 = vsel %vm657_vm6, %v655_v28, %v6214_v30  ;;  %v681_v10 = vsel %vm657_vm6, %v656_v29, %v6215_v52  ;;  %vm5247_vm6 = vcmask 1045509  }
  0xd9   :  { %v730_v46 = vpack.c.bf16 %v6220_v5, %v6219_v34  ;;  %v705_v35 = vsel %vm682_vm7, %v680_v37, %v6219_v34  ;;  %v706_v3 = vsel %vm682_vm7, %v681_v10, %v6220_v5 }
  0xda   :  { %v729_v12 = vpack.c.bf16 %v706_v3, %v705_v35 }
  0xdb   :  { %5692 = vmatprep.mubr.msk.bf16.mxu1 %vm925_vm8, %v730_v46 }
  0xdd   :  { %1114 = vmatmul.mubr.bf16.gmra.mrb[44].mxu1 %v729_v12 }
  0xde   :  { %5693 = vmatprep.mubr.msk.bf16.mxu1 %vm925_vm8, %v7673_v53  ;;  %v769_v53 = vlaneseq }
  0xe5   :  { %1157 = vmatmul.mubr.bf16.vlgmr.msra.gmra.mrb[48].mxu1 %v7684_v8  ;;  %v7927_v8 = vshrl.u32 %v769_v53, 7 }
  0xe6   :  { %5694 = vmatprep.mubr.msk.bf16.mxu1 %vm925_vm8, %v7699_v27 }
  0xe7   :  { %10802 = vst [vmem:[#allocation2_spill] sm:$0xff] %v7927_v8  ;;  %v10773_v27 = vsub.s32 0, %v7927_v8  ;;  %v779_v59 = vsub.s32 2, %v7927_v8 }
  0xed   :  { %1165 = vmatmul.mubr.bf16.gmra.mrb[52].mxu1 %v7703_v36  ;;  %v7933_v36 = vld [vmem:[%s10766_s2] sm:$0x7]  ;;  %s7174_s2 = smov 32  }
  0xee   :  { %5695 = vmatprep.mubr.msk.bf16.mxu1 %vm925_vm8, %v7724_v1  ;;  %v10772_v1 = vsub.s32 1, %v7927_v8 }
  0xf5   :  { %1173 = vmatmul.mubr.bf16.gmra.mrb[56].mxu1 %v7728_v9  ;;  %v7939_v9 = vrot.slane %v7933_v36, %v10773_v27 }
  0xf6   :  { %5696 = vmatprep.mubr.msk.bf16.mxu1 %vm925_vm8, %v7749_v32  ;;  %v7944_v32 = vrot.slane %v7933_v36, %v10772_v1 }
  0xfd   :  { %1181 = vmatmul.mubr.bf16.gmra.mrb[60].mxu1 %v7753_v43 }
  0xfe   :  { %5697 = vmatprep.mubr.msk.bf16.mxu1 %vm925_vm8, %v7777_v7 }
 0x105   :  { %1189 = vmatmul.mubr.bf16.gmra.mrb[64].mxu1 %v7781_v21 }
 0x106   :  { %5698 = vmatprep.mubr.msk.bf16.mxu1 %vm925_vm8, %v7796_v31 }
 0x10d   :  { %1197 = vmatmul.mubr.bf16.gmra.mrb[68].mxu1 %v7800_v50 }
 0x10e   :  { %5699 = vmatprep.mubr.msk.bf16.mxu1 %vm925_vm8, %v7813_v42 }
 0x115   :  { %1205 = vmatmul.mubr.bf16.gmra.mrb[72].mxu1 %v7817_v22 }
 0x116   :  { %5700 = vmatprep.mubr.msk.bf16.mxu1 %vm925_vm8, %v7830_v23 }
 0x11d   :  { %1213 = vmatmul.mubr.bf16.gmra.mrb[76].mxu1 %v7834_v49 }
 0x11e   :  { %5701 = vmatprep.mubr.msk.bf16.mxu1 %vm925_vm8, %v7847_v54 }
 0x125   :  { %1221 = vmatmul.mubr.bf16.gmra.mrb[80].mxu1 %v7851_v20 }
 0x126   :  { %5702 = vmatprep.mubr.msk.bf16.mxu1 %vm925_vm8, %v7864_v18 }
 0x12d   :  { %1229 = vmatmul.mubr.bf16.gmra.mrb[84].mxu1 %v7868_v48 }
 0x12e   :  { %5703 = vmatprep.mubr.msk.bf16.mxu1 %vm925_vm8, %v728_v63 }
 0x135   :  { %1237 = vmatmul.mubr.bf16.gmra.mrb[88].mxu1 %v727_v13 }
 0x136   :  { %5704 = vmatprep.mubr.msk.bf16.mxu1 %vm925_vm8, %v730_v46  ;;  %vm5253_vm8 = vcmask 1047559  }
 0x13d   :  { %1245 = vmatmul.mubr.bf16.gmra.mrb[92].mxu1 %v729_v12 }
 0x158   :  { %v1005_v43 = vpop.f32.mrb[0].mxu1 }
 0x159   :  { %v1006_v7 = vadd.f32 %v1005_v43, %v7939_v9  ;;  %v1007_v21 = vpop.f32.mrb[1].mxu1 }
 0x15a   :  { %v1008_v31 = vadd.f32 %v1007_v21, %v7944_v32  ;;  %v1009_v50 = vpop.f32.mrb[2].mxu1 }
 0x15b   :  { %v1253_v42 = vmax.f32 %v1006_v7, 0.0  ;;  %v1010_v22 = vadd.f32 %v1009_v50, %v7939_v9  ;;  %v1011_v23 = vpop.f32.mrb[3].mxu1 }
 0x15c   :  { %v1254_v49 = vmax.f32 %v1008_v31, 0.0  ;;  %v1012_v54 = vadd.f32 %v1011_v23, %v7944_v32  ;;  %v7975_v31 = vrot.slane %v7933_v36, %v779_v59 }
 0x15d   :  { %v1349_v20 = vrot.slane %v1253_v42, 1  ;;  %v1256_v18 = vmax.f32 %v1010_v22, 0.0 }
 0x15e   :  { %v1350_v47 = vrot.slane %v1254_v49, 1  ;;  %v1257_v44 = vmax.f32 %v1012_v54, 0.0 }
 0x15f   :  { %v1397_v40 = vmax.f32 %v1253_v42, %v1349_v20  ;;  %v1445_v39 = vrot.slane %v1256_v18, 1 }
 0x160   :  { %v1015_v48 = vpop.f32.mrb[4].mxu1  ;;  %v7950_v56 = vmax.f32 %v1254_v49, %v1350_v47  ;;  %v1446_v6 = vrot.slane %v1257_v44, 1 }
 0x161   :  { %v1637_v51 = vrot.slane %v1397_v40, 1  ;;  %v1685_v55 = vrot.slane %v1397_v40, 2  ;;  %v1493_v58 = vmax.f32 %v1256_v18, %v1445_v39  ;;  %v1017_v38 = vpop.f32.mrb[5].mxu1  ;;  %v1733_v45 = vrot.slane %v1397_v40, 3 }
 0x162   :  { %v1019_v17 = vpop.f32.mrb[6].mxu1  ;;  %v1638_v62 = vrot.slane %v7950_v56, 1  ;;  %v1686_v63 = vrot.slane %v7950_v56, 2  ;;  %v1016_v11 = vadd.f32 %v1015_v48, %v7939_v9  ;;  %v1018_v19 = vadd.f32 %v1017_v38, %v7944_v32 }
 0x163   :  { %v2166_v60 = vsel %vm2165_vm9, %v1397_v40, %v1637_v51  ;;  %v1805_v61 = vrot.slane %v1493_v58, 4  ;;  %v1021_v0 = vpop.f32.mrb[7].mxu1  ;;  %v1853_v24 = vrot.slane %v1493_v58, 5  ;;  %v1020_v41 = vadd.f32 %v1019_v17, %v7939_v9 }
 0x164   :  { %v2191_v4 = vsel %vm2190_vm10, %v2166_v60, %v1685_v55  ;;  %v1022_v14 = vadd.f32 %v1021_v0, %v7944_v32  ;;  %v1901_v13 = vrot.slane %v1493_v58, 6  ;;  %v1259_v26 = vmax.f32 %v1016_v11, 0.0 }
 0x165   :  { %v2216_v15 = vsel %vm2215_vm11, %v2191_v4, %v1733_v45  ;;  %v1260_v16 = vmax.f32 %v1018_v19, 0.0  ;;  %v1262_v25 = vmax.f32 %v1020_v41, 0.0  ;;  %v1949_v57 = vrot.slane %v1493_v58, 7 }
 0x166   :  { %v2240_v2 = vsel %vm478_vm3, %v2216_v15, %v1805_v61  ;;  %v1263_v28 = vmax.f32 %v1022_v14, 0.0  ;;  %v7964_v30 = vmax.f32 %v1257_v44, %v1446_v6  ;;  %v1541_v33 = vrot.slane %v1259_v26, 1 }
 0x167   :  { %v2264_v52 = vsel %vm349_vm1, %v2240_v2, %v1853_v24  ;;  %v1352_v10 = vrot.slane %v1262_v25, 1  ;;  %v2167_v53 = vsel %vm2165_vm9, %v7950_v56, %v1638_v62  ;;  %v1542_v43 = vrot.slane %v1260_v16, 1 }
 0x168   :  { %v1025_v29 = vpop.f32.mrb[8].mxu1  ;;  %v2288_v37 = vsel %vm220_vm2, %v2264_v52, %v1901_v13  ;;  %v1353_v46 = vrot.slane %v1263_v28, 1  ;;  %v1734_v49 = vrot.slane %v7950_v56, 3  ;;  %v1806_v54 = vrot.slane %v7964_v30, 4 }
 0x169   :  { %v1026_v5 = vadd.f32 %v1025_v29, %v7939_v9  ;;  %v1027_v34 = vpop.f32.mrb[9].mxu1  ;;  %v7970_v12 = vsel %vm91_vm0, %v2288_v37, %v1949_v57  ;;  %v7977_v50 = vmax.f32 %v1262_v25, %v1352_v10  ;;  %v1854_v20 = vrot.slane %v7964_v30, 5 }
 0x16a   :  { %v1028_v35 = vadd.f32 %v1027_v34, %v7944_v32  ;;  %v1029_v3 = vpop.f32.mrb[10].mxu1  ;;  %v7979_v42 = vmax.f32 %v1263_v28, %v1353_v46  ;;  %v1589_v18 = vmax.f32 %v1259_v26, %v1541_v33  ;;  %v2192_v47 = vsel %vm2190_vm10, %v2167_v53, %v1686_v63 }
 0x16b   :  { %v1265_v7 = vmax.f32 %v1026_v5, 0.0  ;;  %v1031_v21 = vpop.f32.mrb[11].mxu1  ;;  %v1030_v23 = vadd.f32 %v1029_v3, %v7939_v9  ;;  %v1640_v40 = vrot.slane %v7977_v50, 1  ;;  %v1902_v44 = vrot.slane %v7964_v30, 6 }
 0x16c   :  { %v1266_v22 = vmax.f32 %v1028_v35, 0.0  ;;  %v1641_v36 = vrot.slane %v7979_v42, 1  ;;  %v1032_v39 = vadd.f32 %v1031_v21, %v7944_v32  ;;  %v7990_v48 = vmax.f32 %v1260_v16, %v1542_v43 }
 0x16d   :  { %v1448_v51 = vrot.slane %v1265_v7, 1  ;;  %v1950_v55 = vrot.slane %v7964_v30, 7  ;;  %v1688_v56 = vrot.slane %v7977_v50, 2  ;;  %v1689_v58 = vrot.slane %v7979_v42, 2 }
 0x16e   :  { %v1449_v38 = vrot.slane %v1266_v22, 1  ;;  %v1268_v17 = vmax.f32 %v1030_v23, 0.0  ;;  %v2021_v61 = vrot.slane %v1589_v18, 1  ;;  %v2169_v0 = vsel %vm2165_vm9, %v7977_v50, %v1640_v40 }
 0x16f   :  { %v2170_v45 = vsel %vm2165_vm9, %v7979_v42, %v1641_v36  ;;  %v2217_v6 = vsel %vm2215_vm11, %v2192_v47, %v1734_v49  ;;  %v2069_v59 = vrot.slane %v1589_v18, 2  ;;  %v8000_v62 = vmax.f32 %v1265_v7, %v1448_v51 }
 0x170   :  { %v1035_v60 = vpop.f32.mrb[12].mxu1  ;;  %v1269_v63 = vmax.f32 %v1032_v39, 0.0  ;;  %v2022_v24 = vrot.slane %v7990_v48, 1  ;;  %v2070_v41 = vrot.slane %v7990_v48, 2  ;;  %v1736_v14 = vrot.slane %v7977_v50, 3 }
 0x171   :  { %v1037_v4 = vpop.f32.mrb[13].mxu1  ;;  %v1036_v11 = vadd.f32 %v1035_v60, %v7939_v9  ;;  %v1737_v15 = vrot.slane %v7979_v42, 3  ;;  %v8008_v26 = vsel %vm2190_vm10, %v2169_v0, %v1688_v56  ;;  %v8011_v16 = vsel %vm2190_vm10, %v2170_v45, %v1689_v58 }
 0x172   :  { %v1039_v19 = vpop.f32.mrb[14].mxu1  ;;  %v8013_v2 = vmax.f32 %v1266_v22, %v1449_v38  ;;  %v1544_v25 = vrot.slane %v1268_v17, 1  ;;  %v2336_v29 = vsel %vm2165_vm9, %v1589_v18, %v2021_v61  ;;  %v1038_v57 = vadd.f32 %v1037_v4, %v7944_v32 }
 0x173   :  { %v1041_v13 = vpop.f32.mrb[15].mxu1  ;;  %v1271_v28 = vmax.f32 %v1036_v11, 0.0  ;;  %v1040_v52 = vadd.f32 %v1039_v19, %v7939_v9  ;;  %v1808_v33 = vrot.slane %v8000_v62, 4  ;;  %v1856_v5 = vrot.slane %v8000_v62, 5 }
 0x174   :  { %v1545_v34 = vrot.slane %v1269_v63, 1  ;;  %v2117_v37 = vrot.slane %v1589_v18, 3  ;;  %v1904_v10 = vrot.slane %v8000_v62, 6  ;;  %v2360_v35 = vsel %vm2190_vm10, %v2336_v29, %v2069_v59 }
 0x175   :  { %v1355_v46 = vrot.slane %v1271_v28, 1  ;;  %v1272_v3 = vmax.f32 %v1038_v57, 0.0  ;;  %v1274_v43 = vmax.f32 %v1040_v52, 0.0  ;;  %v1042_v7 = vadd.f32 %v1041_v13, %v7944_v32 }
 0x176   :  { %v8023_v53 = vsel %vm2215_vm11, %v2360_v35, %v2117_v37  ;;  %v2241_v21 = vsel %vm478_vm3, %v2217_v6, %v1806_v54  ;;  %v1592_v23 = vmax.f32 %v1268_v17, %v1544_v25  ;;  %v8031_v36 = vmax.f32 %v1269_v63, %v1545_v34 }
 0x177   :  { %v8027_v49 = vmax.f32 %v1271_v28, %v1355_v46  ;;  %v6221_v18 = vpack.i.bf16 %v8023_v53, %v7970_v12  ;;  %v1356_v47 = vrot.slane %v1272_v3, 1  ;;  %v1275_v39 = vmax.f32 %v1042_v7, 0.0 }
 0x178   :  { %v1045_v22 = vpop.f32.mrb[16].mxu1  ;;  %v2265_v51 = vsel %vm349_vm1, %v2241_v21, %v1854_v20  ;;  %v2337_v56 = vsel %vm2165_vm9, %v7990_v48, %v2022_v24  ;;  %v1809_v54 = vrot.slane %v8013_v2, 4  ;;  %v1857_v38 = vrot.slane %v8013_v2, 5 }
 0x179   :  { %v1047_v40 = vpop.f32.mrb[17].mxu1  ;;  %v1905_v17 = vrot.slane %v8013_v2, 6  ;;  %6222 = vrot.lane.b32.xlu0 %v6221_v18, %s7172_s20  ;;  %v8040_v60 = vmax.f32 %v1272_v3, %v1356_v47  ;;  %v1451_v0 = vrot.slane %v1274_v43, 1  ;;  %v2289_v20 = vsel %vm220_vm2, %v2265_v51, %v1902_v44 }
 0x17a   :  { %v1049_v58 = vpop.f32.mrb[18].mxu1  ;;  %v2361_v45 = vsel %vm2190_vm10, %v2337_v56, %v2070_v41  ;;  %v1046_v4 = vadd.f32 %v1045_v22, %v7939_v9  ;;  %v2024_v6 = vrot.slane %v1592_v23, 1  ;;  %v2072_v59 = vrot.slane %v1592_v23, 2 }
 0x17b   :  { %v1051_v61 = vpop.f32.mrb[19].mxu1  ;;  %v1643_v63 = vrot.slane %v8027_v49, 1  ;;  %v2118_v11 = vrot.slane %v7990_v48, 3  ;;  %v2025_v19 = vrot.slane %v8031_v36, 1  ;;  %v2073_v24 = vrot.slane %v8031_v36, 2 }
 0x17c   :  { %v1644_v13 = vrot.slane %v8040_v60, 1  ;;  %v1452_v25 = vrot.slane %v1275_v39, 1  ;;  %v1691_v28 = vrot.slane %v8027_v49, 2  ;;  %v1739_v44 = vrot.slane %v8027_v49, 3 }
 0x17d   :  { %v8057_v41 = vsel %vm91_vm0, %v2289_v20, %v1950_v55  ;;  %v8060_v29 = vsel %vm2215_vm11, %v2361_v45, %v2118_v11  ;;  %v8062_v48 = vmax.f32 %v1274_v43, %v1451_v0  ;;  %v1277_v52 = vmax.f32 %v1046_v4, 0.0 }
 0x17e   :  { %v6226_v57 = vpack.i.bf16 %v8060_v29, %v8057_v41  ;;  %v8067_v34 = vadd.f32 %v1047_v40, %v7944_v32  ;;  %v2172_v46 = vsel %vm2165_vm9, %v8027_v49, %v1643_v63  ;;  %v1692_v30 = vrot.slane %v8040_v60, 2 }
 0x17f   :  { %v1740_v55 = vrot.slane %v8040_v60, 3  ;;  %v1050_v35 = vadd.f32 %v1049_v58, %v7939_v9  ;;  %v2173_v43 = vsel %vm2165_vm9, %v8040_v60, %v1644_v13  ;;  %v8076_v7 = vmax.f32 %v1275_v39, %v1452_v25 }
 0x180   :  { %v1055_v37 = vpop.f32.mrb[20].mxu1  ;;  %6227 = vrot.lane.b32.xlu0 %v6226_v57, %s7172_s20  ;;  %v1547_v21 = vrot.slane %v1277_v52, 1  ;;  %v2120_v22 = vrot.slane %v1592_v23, 3  ;;  %v2219_v40 = vsel %vm2215_vm11, %v8008_v26, %v1736_v14  ;;  %v2339_v51 = vsel %vm2165_vm9, %v1592_v23, %v2024_v6 }
 0x181   :  { %v1057_v3 = vpop.f32.mrb[21].mxu1  ;;  %v1280_v47 = vmax.f32 %v1050_v35, 0.0  ;;  %v1052_v56 = vadd.f32 %v1051_v61, %v7944_v32  ;;  %v1278_v0 = vmax.f32 %v8067_v34, 0.0  ;;  %v1952_v39 = vrot.slane %v8000_v62, 7 }
 0x182   :  { %v1059_v18 = vpop.f32.mrb[22].mxu1  ;;  %v2243_v20 = vsel %vm478_vm3, %v2219_v40, %v1808_v33  ;;  %v2363_v45 = vsel %vm2190_vm10, %v2339_v51, %v2072_v59  ;;  %v2197_v23 = vsel %vm2190_vm10, %v2172_v46, %v1691_v28  ;;  %v1811_v61 = vrot.slane %v8062_v48, 4 }
 0x183   :  { %v1061_v58 = vpop.f32.mrb[23].mxu1  ;;  %v1358_v4 = vrot.slane %v1280_v47, 1  ;;  %v2267_v50 = vsel %vm349_vm1, %v2243_v20, %v1856_v5  ;;  %v8095_v14 = vsel %vm2215_vm11, %v2363_v45, %v2120_v22  ;;  %v1281_v26 = vmax.f32 %v1052_v56, 0.0 }
 0x184   :  { %v8099_v6 = vmax.f32 %v1277_v52, %v1547_v21  ;;  %v2291_v33 = vsel %vm220_vm2, %v2267_v50, %v1904_v10  ;;  %v1859_v59 = vrot.slane %v8062_v48, 5  ;;  %v8111_v13 = vsel %vm2190_vm10, %v2173_v43, %v1692_v30 }
 0x185   :  { %v8105_v63 = vmax.f32 %v1280_v47, %v1358_v4  ;;  %v8108_v5 = vsel %vm91_vm0, %v2291_v33, %v1952_v39  ;;  %v1359_v11 = vrot.slane %v1281_v26, 1  ;;  %v1907_v25 = vrot.slane %v8062_v48, 6 }
 0x186   :  { %v1812_v28 = vrot.slane %v8076_v7, 4  ;;  %v6231_v62 = vpack.i.bf16 %v8095_v14, %v8108_v5  ;;  %v1860_v10 = vrot.slane %v8076_v7, 5  ;;  %v1908_v52 = vrot.slane %v8076_v7, 6 }
 0x187   :  { %v1548_v34 = vrot.slane %v1278_v0, 1  ;;  %v8119_v46 = vmax.f32 %v1281_v26, %v1359_v11  ;;  %v2027_v30 = vrot.slane %v8099_v6, 1  ;;  %v2340_v43 = vsel %vm2165_vm9, %v8031_v36, %v2025_v19 }
 0x188   :  { %v1065_v57 = vpop.f32.mrb[24].mxu1  ;;  %6232 = vrot.lane.b32.xlu1 %v6231_v62, %s7172_s20  ;;  %v1056_v21 = vadd.f32 %v1055_v37, %v7939_v9  ;;  %v1058_v22 = vadd.f32 %v1057_v3, %v7944_v32  ;;  %v2075_v40 = vrot.slane %v8099_v6, 2  ;;  %v1646_v51 = vrot.slane %v8105_v63, 1 }
 0x189   :  { %v8121_v35 = vpop.f32.mrb[25].mxu1  ;;  %v2121_v56 = vrot.slane %v8031_v36, 3  ;;  %v2220_v39 = vsel %vm2215_vm11, %v8011_v16, %v1737_v15  ;;  %v1647_v19 = vrot.slane %v8119_v46, 1  ;;  %v2364_v3 = vsel %vm2190_vm10, %v2340_v43, %v2073_v24 }
 0x18a   :  { %v8129_v47 = vpop.f32.mrb[26].mxu1  ;;  %v2244_v37 = vsel %vm478_vm3, %v2220_v39, %v1809_v54  ;;  %v1283_v45 = vmax.f32 %v1056_v21, 0.0  ;;  %v1953_v4 = vrot.slane %v8013_v2, 7  ;;  %v1284_v16 = vmax.f32 %v1058_v22, 0.0 }
 0x18b   :  { %v8138_v20 = vpop.f32.mrb[27].mxu1  ;;  %v2268_v42 = vsel %vm349_vm1, %v2244_v37, %v1857_v38  ;;  %v8152_v15 = vsel %vm2215_vm11, %v2364_v3, %v2121_v56  ;;  %v1596_v50 = vmax.f32 %v1278_v0, %v1548_v34  ;;  %v1060_v36 = vadd.f32 %v1059_v18, %v7939_v9 }
 0x18c   :  { %v2292_v54 = vsel %vm220_vm2, %v2268_v42, %v1905_v17  ;;  %v1454_v26 = vrot.slane %v1283_v45, 1  ;;  %v1694_v24 = vrot.slane %v8105_v63, 2  ;;  %v1695_v33 = vrot.slane %v8119_v46, 2 }
 0x18d   :  { %v8161_v11 = vsel %vm91_vm0, %v2292_v54, %v1953_v4  ;;  %v1062_v38 = vadd.f32 %v1061_v58, %v7944_v32  ;;  %v2175_v62 = vsel %vm2165_vm9, %v8105_v63, %v1646_v51  ;;  %v2176_v2 = vsel %vm2165_vm9, %v8119_v46, %v1647_v19 }
 0x18e   :  { %v6236_v17 = vpack.i.bf16 %v8152_v15, %v8161_v11  ;;  %v1455_v0 = vrot.slane %v1284_v16, 1  ;;  %v8170_v34 = vmax.f32 %v1283_v45, %v1454_v26  ;;  %v2123_v43 = vrot.slane %v8099_v6, 3 }
 0x18f   :  { %v2222_v21 = vsel %vm2215_vm11, %v2197_v23, %v1739_v44  ;;  %v2342_v58 = vsel %vm2165_vm9, %v8099_v6, %v2027_v30  ;;  %v2028_v51 = vrot.slane %v1596_v50, 1  ;;  %v2076_v56 = vrot.slane %v1596_v50, 2 }
 0x190   :  { %v1075_v18 = vpop.f32.mrb[28].mxu1  ;;  %v1742_v39 = vrot.slane %v8105_v63, 3  ;;  %6237 = vrot.lane.b32.xlu1 %v6236_v17, %s7172_s20  ;;  %v1286_v19 = vmax.f32 %v1060_v36, 0.0  ;;  %v8185_v3 = vsel %vm2190_vm10, %v2175_v62, %v1694_v24  ;;  %v1743_v49 = vrot.slane %v8119_v46, 3 }
 0x191   :  { %v8178_v22 = vpop.f32.mrb[29].mxu1  ;;  %v8189_v44 = vsel %vm2190_vm10, %v2176_v2, %v1695_v33  ;;  %v1287_v23 = vmax.f32 %v1062_v38, 0.0  ;;  %v1955_v30 = vrot.slane %v8062_v48, 7  ;;  %v2246_v45 = vsel %vm478_vm3, %v2222_v21, %v1811_v61 }
 0x192   :  { %v8182_v37 = vpop.f32.mrb[30].mxu1  ;;  %v2366_v4 = vsel %vm2190_vm10, %v2342_v58, %v2075_v40  ;;  %v1066_v42 = vadd.f32 %v1065_v57, %v7939_v9  ;;  %v1814_v54 = vrot.slane %v8170_v34, 4  ;;  %v8200_v26 = vmax.f32 %v1284_v16, %v1455_v0 }
 0x193   :  { %v8191_v6 = vpop.f32.mrb[31].mxu1  ;;  %v2270_v36 = vsel %vm349_vm1, %v2246_v45, %v1859_v59  ;;  %v8206_v24 = vsel %vm2215_vm11, %v2366_v4, %v2123_v43  ;;  %v1862_v33 = vrot.slane %v8170_v34, 5  ;;  %v1550_v38 = vrot.slane %v1286_v19, 1 }
 0x194   :  { %v2294_v61 = vsel %vm220_vm2, %v2270_v36, %v1907_v25  ;;  %v1289_v40 = vmax.f32 %v1066_v42, 0.0  ;;  %v1551_v57 = vrot.slane %v1287_v23, 1  ;;  %v1956_v16 = vrot.slane %v8076_v7, 7 }
 0x195   :  { %v8213_v62 = vsel %vm91_vm0, %v2294_v61, %v1955_v30  ;;  %v2124_v2 = vrot.slane %v1596_v50, 3  ;;  %v2223_v0 = vsel %vm2215_vm11, %v8111_v13, %v1740_v55  ;;  %v2343_v48 = vsel %vm2165_vm9, %v1596_v50, %v2028_v51 }
 0x196   :  { %v6241_v59 = vpack.i.bf16 %v8206_v24, %v8213_v62  ;;  %v1361_v17 = vrot.slane %v1289_v40, 1  ;;  %v2247_v43 = vsel %vm478_vm3, %v2223_v0, %v1812_v28  ;;  %v2367_v21 = vsel %vm2190_vm10, %v2343_v48, %v2076_v56 }
 0x197   :  { %v1068_v58 = vadd.f32 %v8121_v35, %v7944_v32  ;;  %v1070_v30 = vadd.f32 %v8129_v47, %v7939_v9  ;;  %v2271_v13 = vsel %vm349_vm1, %v2247_v43, %v1860_v10  ;;  %v8242_v28 = vsel %vm2215_vm11, %v2367_v21, %v2124_v2 }
 0x198   :  { %v8223_v25 = vpop.f32.mrb[32].mxu1  ;;  %6242 = vrot.lane.b32.xlu0 %v6241_v59, %s7172_s20  ;;  %v8236_v55 = vmax.f32 %v1289_v40, %v1361_v17  ;;  %v1072_v50 = vadd.f32 %v8138_v20, %v7944_v32  ;;  %v1598_v51 = vmax.f32 %v1286_v19, %v1550_v38  ;;  %v2295_v47 = vsel %vm220_vm2, %v2271_v13, %v1908_v52 }
 0x199   :  { %v8233_v60 = vpop.f32.mrb[33].mxu1  ;;  %v1290_v56 = vmax.f32 %v1068_v58, 0.0  ;;  %v1292_v45 = vmax.f32 %v1070_v30, 0.0  ;;  %v8253_v42 = vmax.f32 %v1287_v23, %v1551_v57  ;;  %v8257_v36 = vsel %vm91_vm0, %v2295_v47, %v1956_v16 }
 0x19a   :  { %v8246_v35 = vpop.f32.mrb[34].mxu1  ;;  %v1649_v10 = vrot.slane %v8236_v55, 1  ;;  %v8260_v20 = vadd.f32 %v1075_v18, %v7939_v9  ;;  %v6246_v19 = vpack.i.bf16 %v8242_v28, %v8257_v36  ;;  %v1293_v52 = vmax.f32 %v1072_v50, 0.0 }
 0x19b   :  { %v8251_v4 = vpop.f32.mrb[35].mxu1  ;;  %v1362_v7 = vrot.slane %v1290_v56, 1  ;;  %v1457_v38 = vrot.slane %v1292_v45, 1  ;;  %v1910_v61 = vrot.slane %v8170_v34, 6  ;;  %v1815_v40 = vrot.slane %v8200_v26, 4 }
 0x19c   :  { %v1863_v23 = vrot.slane %v8200_v26, 5  ;;  %v1697_v57 = vrot.slane %v8236_v55, 2  ;;  %v2030_v2 = vrot.slane %v1598_v51, 1  ;;  %v2178_v16 = vsel %vm2165_vm9, %v8236_v55, %v1649_v10  ;;  %6247 = vrot.lane.b32.xlu0 %v6246_v19, %s7172_s20 }
 0x19d   :  { %v8271_v18 = vmax.f32 %v1290_v56, %v1362_v7  ;;  %v8275_v59 = vadd.f32 %v8178_v22, %v7944_v32  ;;  %v1911_v17 = vrot.slane %v8200_v26, 6  ;;  %v2078_v0 = vrot.slane %v1598_v51, 2 }
 0x19e   :  { %v8278_v48 = vmax.f32 %v1292_v45, %v1457_v38  ;;  %v1295_v43 = vmax.f32 %v8260_v20, 0.0  ;;  %v2031_v58 = vrot.slane %v8253_v42, 1  ;;  %v2079_v30 = vrot.slane %v8253_v42, 2 }
 0x19f   :  { %v1458_v50 = vrot.slane %v1293_v52, 1  ;;  %v8289_v22 = vsel %vm2190_vm10, %v2178_v16, %v1697_v57  ;;  %v1650_v56 = vrot.slane %v8271_v18, 1  ;;  %v1958_v45 = vrot.slane %v8170_v34, 7 }
 0x1a0   :  { %v8281_v21 = vpop.f32.mrb[36].mxu1  ;;  %v2225_v10 = vsel %vm2215_vm11, %v8185_v3, %v1742_v39  ;;  %v1296_v19 = vmax.f32 %v8275_v59, 0.0  ;;  %v2126_v7 = vrot.slane %v1598_v51, 3  ;;  %v2345_v57 = vsel %vm2165_vm9, %v1598_v51, %v2030_v2 }
 0x1a1   :  { %v8286_v47 = vpop.f32.mrb[37].mxu1  ;;  %v2249_v38 = vsel %vm478_vm3, %v2225_v10, %v1814_v54  ;;  %v1698_v1 = vrot.slane %v8271_v18, 2  ;;  %v1553_v39 = vrot.slane %v1295_v43, 1  ;;  %v8311_v13 = vmax.f32 %v1293_v52, %v1458_v50 }
 0x1a2   :  { %v8297_v20 = vpop.f32.mrb[38].mxu1  ;;  %v2273_v54 = vsel %vm349_vm1, %v2249_v38, %v1862_v33  ;;  %v2179_v51 = vsel %vm2165_vm9, %v8271_v18, %v1650_v56  ;;  %v2369_v10 = vsel %vm2190_vm10, %v2345_v57, %v2078_v0  ;;  %v1080_v63 = vadd.f32 %v8182_v37, %v7939_v9 }
 0x1a3   :  { %v8304_v16 = vpop.f32.mrb[39].mxu1  ;;  %v2297_v2 = vsel %vm220_vm2, %v2273_v54, %v1910_v61  ;;  %v1554_v27 = vrot.slane %v1296_v19, 1  ;;  %v8326_v52 = vsel %vm2215_vm11, %v2369_v10, %v2126_v7  ;;  %v1959_v34 = vrot.slane %v8200_v26, 7 }
 0x1a4   :  { %v8323_v3 = vsel %vm91_vm0, %v2297_v2, %v1958_v45  ;;  %v1298_v50 = vmax.f32 %v1080_v63, 0.0  ;;  %v2127_v61 = vrot.slane %v8253_v42, 3  ;;  %v2226_v37 = vsel %vm2215_vm11, %v8189_v44, %v1743_v49 }
 0x1a5   :  { %10803 = vst [vmem:[#allocation3_spill] sm:$0xff] %v8323_v3  ;;  %v6251_v33 = vpack.i.bf16 %v8326_v52, %v8323_v3  ;;  %v2250_v56 = vsel %vm478_vm3, %v2226_v37, %v1815_v40  ;;  %v2346_v45 = vsel %vm2165_vm9, %v8253_v42, %v2031_v58  ;;  %v1082_v26 = vadd.f32 %v8191_v6, %v7944_v32 }
 0x1a6   :  { %v1086_v7 = vadd.f32 %v8223_v25, %v7939_v9  ;;  %v1364_v46 = vrot.slane %v1298_v50, 1  ;;  %v2274_v49 = vsel %vm349_vm1, %v2250_v56, %v1863_v23  ;;  %v2370_v44 = vsel %vm2190_vm10, %v2346_v45, %v2079_v30 }
 0x1a7   :  { %6252 = vrot.lane.b32.xlu1 %v6251_v33, %s7172_s20  ;;  %v1088_v40 = vadd.f32 %v8233_v60, %v7944_v32  ;;  %v2298_v42 = vsel %vm220_vm2, %v2274_v49, %v1911_v17  ;;  %v8356_v6 = vsel %vm2215_vm11, %v2370_v44, %v2127_v61  ;;  %v1299_v25 = vmax.f32 %v1082_v26, 0.0 }
 0x1a8   :  { %v8336_v0 = vpop.f32.mrb[40].mxu1  ;;  %10804 = vst [vmem:[#allocation4_spill] sm:$0xff] %v8356_v6  ;;  %v1301_v58 = vmax.f32 %v1086_v7, 0.0  ;;  %v1601_v54 = vmax.f32 %v1295_v43, %v1553_v39  ;;  %v8360_v2 = vmax.f32 %v1298_v50, %v1364_v46  ;;  %v8363_v23 = vsel %vm91_vm0, %v2298_v42, %v1959_v34 }
 0x1a9   :  { %v8345_v38 = vpop.f32.mrb[41].mxu1  ;;  %10805 = vst [vmem:[#allocation5_spill] sm:$0xff] %v8363_v23  ;;  %v1302_v30 = vmax.f32 %v1088_v40, 0.0  ;;  %v8365_v10 = vmax.f32 %v1296_v19, %v1554_v27  ;;  %v6256_v60 = vpack.i.bf16 %v8356_v6, %v8363_v23  ;;  %v1365_v17 = vrot.slane %v1299_v25, 1 }
 0x1aa   :  { %v8352_v57 = vpop.f32.mrb[42].mxu1  ;;  %v1460_v33 = vrot.slane %v1301_v58, 1  ;;  %v2204_v61 = vsel %vm2190_vm10, %v2179_v51, %v1698_v1  ;;  %v1652_v37 = vrot.slane %v8360_v2, 1  ;;  %v8373_v43 = vadd.f32 %v8246_v35, %v7939_v9 }
 0x1ab   :  { %v8358_v63 = vpop.f32.mrb[43].mxu1  ;;  %v8377_v39 = vadd.f32 %v8251_v4, %v7944_v32  ;;  %v1818_v27 = vrot.slane %v8311_v13, 4  ;;  %v1700_v19 = vrot.slane %v8360_v2, 2  ;;  %6257 = vrot.lane.b32.xlu1 %v6256_v60, %s7172_s20  ;;  %v8382_v34 = vmax.f32 %v1299_v25, %v1365_v17 }
 0x1ac   :  { %v1461_v50 = vrot.slane %v1302_v30, 1  ;;  %v1866_v1 = vrot.slane %v8311_v13, 5  ;;  %v1914_v51 = vrot.slane %v8311_v13, 6  ;;  %v2033_v56 = vrot.slane %v1601_v54, 1 }
 0x1ad   :  { %v2181_v35 = vsel %vm2165_vm9, %v8360_v2, %v1652_v37  ;;  %v2081_v4 = vrot.slane %v1601_v54, 2  ;;  %v2034_v26 = vrot.slane %v8365_v10, 1  ;;  %v2082_v7 = vrot.slane %v8365_v10, 2 }
 0x1ae   :  { %v8392_v46 = vmax.f32 %v1301_v58, %v1460_v33  ;;  %v1304_v40 = vmax.f32 %v8373_v43, 0.0  ;;  %v1305_v42 = vmax.f32 %v8377_v39, 0.0  ;;  %v2129_v25 = vrot.slane %v1601_v54, 3 }
 0x1af   :  { %v8402_v17 = vsel %vm2190_vm10, %v2181_v35, %v1700_v19  ;;  %v1653_v37 = vrot.slane %v8382_v34, 1  ;;  %v8405_v59 = vmax.f32 %v1302_v30, %v1461_v50  ;;  %v1961_v58 = vrot.slane %v8278_v48, 7 }
 0x1b0   :  { %v8388_v45 = vpop.f32.mrb[44].mxu1  ;;  %v1701_v44 = vrot.slane %v8382_v34, 2  ;;  %v10806_v39 = vrot.slane %v8236_v55, 3  ;;  %v2348_v19 = vsel %vm2165_vm9, %v1601_v54, %v2033_v56  ;;  %v1820_v35 = vrot.slane %v8392_v46, 4 }
 0x1b1   :  { %v8394_v49 = vpop.f32.mrb[45].mxu1  ;;  %v10807_v30 = vrot.slane %v8278_v48, 4  ;;  %v2372_v23 = vsel %vm2190_vm10, %v2348_v19, %v2081_v4  ;;  %v1096_v6 = vadd.f32 %v8281_v21, %v7939_v9  ;;  %v10808_v3 = vrot.slane %v8278_v48, 5 }
 0x1b2   :  { %v8399_v60 = vpop.f32.mrb[46].mxu1  ;;  %v2228_v8 = vsel %vm2215_vm11, %v8289_v22, %v10806_v39  ;;  %v8430_v54 = vsel %vm2215_vm11, %v2372_v23, %v2129_v25  ;;  %v2182_v56 = vsel %vm2165_vm9, %v8382_v34, %v1653_v37  ;;  %v10809_v4 = vrot.slane %v8278_v48, 6 }
 0x1b3   :  { %v8408_v33 = vpop.f32.mrb[47].mxu1  ;;  %v2252_v50 = vsel %vm478_vm3, %v2228_v8, %v10807_v30  ;;  %v1556_v8 = vrot.slane %v1304_v40, 1  ;;  %v1307_v21 = vmax.f32 %v1096_v6, 0.0  ;;  %v1557_v19 = vrot.slane %v1305_v42, 1 }
 0x1b4   :  { %v2276_v22 = vsel %vm349_vm1, %v2252_v50, %v10808_v3  ;;  %v1962_v55 = vrot.slane %v8311_v13, 7  ;;  %v2130_v3 = vrot.slane %v8365_v10, 3  ;;  %v10811_v37 = vrot.slane %v8271_v18, 3 }
 0x1b5   :  { %v2300_v39 = vsel %vm220_vm2, %v2276_v22, %v10809_v4  ;;  %v1367_v25 = vrot.slane %v1307_v21, 1  ;;  %v2349_v6 = vsel %vm2165_vm9, %v8365_v10, %v2034_v26  ;;  %v1098_v4 = vadd.f32 %v8286_v47, %v7944_v32 }
 0x1b6   :  { %v8438_v30 = vsel %vm91_vm0, %v2300_v39, %v1961_v58  ;;  %v2229_v48 = vsel %vm2215_vm11, %v2204_v61, %v10811_v37  ;;  %v2373_v13 = vsel %vm2190_vm10, %v2349_v6, %v2082_v7  ;;  %v1100_v39 = vadd.f32 %v8297_v20, %v7939_v9 }
 0x1b7   :  { %10810 = vst [vmem:[#allocation6_spill] sm:$0xff] %v8438_v30  ;;  %v6261_v23 = vpack.i.bf16 %v8430_v54, %v8438_v30  ;;  %v2253_v58 = vsel %vm478_vm3, %v2229_v48, %v1818_v27  ;;  %v8460_v18 = vmax.f32 %v1307_v21, %v1367_v25  ;;  %v8464_v10 = vsel %vm2215_vm11, %v2373_v13, %v2130_v3 }
 0x1b8   :  { %v8442_v50 = vpop.f32.mrb[48].mxu1  ;;  %v2277_v61 = vsel %vm349_vm1, %v2253_v58, %v1866_v1  ;;  %10812 = vst [vmem:[#allocation7_spill] sm:$0xff] %v8464_v10  ;;  %v1102_v27 = vadd.f32 %v8304_v16, %v7944_v32  ;;  %v1604_v7 = vmax.f32 %v1304_v40, %v1556_v8  ;;  %v1308_v37 = vmax.f32 %v1098_v4, 0.0 }
 0x1b9   :  { %v1160_v22 = vpop.f32.mrb[49].mxu1  ;;  %6262 = vrot.lane.b32.xlu0 %v6261_v23, %s7172_s20  ;;  %v2301_v47 = vsel %vm220_vm2, %v2277_v61, %v1914_v51  ;;  %v1310_v20 = vmax.f32 %v1100_v39, 0.0  ;;  %v8469_v48 = vmax.f32 %v1305_v42, %v1557_v19  ;;  %v1655_v23 = vrot.slane %v8460_v18, 1 }
 0x1ba   :  { %v8457_v43 = vpop.f32.mrb[50].mxu1  ;;  %v8473_v21 = vsel %vm91_vm0, %v2301_v47, %v1962_v55  ;;  %v8477_v1 = vadd.f32 %v8336_v0, %v7939_v9  ;;  %v1368_v3 = vrot.slane %v1308_v37, 1  ;;  %v1311_v8 = vmax.f32 %v1102_v27, 0.0 }
 0x1bb   :  { %v1163_v26 = vpop.f32.mrb[51].mxu1  ;;  %10813 = vst [vmem:[#allocation8_spill] sm:$0xff] %v8473_v21  ;;  %v6266_v16 = vpack.i.bf16 %v8464_v10, %v8473_v21  ;;  %v1463_v40 = vrot.slane %v1310_v20, 1  ;;  %v1821_v51 = vrot.slane %v8405_v59, 4  ;;  %v1869_v42 = vrot.slane %v8405_v59, 5 }
 0x1bc   :  { %v1917_v19 = vrot.slane %v8405_v59, 6  ;;  %v1703_v25 = vrot.slane %v8460_v18, 2  ;;  %v2036_v55 = vrot.slane %v1604_v7, 1  ;;  %v2184_v6 = vsel %vm2165_vm9, %v8460_v18, %v1655_v23 }
 0x1bd   :  { %6267 = vrot.lane.b32.xlu0 %v6266_v16, %s7172_s20  ;;  %v8488_v0 = vmax.f32 %v1308_v37, %v1368_v3  ;;  %v8492_v22 = vadd.f32 %v8345_v38, %v7944_v32  ;;  %v2207_v13 = vsel %vm2190_vm10, %v2182_v56, %v1701_v44  ;;  %v8497_v4 = vmax.f32 %v1310_v20, %v1463_v40 }
 0x1be   :  { %v1313_v39 = vmax.f32 %v8477_v1, 0.0  ;;  %v10814_v61 = vrot.slane %v8360_v2, 3  ;;  %v2084_v47 = vrot.slane %v1604_v7, 2  ;;  %v2037_v37 = vrot.slane %v8469_v48, 1 }
 0x1bf   :  { %v2085_v38 = vrot.slane %v8469_v48, 2  ;;  %v1464_v23 = vrot.slane %v1311_v8, 1  ;;  %v8510_v56 = vsel %vm2190_vm10, %v2184_v6, %v1703_v25  ;;  %v1656_v20 = vrot.slane %v8488_v0, 1 }
 0x1c0   :  { %v8494_v58 = vpop.f32.mrb[52].mxu1  ;;  %v2231_v27 = vsel %vm2215_vm11, %v8402_v17, %v10814_v61  ;;  %v1964_v2 = vrot.slane %v8392_v46, 7  ;;  %v1314_v17 = vmax.f32 %v8492_v22, 0.0  ;;  %v2132_v3 = vrot.slane %v1604_v7, 3 }
 0x1c1   :  { %v1168_v26 = vpop.f32.mrb[53].mxu1  ;;  %v2255_v40 = vsel %vm478_vm3, %v2231_v27, %v1820_v35  ;;  %v2351_v61 = vsel %vm2165_vm9, %v1604_v7, %v2036_v55  ;;  %v1823_v25 = vrot.slane %v8497_v4, 4  ;;  %v1559_v6 = vrot.slane %v1313_v39, 1 }
 0x1c2   :  { %v8506_v16 = vpop.f32.mrb[54].mxu1  ;;  %v1704_v26 = vrot.slane %v8488_v0, 2  ;;  %v8524_v10 = vmax.f32 %v1311_v8, %v1464_v23  ;;  %v10815_v22 = vrot.slane %v8392_v46, 5  ;;  %v2185_v35 = vsel %vm2165_vm9, %v8488_v0, %v1656_v20 }
 0x1c3   :  { %v1171_v1 = vpop.f32.mrb[55].mxu1  ;;  %v10816_v7 = vrot.slane %v8392_v46, 6  ;;  %v2375_v27 = vsel %vm2190_vm10, %v2351_v61, %v2084_v47  ;;  %v1110_v44 = vadd.f32 %v8352_v57, %v7939_v9  ;;  %v1560_v21 = vrot.slane %v1314_v17, 1 }
 0x1c4   :  { %v2279_v30 = vsel %vm349_vm1, %v2255_v40, %v10815_v22  ;;  %v8541_v23 = vsel %vm2215_vm11, %v2375_v27, %v2132_v3  ;;  %v1965_v40 = vrot.slane %v8405_v59, 7  ;;  %v2133_v47 = vrot.slane %v8469_v48, 3 }
 0x1c5   :  { %v2303_v55 = vsel %vm220_vm2, %v2279_v30, %v10816_v7  ;;  %v1316_v30 = vmax.f32 %v1110_v44, 0.0  ;;  %v10817_v20 = vrot.slane %v8382_v34, 3  ;;  %v2352_v3 = vsel %vm2165_vm9, %v8469_v48, %v2037_v37 }
 0x1c6   :  { %v8538_v8 = vsel %vm91_vm0, %v2303_v55, %v1964_v2  ;;  %v1112_v59 = vadd.f32 %v8358_v63, %v7944_v32  ;;  %v1116_v7 = vadd.f32 %v8388_v45, %v7939_v9 }
 0x1c7   :  { %v6271_v46 = vpack.i.bf16 %v8541_v23, %v8538_v8  ;;  %v2232_v57 = vsel %vm2215_vm11, %v2207_v13, %v10817_v20  ;;  %v1370_v44 = vrot.slane %v1316_v30, 1  ;;  %v2376_v13 = vsel %vm2190_vm10, %v2352_v3, %v2085_v38 }
 0x1c8   :  { %v8544_v22 = vpop.f32.mrb[56].mxu1  ;;  %v2256_v2 = vsel %vm478_vm3, %v2232_v57, %v1821_v51  ;;  %v1118_v51 = vadd.f32 %v8394_v49, %v7944_v32  ;;  %v8568_v63 = vsel %vm2215_vm11, %v2376_v13, %v2133_v47  ;;  %v1317_v37 = vmax.f32 %v1112_v59, 0.0 }
 0x1c9   :  { %v1176_v61 = vpop.f32.mrb[57].mxu1  ;;  %6272 = vrot.lane.b32.xlu1 %v6271_v46, %s7172_s20  ;;  %v2280_v34 = vsel %vm349_vm1, %v2256_v2, %v1869_v42  ;;  %v1319_v45 = vmax.f32 %v1116_v7, 0.0  ;;  %v8570_v20 = vmax.f32 %v1316_v30, %v1370_v44  ;;  %v1120_v42 = vadd.f32 %v8399_v60, %v7939_v9 }
 0x1ca   :  { %v8559_v55 = vpop.f32.mrb[58].mxu1  ;;  %v2304_v48 = vsel %vm220_vm2, %v2280_v34, %v1917_v19  ;;  %v1320_v57 = vmax.f32 %v1118_v51, 0.0  ;;  %v1607_v38 = vmax.f32 %v1313_v39, %v1559_v6  ;;  %v8577_v61 = vmax.f32 %v1314_v17, %v1560_v21 }
 0x1cb   :  { %v1179_v27 = vpop.f32.mrb[59].mxu1  ;;  %v8573_v46 = vsel %vm91_vm0, %v2304_v48, %v1965_v40  ;;  %v1371_v19 = vrot.slane %v1317_v37, 1  ;;  %v8582_v47 = vsel %vm2190_vm10, %v2185_v35, %v1704_v26  ;;  %v1658_v30 = vrot.slane %v8570_v20, 1 }
 0x1cc   :  { %10818 = vst [vmem:[#allocation9_spill] sm:$0xff] %v8573_v46  ;;  %v6276_v49 = vpack.i.bf16 %v8568_v63, %v8573_v46  ;;  %v1466_v2 = vrot.slane %v1319_v45, 1  ;;  %v1122_v40 = vadd.f32 %v8408_v33, %v7944_v32  ;;  %v1706_v9 = vrot.slane %v8570_v20, 2 }
 0x1cd   :  { %v8590_v60 = vmax.f32 %v1317_v37, %v1371_v19  ;;  %v1467_v21 = vrot.slane %v1320_v57, 1  ;;  %v2187_v26 = vsel %vm2165_vm9, %v8570_v20, %v1658_v30  ;;  %v1322_v6 = vmax.f32 %v1120_v42, 0.0 }
 0x1ce   :  { %6277 = vrot.lane.b32.xlu1 %v6276_v49, %s7172_s20  ;;  %v1159_v32 = vadd.f32 %v8442_v50, %v7975_v31  ;;  %v1920_v35 = vrot.slane %v8524_v10, 6  ;;  %v2039_v59 = vrot.slane %v1607_v38, 1  ;;  %v2087_v7 = vrot.slane %v1607_v38, 2 }
 0x1cf   :  { %v2040_v44 = vrot.slane %v8577_v61, 1  ;;  %v2088_v13 = vrot.slane %v8577_v61, 2  ;;  %v8605_v27 = vmax.f32 %v1319_v45, %v1466_v2  ;;  %v1323_v48 = vmax.f32 %v1122_v40, 0.0 }
 0x1d0   :  { %v8592_v39 = vpop.f32.mrb[60].mxu1  ;;  %v8608_v42 = vsel %vm2190_vm10, %v2187_v26, %v1706_v9  ;;  %v1659_v50 = vrot.slane %v8590_v60, 1  ;;  %v8611_v49 = vmax.f32 %v1320_v57, %v1467_v21  ;;  %v1967_v19 = vrot.slane %v8497_v4, 7 }
 0x1d1   :  { %v1184_v33 = vpop.f32.mrb[61].mxu1  ;;  %v1707_v30 = vrot.slane %v8590_v60, 2  ;;  %v1255_v17 = vmax.f32 %v1159_v32, 0.0  ;;  %v2135_v3 = vrot.slane %v1607_v38, 3  ;;  %v10819_v45 = vrot.slane %v8460_v18, 3 }
 0x1d2   :  { %v8601_v34 = vpop.f32.mrb[62].mxu1  ;;  %v1562_v33 = vrot.slane %v1322_v6, 1  ;;  %v2354_v40 = vsel %vm2165_vm9, %v1607_v38, %v2039_v59  ;;  %v1162_v57 = vadd.f32 %v8457_v43, %v7975_v31  ;;  %v1826_v9 = vrot.slane %v8605_v27, 4 }
 0x1d3   :  { %v1187_v37 = vpop.f32.mrb[63].mxu1  ;;  %v2234_v2 = vsel %vm2215_vm11, %v8510_v56, %v10819_v45  ;;  %v1351_v21 = vrot.slane %v1255_v17, 1  ;;  %v2378_v32 = vsel %vm2190_vm10, %v2354_v40, %v2087_v7  ;;  %v1563_v18 = vrot.slane %v1323_v48, 1 }
 0x1d4   :  { %v2258_v26 = vsel %vm478_vm3, %v2234_v2, %v1823_v25  ;;  %v1874_v37 = vrot.slane %v8605_v27, 5  ;;  %v10820_v51 = vrot.slane %v8497_v4, 5  ;;  %v8633_v38 = vsel %vm2215_vm11, %v2378_v32, %v2135_v3 }
 0x1d5   :  { %v1922_v59 = vrot.slane %v8605_v27, 6  ;;  %v1827_v45 = vrot.slane %v8611_v49, 4  ;;  %v1610_v1 = vmax.f32 %v1322_v6, %v1562_v33  ;;  %v10821_v25 = vrot.slane %v8497_v4, 6 }
 0x1d6   :  { %v2282_v56 = vsel %vm349_vm1, %v2258_v26, %v10820_v51  ;;  %v8642_v40 = vmax.f32 %v1255_v17, %v1351_v21  ;;  %v1258_v51 = vmax.f32 %v1162_v57, 0.0  ;;  %v2136_v3 = vrot.slane %v8577_v61, 3 }
 0x1d7   :  { %v2306_v7 = vsel %vm220_vm2, %v2282_v56, %v10821_v25  ;;  %v2188_v32 = vsel %vm2165_vm9, %v8590_v60, %v1659_v50  ;;  %v1875_v6 = vrot.slane %v8611_v49, 5  ;;  %v1923_v4 = vrot.slane %v8611_v49, 6 }
 0x1d8   :  { %v8635_v43 = vpop.f32.mrb[64].mxu1  ;;  %v8645_v46 = vsel %vm91_vm0, %v2306_v7, %v1967_v19  ;;  %v1611_v21 = vmax.f32 %v1323_v48, %v1563_v18  ;;  %v1968_v19 = vrot.slane %v8524_v10, 7  ;;  %v10823_v57 = vrot.slane %v8488_v0, 3 }
 0x1d9   :  { %v1192_v2 = vpop.f32.mrb[65].mxu1  ;;  %10822 = vst [vmem:[#allocation10_spill] sm:$0xff] %v8645_v46  ;;  %v6281_v33 = vpack.i.bf16 %v8633_v38, %v8645_v46  ;;  %v2355_v25 = vsel %vm2165_vm9, %v8577_v61, %v2040_v44  ;;  %v2042_v50 = vrot.slane %v1610_v1, 1  ;;  %v10824_v7 = vrot.slane %v8524_v10, 4 }
 0x1da   :  { %v8648_v26 = vpop.f32.mrb[66].mxu1  ;;  %v2235_v56 = vsel %vm2215_vm11, %v8582_v47, %v10823_v57  ;;  %v1170_v48 = vadd.f32 %v8506_v16, %v7975_v31  ;;  %v1639_v0 = vrot.slane %v8642_v40, 1  ;;  %v1447_v18 = vrot.slane %v1258_v51, 1 }
 0x1db   :  { %v1195_v17 = vpop.f32.mrb[67].mxu1  ;;  %6282 = vrot.lane.b32.xlu0 %v6281_v33, %s7172_s20  ;;  %v2259_v2 = vsel %vm478_vm3, %v2235_v56, %v10824_v7  ;;  %v10825_v47 = vrot.slane %v8524_v10, 5  ;;  %v2213_v44 = vsel %vm2190_vm10, %v2188_v32, %v1707_v30  ;;  %v2090_v33 = vrot.slane %v1610_v1, 2 }
 0x1dc   :  { %v2379_v17 = vsel %vm2190_vm10, %v2355_v25, %v2088_v13  ;;  %v1264_v7 = vmax.f32 %v1170_v48, 0.0  ;;  %v2043_v13 = vrot.slane %v1611_v21, 1  ;;  %v2091_v25 = vrot.slane %v1611_v21, 2 }
 0x1dd   :  { %v2283_v57 = vsel %vm349_vm1, %v2259_v2, %v10825_v47  ;;  %v8675_v61 = vsel %vm2215_vm11, %v2379_v17, %v2136_v3  ;;  %v1167_v46 = vadd.f32 %v8494_v58, %v7975_v31  ;;  %v1687_v2 = vrot.slane %v8642_v40, 2 }
 0x1de   :  { %10826 = vst [vmem:[#allocation11_spill] sm:$0xff] %v8675_v61  ;;  %v2307_v56 = vsel %vm220_vm2, %v2283_v57, %v1920_v35  ;;  %v1354_v30 = vrot.slane %v1264_v7, 1  ;;  %v2138_v32 = vrot.slane %v1610_v1, 3  ;;  %v2168_v35 = vsel %vm2165_vm9, %v8642_v40, %v1639_v0 }
 0x1df   :  { %v8680_v16 = vsel %vm91_vm0, %v2307_v56, %v1968_v19  ;;  %v1495_v48 = vmax.f32 %v1258_v51, %v1447_v18  ;;  %v10828_v19 = vrot.slane %v8570_v20, 3  ;;  %v2357_v58 = vsel %vm2165_vm9, %v1610_v1, %v2042_v50 }
 0x1e0   :  { %10827 = vst [vmem:[#allocation12_spill] sm:$0xff] %v8680_v16  ;;  %v8684_v10 = vpop.f32.mrb[68].mxu1  ;;  %v6286_v3 = vpack.i.bf16 %v8675_v61, %v8680_v16  ;;  %v1970_v56 = vrot.slane %v8605_v27, 7  ;;  %v2139_v61 = vrot.slane %v1611_v21, 3  ;;  %v1261_v51 = vmax.f32 %v1167_v46, 0.0 }
 0x1e1   :  { %v1200_v17 = vpop.f32.mrb[69].mxu1  ;;  %v2237_v47 = vsel %vm2215_vm11, %v8608_v42, %v10828_v19  ;;  %v10829_v18 = vrot.slane %v8590_v60, 3  ;;  %v2358_v1 = vsel %vm2165_vm9, %v1611_v21, %v2043_v13  ;;  %v1402_v50 = vmax.f32 %v1264_v7, %v1354_v30 }
 0x1e2   :  { %v8696_v57 = vpop.f32.mrb[70].mxu1  ;;  %6287 = vrot.lane.b32.xlu0 %v6286_v3, %s7172_s20  ;;  %v2261_v16 = vsel %vm478_vm3, %v2237_v47, %v1826_v9  ;;  %v2381_v17 = vsel %vm2190_vm10, %v2357_v58, %v2090_v33  ;;  %v1971_v27 = vrot.slane %v8611_v49, 7  ;;  %v2193_v9 = vsel %vm2190_vm10, %v2168_v35, %v1687_v2 }
 0x1e3   :  { %v1203_v0 = vpop.f32.mrb[71].mxu1  ;;  %v2285_v20 = vsel %vm349_vm1, %v2261_v16, %v1874_v37  ;;  %v2238_v42 = vsel %vm2215_vm11, %v2213_v44, %v10829_v18  ;;  %v8708_v3 = vsel %vm2215_vm11, %v2381_v17, %v2138_v32  ;;  %v2382_v37 = vsel %vm2190_vm10, %v2358_v1, %v2091_v25 }
 0x1e4   :  { %v2309_v33 = vsel %vm220_vm2, %v2285_v20, %v1922_v59  ;;  %v2262_v46 = vsel %vm478_vm3, %v2238_v42, %v1827_v45  ;;  %v1807_v16 = vrot.slane %v1495_v48, 4  ;;  %v8720_v44 = vsel %vm2215_vm11, %v2382_v37, %v2139_v61 }
 0x1e5   :  { %v8716_v60 = vsel %vm91_vm0, %v2309_v33, %v1970_v56  ;;  %v2286_v21 = vsel %vm349_vm1, %v2262_v46, %v1875_v6  ;;  %v1543_v7 = vrot.slane %v1261_v51, 1  ;;  %v1175_v59 = vadd.f32 %v8544_v22, %v7975_v31 }
 0x1e6   :  { %v6291_v49 = vpack.i.bf16 %v8708_v3, %v8716_v60  ;;  %v2310_v13 = vsel %vm220_vm2, %v2286_v21, %v1923_v4  ;;  %v1735_v25 = vrot.slane %v8642_v40, 3  ;;  %v1642_v2 = vrot.slane %v1402_v50, 1 }
 0x1e7   :  { %v8731_v30 = vsel %vm91_vm0, %v2310_v13, %v1971_v27  ;;  %v1178_v6 = vadd.f32 %v8559_v55, %v7975_v31  ;;  %v1267_v32 = vmax.f32 %v1175_v59, 0.0  ;;  %v1855_v22 = vrot.slane %v1495_v48, 5 }
 0x1e8   :  { %v8727_v45 = vpop.f32.mrb[72].mxu1  ;;  %6292 = vrot.lane.b32.xlu1 %v6291_v49, %s7172_s20  ;;  %v6296_v4 = vpack.i.bf16 %v8720_v44, %v8731_v30  ;;  %v1903_v19 = vrot.slane %v1495_v48, 6  ;;  %v2218_v40 = vsel %vm2215_vm11, %v2193_v9, %v1735_v25  ;;  %v1591_v56 = vmax.f32 %v1261_v51, %v1543_v7 }
 0x1e9   :  { %v1208_v61 = vpop.f32.mrb[73].mxu1  ;;  %v1270_v47 = vmax.f32 %v1178_v6, 0.0  ;;  %v1690_v17 = vrot.slane %v1402_v50, 2  ;;  %v1450_v0 = vrot.slane %v1267_v32, 1  ;;  %v2242_v55 = vsel %vm478_vm3, %v2218_v40, %v1807_v16 }
 0x1ea   :  { %v8738_v35 = vpop.f32.mrb[74].mxu1  ;;  %v2171_v20 = vsel %vm2165_vm9, %v1402_v50, %v1642_v2  ;;  %v1951_v42 = vrot.slane %v1495_v48, 7  ;;  %v2266_v1 = vsel %vm349_vm1, %v2242_v55, %v1855_v22  ;;  %v2023_v7 = vrot.slane %v1591_v56, 1 }
 0x1eb   :  { %v1211_v58 = vpop.f32.mrb[75].mxu1  ;;  %v1546_v18 = vrot.slane %v1270_v47, 1  ;;  %v1498_v27 = vmax.f32 %v1267_v32, %v1450_v0  ;;  %v2290_v33 = vsel %vm220_vm2, %v2266_v1, %v1903_v19  ;;  %v2196_v51 = vsel %vm2190_vm10, %v2171_v20, %v1690_v17  ;;  %v6223_v21 = vpop.permute.xlu0 %6222 }
 0x1ec   :  { %6297 = vrot.lane.b32.xlu1 %v6296_v4, %s7172_s20  ;;  %v8747_v9 = vsel %vm91_vm0, %v2290_v33, %v1951_v42  ;;  %v1738_v49 = vrot.slane %v1402_v50, 3  ;;  %v2071_v25 = vrot.slane %v1591_v56, 2  ;;  %v1183_v61 = vadd.f32 %v8592_v39, %v7975_v31 }
 0x1ed   :  { %v1594_v46 = vmax.f32 %v1270_v47, %v1546_v18  ;;  %v1810_v37 = vrot.slane %v1498_v27, 4  ;;  %v1858_v48 = vrot.slane %v1498_v27, 5  ;;  %v1906_v22 = vrot.slane %v1498_v27, 6 }
 0x1ee   :  { %v2221_v4 = vsel %vm2215_vm11, %v2196_v51, %v1738_v49  ;;  %v1954_v19 = vrot.slane %v1498_v27, 7  ;;  %v2119_v40 = vrot.slane %v1591_v56, 3  ;;  %v2338_v17 = vsel %vm2165_vm9, %v1591_v56, %v2023_v7 }
 0x1ef   :  { %v2026_v13 = vrot.slane %v1594_v46, 1  ;;  %v2074_v2 = vrot.slane %v1594_v46, 2  ;;  %v2245_v47 = vsel %vm478_vm3, %v2221_v4, %v1810_v37  ;;  %v2122_v58 = vrot.slane %v1594_v46, 3 }
 0x1f0   :  { %v8750_v16 = vpop.f32.mrb[76].mxu1  ;;  %v2269_v50 = vsel %vm349_vm1, %v2245_v47, %v1858_v48  ;;  %v1186_v55 = vadd.f32 %v8601_v34, %v7975_v31  ;;  %v2362_v20 = vsel %vm2190_vm10, %v2338_v17, %v2071_v25  ;;  %v1194_v27 = vadd.f32 %v8648_v26, %v7975_v31 }
 0x1f1   :  { %v1216_v59 = vpop.f32.mrb[77].mxu1  ;;  %v2341_v0 = vsel %vm2165_vm9, %v1594_v46, %v2026_v13  ;;  %v2293_v39 = vsel %vm220_vm2, %v2269_v50, %v1906_v22  ;;  %v8772_v56 = vsel %vm2215_vm11, %v2362_v20, %v2119_v40  ;;  %v1273_v34 = vmax.f32 %v1183_v61, 0.0 }
 0x1f2   :  { %v8752_v6 = vpop.f32.mrb[78].mxu1  ;;  %v2365_v18 = vsel %vm2190_vm10, %v2341_v0, %v2074_v2  ;;  %v6228_v42 = vpop.permute.xlu0 %6227  ;;  %v8767_v1 = vsel %vm91_vm0, %v2293_v39, %v1954_v19  ;;  %v1191_v46 = vadd.f32 %v8635_v43, %v7975_v31  ;;  %v6225_v49 = vunpack.i.h.bf16 %v6223_v21 }
 0x1f3   :  { %v1219_v32 = vpop.f32.mrb[79].mxu1  ;;  %v8775_v33 = vsel %vm2215_vm11, %v2365_v18, %v2122_v58  ;;  %v6301_v51 = vpack.i.bf16 %v8767_v1, %v8747_v9  ;;  %v6224_v26 = vunpack.i.l.bf16 %v6223_v21  ;;  %v6230_v48 = vunpack.i.h.bf16 %v6228_v42 }
 0x1f4   :  { %v6306_v37 = vpack.i.bf16 %v8775_v33, %v8772_v56  ;;  %v1276_v25 = vmax.f32 %v1186_v55, 0.0  ;;  %v1282_v43 = vmax.f32 %v1194_v27, 0.0  ;;  %v8790_v2 = vmax.f32 %v8023_v53, %v6225_v49 }
 0x1f5   :  { %6302 = vrot.lane.b32.xlu0 %v6301_v51, %s7172_s20  ;;  %v8793_v61 = vmax.f32 %v7970_v12, %v6224_v26  ;;  %v1357_v32 = vrot.slane %v1273_v34, 1  ;;  %v1279_v22 = vmax.f32 %v1191_v46, 0.0  ;;  %v6229_v21 = vunpack.i.l.bf16 %v6228_v42 }
 0x1f6   :  { %6307 = vrot.lane.b32.xlu1 %v6306_v37, %s7172_s20  ;;  %v2553_v19 = vmax.f32 %v8060_v29, %v6230_v48  ;;  %v1199_v40 = vadd.f32 %v8684_v10, %v7975_v31  ;;  %v1453_v53 = vrot.slane %v1276_v25, 1  ;;  %v1360_v17 = vrot.slane %v1282_v43, 1 }
 0x1f7   :  { %v6311_v47 = vpack.i.bf16 %v8790_v2, %v8793_v61  ;;  %v2552_v50 = vmax.f32 %v8057_v41, %v6229_v21  ;;  %v1202_v12 = vadd.f32 %v8696_v57, %v7975_v31  ;;  %v8804_v0 = vmax.f32 %v1273_v34, %v1357_v32 }
 0x1f8   :  { %v8783_v7 = vpop.f32.mrb[80].mxu1  ;;  %v1549_v55 = vrot.slane %v1279_v22, 1  ;;  %v1207_v29 = vadd.f32 %v8727_v45, %v7975_v31  ;;  %v1285_v42 = vmax.f32 %v1199_v40, 0.0  ;;  %v1210_v27 = vadd.f32 %v8738_v35, %v7975_v31 }
 0x1f9   :  { %v1224_v13 = vpop.f32.mrb[81].mxu1  ;;  %6312 = vrot.lane.b32.xlu0 %v6311_v47, %s7172_s20  ;;  %v8808_v10 = vpack.i.bf16 %v2553_v19, %v2552_v50  ;;  %v8814_v57 = vmax.f32 %v1276_v25, %v1453_v53  ;;  %v8816_v34 = vmax.f32 %v1282_v43, %v1360_v17  ;;  %v1288_v51 = vmax.f32 %v1202_v12, 0.0 }
 0x1fa   :  { %v8787_v59 = vpop.f32.mrb[82].mxu1  ;;  %v6233_v58 = vpop.permute.xlu1 %6232  ;;  %v1645_v37 = vrot.slane %v8804_v0, 1  ;;  %v8822_v49 = vmax.f32 %v1279_v22, %v1549_v55  ;;  %v1291_v35 = vmax.f32 %v1207_v29, 0.0  ;;  %v1693_v25 = vrot.slane %v8804_v0, 2 }
 0x1fb   :  { %v1227_v4 = vpop.f32.mrb[83].mxu1  ;;  %v6235_v20 = vunpack.i.h.bf16 %v6233_v58  ;;  %v6234_v18 = vunpack.i.l.bf16 %v6233_v58  ;;  %6337 = vrot.lane.b32.xlu1 %v8808_v10, %s7174_s2  ;;  %v1294_v32 = vmax.f32 %v1210_v27, 0.0  ;;  %v1648_v22 = vrot.slane %v8816_v34, 1 }
 0x1fc   :  { %v1456_v4 = vrot.slane %v1285_v42, 1  ;;  %v1552_v40 = vrot.slane %v1288_v51, 1  ;;  %v1363_v50 = vrot.slane %v1291_v35, 1 }
 0x1fd   :  { %6317 = vrot.lane.b32.xlu0 %v6311_v47, %s7175_s25  ;;  %v8825_v26 = vmax.f32 %v8095_v14, %v6235_v20  ;;  %v8828_v48 = vmax.f32 %v8108_v5, %v6234_v18  ;;  %v2174_v14 = vsel %vm2165_vm9, %v8804_v0, %v1645_v37  ;;  %v1696_v20 = vrot.slane %v8816_v34, 2 }
 0x1fe   :  { %v8847_v18 = vmax.f32 %v1285_v42, %v1456_v4  ;;  %v8857_v17 = vmax.f32 %v1288_v51, %v1552_v40  ;;  %v8863_v4 = vmax.f32 %v1291_v35, %v1363_v50 }
 0x1ff   :  { %6342 = vrot.lane.b32.xlu1 %v8808_v10, %s7176_s26  ;;  %v6346_v55 = vpack.i.bf16 %v8825_v26, %v8828_v48 }
 0x200   :  { %v1230_v39 = vpop.f32.mrb[84].mxu1  ;;  %v1912_v35 = vrot.slane %v8847_v18, 6  ;;  %v2080_v50 = vrot.slane %v8857_v17, 2 }
 0x201   :  { %v1232_v41 = vpop.f32.mrb[85].mxu1  ;;  %6322 = vrot.lane.b32.xlu0 %v6311_v47, %s7177_s27  ;;  %v1459_v47 = vrot.slane %v1294_v32, 1 }
 0x202   :  { %v8812_v46 = vpop.f32.mrb[86].mxu1  ;;  %v6238_v13 = vpop.permute.xlu1 %6237  ;;  %v1218_v41 = vadd.f32 %v8752_v6, %v7975_v31  ;;  %v1744_v6 = vrot.slane %v8816_v34, 3 }
 0x203   :  { %v1235_v45 = vpop.f32.mrb[87].mxu1  ;;  %v6240_v58 = vunpack.i.h.bf16 %v6238_v13  ;;  %v6239_v12 = vunpack.i.l.bf16 %v6238_v13  ;;  %v2177_v13 = vsel %vm2165_vm9, %v8816_v34, %v1648_v22  ;;  %6347 = vrot.lane.b32.xlu1 %v6346_v55, %s7172_s20  ;;  %v1231_v22 = vadd.f32 %v1230_v39, %v7975_v31 }
 0x204   :  { %v2199_v45 = vsel %vm2190_vm10, %v2174_v14, %v1693_v25  ;;  %v8867_v25 = vadd.f32 %v8750_v16, %v7975_v31  ;;  %v2202_v40 = vsel %vm2190_vm10, %v2177_v13, %v1696_v20  ;;  %v8874_v37 = vmax.f32 %v1294_v32, %v1459_v47 }
 0x205   :  { %6327 = vrot.lane.b32.xlu0 %v8808_v10, %s7178_s28  ;;  %v2555_v14 = vmax.f32 %v8152_v15, %v6240_v58  ;;  %v2554_v51 = vmax.f32 %v8161_v11, %v6239_v12  ;;  %v1864_v34 = vrot.slane %v8847_v18, 5  ;;  %v2032_v16 = vrot.slane %v8857_v17, 1 }
 0x206   :  { %v1957_v58 = vrot.slane %v8814_v57, 7  ;;  %v8894_v11 = vadd.f32 %v8783_v7, %v7975_v31  ;;  %v1960_v7 = vrot.slane %v8847_v18, 7 }
 0x207   :  { %6352 = vrot.lane.b32.xlu1 %v6346_v55, %s7175_s25  ;;  %v6371_v47 = vpack.i.bf16 %v2555_v14, %v2554_v51  ;;  %v10830_v14 = vrot.slane %v8804_v0, 3 }
 0x208   :  { %v8841_v53 = vpop.f32.mrb[88].mxu1 }
 0x209   :  { %v1240_v29 = vpop.f32.mrb[89].mxu1  ;;  %6332 = vrot.lane.b32.xlu0 %v8808_v10, %s7179_s0  ;;  %v2224_v51 = vsel %vm2215_vm11, %v2199_v45, %v10830_v14  ;;  %v2227_v10 = vsel %vm2215_vm11, %v2202_v40, %v1744_v6  ;;  %v1303_v45 = vmax.f32 %v8894_v11, 0.0  ;;  %v10832_v14 = vrot.slane %v8814_v57, 5 }
 0x20a   :  { %v8851_v27 = vpop.f32.mrb[90].mxu1  ;;  %v1816_v29 = vrot.slane %v8847_v18, 4  ;;  %v6243_v15 = vpop.permute.xlu0 %6242 }
 0x20b   :  { %v1243_v42 = vpop.f32.mrb[91].mxu1  ;;  %v6245_v21 = vunpack.i.h.bf16 %v6243_v15  ;;  %v6244_v43 = vunpack.i.l.bf16 %v6243_v15  ;;  %6357 = vrot.lane.b32.xlu1 %v6346_v55, %s7177_s27  ;;  %v10831_v15 = vrot.slane %v8814_v57, 4 }
 0x20c   :  { %v1300_v42 = vmax.f32 %v1218_v41, 0.0  ;;  %v1309_v41 = vmax.f32 %v1231_v22, 0.0  ;;  %v2251_v20 = vsel %vm478_vm3, %v2227_v10, %v1816_v29  ;;  %v2125_v29 = vrot.slane %v8822_v49, 3 }
 0x20d   :  { %6372 = vrot.lane.b32.xlu0 %v6371_v47, %s7174_s2  ;;  %v2248_v55 = vsel %vm478_vm3, %v2224_v51, %v10831_v15  ;;  %v2275_v18 = vsel %vm349_vm1, %v2251_v20, %v1864_v34  ;;  %v8922_v6 = vmax.f32 %v8206_v24, %v6245_v21  ;;  %v8925_v40 = vmax.f32 %v8213_v62, %v6244_v43 }
 0x20e   :  { %v1366_v19 = vrot.slane %v1300_v42, 1  ;;  %v6248_v32 = vpop.permute.xlu0 %6247  ;;  %v1369_v5 = vrot.slane %v1309_v41, 1  ;;  %v10833_v10 = vrot.slane %v8814_v57, 6  ;;  %v2299_v24 = vsel %vm220_vm2, %v2275_v18, %v1912_v35 }
 0x20f   :  { %6362 = vrot.lane.b32.xlu1 %v6371_v47, %s7178_s28  ;;  %v6249_v11 = vunpack.i.l.bf16 %v6248_v32  ;;  %v8942_v43 = vsel %vm91_vm0, %v2299_v24, %v1960_v7  ;;  %v2128_v20 = vrot.slane %v8857_v17, 3 }
 0x210   :  { %v8887_v12 = vpop.f32.mrb[92].mxu1  ;;  %v8914_v0 = vmax.f32 %v1300_v42, %v1366_v19  ;;  %v1234_v19 = vadd.f32 %v8812_v46, %v7975_v31  ;;  %v6250_v42 = vunpack.i.h.bf16 %v6248_v32  ;;  %v8936_v21 = vmax.f32 %v1309_v41, %v1369_v5 }
 0x211   :  { %v1248_v13 = vpop.f32.mrb[93].mxu1  ;;  %6377 = vrot.lane.b32.xlu0 %v6371_v47, %s7176_s26  ;;  %v10834_v32 = vrot.slane %v8822_v49, 1  ;;  %v2347_v5 = vsel %vm2165_vm9, %v8857_v17, %v2032_v16  ;;  %v1247_v18 = vadd.f32 %v8887_v12, %v7975_v31 }
 0x212   :  { %v8896_v39 = vpop.f32.mrb[94].mxu1  ;;  %v8906_v13 = vadd.f32 %v8787_v59, %v7975_v31  ;;  %v2272_v59 = vsel %vm349_vm1, %v2248_v55, %v10832_v14  ;;  %v1312_v35 = vmax.f32 %v1234_v19, 0.0  ;;  %v2371_v51 = vsel %vm2190_vm10, %v2347_v5, %v2080_v50 }
 0x213   :  { %v1251_v22 = vpop.f32.mrb[95].mxu1  ;;  %v2296_v34 = vsel %vm220_vm2, %v2272_v59, %v10833_v10  ;;  %v2344_v57 = vsel %vm2165_vm9, %v8822_v49, %v10834_v32  ;;  %6367 = vrot.lane.b32.xlu1 %v6371_v47, %s7179_s0  ;;  %v1654_v7 = vrot.slane %v8914_v0, 1  ;;  %v8967_v16 = vsel %vm2215_vm11, %v2371_v51, %v2128_v20 }
 0x214   :  { %v8939_v62 = vsel %vm91_vm0, %v2296_v34, %v1957_v58  ;;  %v10835_v58 = vrot.slane %v8822_v49, 2  ;;  %v1242_v22 = vadd.f32 %v8851_v27, %v7975_v31  ;;  %v1306_v15 = vmax.f32 %v8906_v13, 0.0 }
 0x215   :  { %v6381_v46 = vpack.i.bf16 %v8942_v43, %v8939_v62  ;;  %v1462_v49 = vrot.slane %v1303_v45, 1  ;;  %v2557_v47 = vmax.f32 %v8242_v28, %v6250_v42  ;;  %v2556_v50 = vmax.f32 %v8257_v36, %v6249_v11 }
 0x216   :  { %v2368_v41 = vsel %vm2190_vm10, %v2344_v57, %v10835_v58  ;;  %v1657_v14 = vrot.slane %v8936_v21, 1  ;;  %v6391_v13 = vpack.i.bf16 %v8922_v6, %v8925_v40  ;;  %v1318_v59 = vmax.f32 %v1242_v22, 0.0 }
 0x217   :  { %6382 = vrot.lane.b32.xlu0 %v6381_v46, %s7172_s20  ;;  %v8964_v17 = vsel %vm2215_vm11, %v2368_v41, %v2125_v29  ;;  %v10836_v19 = vrot.slane %v8863_v4, 1  ;;  %v10837_v36 = vmax.f32 %v8867_v25, 0.0  ;;  %v1702_v42 = vrot.slane %v8914_v0, 2 }
 0x218   :  { %v6386_v27 = vpack.i.bf16 %v8967_v16, %v8964_v17  ;;  %v1465_v11 = vrot.slane %v1312_v35, 1  ;;  %v1372_v24 = vrot.slane %v1318_v59, 1  ;;  %v1321_v46 = vmax.f32 %v1247_v18, 0.0 }
 0x219   :  { %v6253_v55 = vpop.permute.xlu1 %6252  ;;  %v2180_v28 = vsel %vm2165_vm9, %v8863_v4, %v10836_v19  ;;  %v1555_v29 = vrot.slane %v10837_v36, 1  ;;  %v2183_v12 = vsel %vm2165_vm9, %v8914_v0, %v1654_v7  ;;  %v1558_v20 = vrot.slane %v1306_v15, 1 }
 0x21a   :  { %6387 = vrot.lane.b32.xlu1 %v6386_v27, %s7172_s20  ;;  %v6255_v10 = vunpack.i.h.bf16 %v6253_v55  ;;  %v6254_v34 = vunpack.i.l.bf16 %v6253_v55  ;;  %v1705_v32 = vrot.slane %v8936_v21, 2  ;;  %v6416_v57 = vpack.i.bf16 %v2557_v47, %v2556_v50 }
 0x21b   :  { %6392 = vrot.lane.b32.xlu0 %v6391_v13, %s7172_s20  ;;  %v1510_v5 = vmax.f32 %v1303_v45, %v1462_v49  ;;  %v2186_v58 = vsel %vm2165_vm9, %v8936_v21, %v1657_v14  ;;  %v1420_v41 = vmax.f32 %v1318_v59, %v1372_v24  ;;  %v10838_v51 = vrot.slane %v8863_v4, 2  ;;  %v10840_v49 = vld [vmem:[#allocation3_spill] sm:$0xff] }
 0x21c   :  { %v10839_v55 = vmov %v10837_v36  ;;  %v8999_v18 = vmax.f32 %v1312_v35, %v1465_v11  ;;  %v1468_v7 = vrot.slane %v1321_v46, 1  ;;  %v1750_v47 = vrot.slane %v8914_v0, 3 }
 0x21d   :  { %v2205_v22 = vsel %vm2190_vm10, %v2180_v28, %v10838_v51  ;;  %v8997_v27 = vmax.f32 %v10839_v55, %v1555_v29  ;;  %v9004_v45 = vmax.f32 %v8326_v52, %v6255_v10  ;;  %v9007_v50 = vmax.f32 %v10840_v49, %v6254_v34  ;;  %v6258_v0 = vpop.permute.xlu1 %6257 }
 0x21e   :  { %6417 = vrot.lane.b32.xlu1 %v6416_v57, %s7174_s2  ;;  %v1660_v14 = vrot.slane %v1420_v41, 1  ;;  %v2208_v25 = vsel %vm2190_vm10, %v2183_v12, %v1702_v42  ;;  %v9011_v59 = vmax.f32 %v1306_v15, %v1558_v20  ;;  %v2211_v35 = vsel %vm2190_vm10, %v2186_v58, %v1705_v32 }
 0x21f   :  { %6397 = vrot.lane.b32.xlu0 %v6391_v13, %s7175_s25  ;;  %v1822_v19 = vrot.slane %v1510_v5, 4  ;;  %v1870_v28 = vrot.slane %v1510_v5, 5  ;;  %v1753_v36 = vrot.slane %v8936_v21, 3  ;;  %v1918_v29 = vrot.slane %v1510_v5, 6 }
 0x220   :  { %v1825_v52 = vrot.slane %v8999_v18, 4  ;;  %v1708_v11 = vrot.slane %v1420_v41, 2  ;;  %v1516_v10 = vmax.f32 %v1321_v46, %v1468_v7  ;;  %v1873_v42 = vrot.slane %v8999_v18, 5 }
 0x221   :  { %v2236_v34 = vsel %vm2215_vm11, %v2211_v35, %v1753_v36  ;;  %v2189_v15 = vsel %vm2165_vm9, %v1420_v41, %v1660_v14  ;;  %v6426_v24 = vpack.i.bf16 %v9004_v45, %v9007_v50  ;;  %v6260_v21 = vunpack.i.h.bf16 %v6258_v0 }
 0x222   :  { %6422 = vrot.lane.b32.xlu1 %v6416_v57, %s7176_s26  ;;  %v6259_v12 = vunpack.i.l.bf16 %v6258_v0  ;;  %v10841_v20 = vrot.slane %v8863_v4, 3  ;;  %v1756_v46 = vrot.slane %v1420_v41, 3  ;;  %v1963_v58 = vrot.slane %v8874_v37, 7 }
 0x223   :  { %6402 = vrot.lane.b32.xlu0 %v6391_v13, %s7177_s27  ;;  %v2233_v51 = vsel %vm2215_vm11, %v2208_v25, %v1750_v47  ;;  %v10842_v55 = vrot.slane %v8874_v37, 4  ;;  %v2214_v13 = vsel %vm2190_vm10, %v2189_v15, %v1708_v11  ;;  %v1828_v49 = vrot.slane %v1516_v10, 4 }
 0x224   :  { %v2230_v32 = vsel %vm2215_vm11, %v2205_v22, %v10841_v20  ;;  %v2257_v14 = vsel %vm478_vm3, %v2233_v51, %v1822_v19  ;;  %v10843_v4 = vrot.slane %v8874_v37, 5  ;;  %v1876_v41 = vrot.slane %v1516_v10, 5  ;;  %v10845_v19 = vld [vmem:[#allocation4_spill] sm:$0xff]  ;;  %v10846_v20 = vld [vmem:[#allocation5_spill] sm:$0xff] }
 0x225   :  { %v2254_v7 = vsel %vm478_vm3, %v2230_v32, %v10842_v55  ;;  %v1966_v35 = vrot.slane %v1510_v5, 7  ;;  %v2281_v47 = vsel %vm349_vm1, %v2257_v14, %v1870_v28  ;;  %v10844_v25 = vrot.slane %v8874_v37, 6 }
 0x226   :  { %6427 = vrot.lane.b32.xlu1 %v6426_v24, %s7172_s20  ;;  %v2278_v22 = vsel %vm349_vm1, %v2254_v7, %v10843_v4  ;;  %v2305_v0 = vsel %vm220_vm2, %v2281_v47, %v1918_v29  ;;  %v2559_v15 = vmax.f32 %v10845_v19, %v6260_v21  ;;  %v2558_v32 = vmax.f32 %v10846_v20, %v6259_v12  ;;  %v10847_v19 = vld [vmem:[#allocation6_spill] sm:$0xff] }
 0x227   :  { %6407 = vrot.lane.b32.xlu0 %v6416_v57, %s7178_s28  ;;  %v2302_v36 = vsel %vm220_vm2, %v2278_v22, %v10844_v25  ;;  %v2239_v51 = vsel %vm2215_vm11, %v2214_v13, %v1756_v46  ;;  %v9050_v55 = vsel %vm91_vm0, %v2305_v0, %v1966_v35  ;;  %v1921_v5 = vrot.slane %v8999_v18, 6 }
 0x228   :  { %v9044_v11 = vsel %vm91_vm0, %v2302_v36, %v1963_v58  ;;  %v1924_v28 = vrot.slane %v1516_v10, 6  ;;  %v2260_v37 = vsel %vm478_vm3, %v2236_v34, %v1825_v52  ;;  %v2263_v29 = vsel %vm478_vm3, %v2239_v51, %v1828_v49 }
 0x229   :  { %v2038_v58 = vrot.slane %v9011_v59, 1  ;;  %v1969_v21 = vrot.slane %v8999_v18, 7  ;;  %v2284_v12 = vsel %vm349_vm1, %v2260_v37, %v1873_v42  ;;  %v2287_v46 = vsel %vm349_vm1, %v2263_v29, %v1876_v41  ;;  %v10848_v29 = vld [vmem:[#allocation7_spill] sm:$0xff] }
 0x22a   :  { %6432 = vrot.lane.b32.xlu1 %v6426_v24, %s7175_s25  ;;  %v1972_v7 = vrot.slane %v1516_v10, 7  ;;  %v2308_v13 = vsel %vm220_vm2, %v2284_v12, %v1921_v5  ;;  %v2311_v14 = vsel %vm220_vm2, %v2287_v46, %v1924_v28  ;;  %v2035_v4 = vrot.slane %v8997_v27, 1 }
 0x22b   :  { %6412 = vrot.lane.b32.xlu0 %v6416_v57, %s7179_s0  ;;  %v6451_v52 = vpack.i.bf16 %v2559_v15, %v2558_v32  ;;  %v9065_v34 = vsel %vm91_vm0, %v2308_v13, %v1969_v21  ;;  %v2086_v49 = vrot.slane %v9011_v59, 2  ;;  %v6263_v18 = vpop.permute.xlu0 %6262  ;;  %v2353_v10 = vsel %vm2165_vm9, %v9011_v59, %v2038_v58  ;;  %v10849_v21 = vld [vmem:[#allocation8_spill] sm:$0xff] }
 0x22c   :  { %v9070_v57 = vsel %vm91_vm0, %v2311_v14, %v1972_v7  ;;  %v2083_v42 = vrot.slane %v8997_v27, 2  ;;  %v6265_v22 = vunpack.i.h.bf16 %v6263_v18  ;;  %v6264_v41 = vunpack.i.l.bf16 %v6263_v18 }
 0x22d   :  { %v2350_v35 = vsel %vm2165_vm9, %v8997_v27, %v2035_v4  ;;  %v2377_v47 = vsel %vm2190_vm10, %v2353_v10, %v2086_v49  ;;  %v2131_v25 = vrot.slane %v8997_v27, 3  ;;  %v6461_v32 = vpack.i.bf16 %v9050_v55, %v9044_v11 }
 0x22e   :  { %6437 = vrot.lane.b32.xlu1 %v6426_v24, %s7177_s27  ;;  %v2134_v24 = vrot.slane %v9011_v59, 3  ;;  %v2374_v36 = vsel %vm2190_vm10, %v2350_v35, %v2083_v42  ;;  %v9085_v0 = vmax.f32 %v8430_v54, %v6265_v22  ;;  %v9088_v15 = vmax.f32 %v10847_v19, %v6264_v41 }
 0x22f   :  { %6452 = vrot.lane.b32.xlu0 %v6451_v52, %s7174_s2  ;;  %v6268_v20 = vpop.permute.xlu0 %6267  ;;  %v9098_v27 = vsel %vm2215_vm11, %v2374_v36, %v2131_v25  ;;  %v1250_v37 = vadd.f32 %v8896_v39, %v7975_v31  ;;  %v1239_v7 = vadd.f32 %v8841_v53, %v7975_v31  ;;  %v10850_v25 = vld [vmem:[#allocation9_spill] sm:$0xff] }
 0x230   :  { %v9093_v51 = vsel %vm2215_vm11, %v2377_v47, %v2134_v24  ;;  %v6270_v59 = vunpack.i.h.bf16 %v6268_v20  ;;  %v6269_v54 = vunpack.i.l.bf16 %v6268_v20  ;;  %v6476_v28 = vpack.i.bf16 %v9085_v0, %v9088_v15 }
 0x231   :  { %v6466_v5 = vpack.i.bf16 %v9093_v51, %v9098_v27  ;;  %v1324_v13 = vmax.f32 %v1250_v37, 0.0  ;;  %v1315_v49 = vmax.f32 %v1239_v7, 0.0 }
 0x232   :  { %6442 = vrot.lane.b32.xlu1 %v6451_v52, %s7178_s28  ;;  %v2561_v58 = vmax.f32 %v10848_v29, %v6270_v59  ;;  %v2560_v12 = vmax.f32 %v10849_v21, %v6269_v54  ;;  %v6957_v59 = vld [vmem:[%s10767_s3 + $0x4] ss:$8 sps:$4 sm:$0xff]  }
 0x233   :  { %6457 = vrot.lane.b32.xlu0 %v6451_v52, %s7176_s26  ;;  %v1564_v18 = vrot.slane %v1324_v13, 1  ;;  %v1561_v53 = vrot.slane %v1315_v49, 1  ;;  %4502 = vmatprep.subr.bf16.mxu0 %v6957_v59 }
 0x235   :  { %v1612_v41 = vmax.f32 %v1324_v13, %v1564_v18  ;;  %v1609_v47 = vmax.f32 %v1315_v49, %v1561_v53  ;;  %v6541_v49 = vpack.i.bf16 %v9070_v57, %v9065_v34  ;;  %v6962_v18 = vld [vmem:[%s10767_s3 + $0x10] ss:$8 sps:$4 sm:$0xff]   ;;  %v6963_v53 = vld [vmem:[%s10767_s3 + $0x24] ss:$8 sps:$4 sm:$0xff]  }
 0x236   :  { %6447 = vrot.lane.b32.xlu1 %v6451_v52, %s7179_s0  ;;  %v6496_v52 = vpack.i.bf16 %v2561_v58, %v2560_v12 }
 0x237   :  { %6462 = vrot.lane.b32.xlu0 %v6461_v32, %s7172_s20  ;;  %v2041_v36 = vrot.slane %v1609_v47, 1  ;;  %v2092_v20 = vrot.slane %v1612_v41, 2  ;;  %v2140_v12 = vrot.slane %v1612_v41, 3 }
 0x239   :  { %v2356_v37 = vsel %vm2165_vm9, %v1609_v47, %v2041_v36 }
 0x23a   :  { %6467 = vrot.lane.b32.xlu1 %v6466_v5, %s7172_s20  ;;  %v2089_v5 = vrot.slane %v1609_v47, 2 }
 0x23b   :  { %6477 = vrot.lane.b32.xlu0 %v6476_v28, %s7175_s25  ;;  %v6273_v46 = vpop.permute.xlu1 %6272 }
 0x23c   :  { %v6275_v14 = vunpack.i.h.bf16 %v6273_v46  ;;  %v6274_v4 = vunpack.i.l.bf16 %v6273_v46  ;;  %v2137_v46 = vrot.slane %v1609_v47, 3  ;;  %v2380_v7 = vsel %vm2190_vm10, %v2356_v37, %v2089_v5  ;;  %v6966_v47 = vld [vmem:[%s10767_s3 + $0x34] ss:$8 sps:$4 sm:$0xff]   ;;  %v6971_v5 = vld [vmem:[%s10767_s3 + $0x40] ss:$8 sps:$4 sm:$0xff]  }
 0x23e   :  { %6472 = vrot.lane.b32.xlu1 %v6476_v28, %s7172_s20  ;;  %v9117_v10 = vmax.f32 %v8541_v23, %v6275_v14  ;;  %v9120_v31 = vmax.f32 %v8538_v8, %v6274_v4  ;;  %v2044_v8 = vrot.slane %v1612_v41, 1  ;;  %v10851_v14 = vld [vmem:[#allocation10_spill] sm:$0xff] }
 0x23f   :  { %6482 = vrot.lane.b32.xlu0 %v6476_v28, %s7177_s27  ;;  %v6960_v28 = vld [vmem:[%s10767_s3 + $0x14] ss:$8 sps:$4 sm:$0xff]  }
 0x240   :  { %v6278_v39 = vpop.permute.xlu1 %6277  ;;  %v6511_v35 = vpack.i.bf16 %v9117_v10, %v9120_v31  ;;  %v2359_v54 = vsel %vm2165_vm9, %v1612_v41, %v2044_v8  ;;  %v10853_v8 = vld [vmem:[#allocation12_spill] sm:$0xff] }
 0x241   :  { %v6280_v42 = vunpack.i.h.bf16 %v6278_v39  ;;  %v6279_v22 = vunpack.i.l.bf16 %v6278_v39  ;;  %v2383_v21 = vsel %vm2190_vm10, %v2359_v54, %v2092_v20  ;;  %v6968_v20 = vld [vmem:[%s10767_s3 + $0x30] ss:$8 sps:$4 sm:$0xff]  }
 0x242   :  { %6497 = vrot.lane.b32.xlu1 %v6496_v52, %s7174_s2  ;;  %v9156_v39 = vsel %vm2215_vm11, %v2383_v21, %v2140_v12 }
 0x243   :  { %6487 = vrot.lane.b32.xlu0 %v6496_v52, %s7178_s28  ;;  %v2563_v24 = vmax.f32 %v8568_v63, %v6280_v42  ;;  %v2562_v23 = vmax.f32 %v10850_v25, %v6279_v22  ;;  %v6959_v63 = vld [vmem:[%s10767_s3] ss:$8 sps:$4 sm:$0xff]  }
 0x244   :  { %4503 = vmatpush1.bf16.msra.mxu0 %v6959_v63  ;;  %v10852_v25 = vld [vmem:[#allocation11_spill] sm:$0xff] }
 0x245   :  { %v6531_v19 = vpack.i.bf16 %v2563_v24, %v2562_v23  ;;  %4504 = vmatprep.subr.bf16.mxu0 %v6960_v28  ;;  %v6972_v28 = vld [vmem:[%s10767_s3 + $0x54] ss:$8 sps:$4 sm:$0xff]  }
 0x246   :  { %6502 = vrot.lane.b32.xlu1 %v6496_v52, %s7176_s26 }
 0x247   :  { %6492 = vrot.lane.b32.xlu0 %v6496_v52, %s7179_s0 }
 0x248   :  { %4505 = vmatpush1.bf16.msra.mxu0 %v6962_v18 }
 0x249   :  { %4506 = vmatprep.subr.bf16.mxu0 %v6963_v53 }
 0x24a   :  { %6512 = vrot.lane.b32.xlu1 %v6511_v35, %s7175_s25 }
 0x24b   :  { %6507 = vrot.lane.b32.xlu0 %v6511_v35, %s7172_s20 }
 0x24d   :  { %v6283_v32 = vpop.permute.xlu0 %6282 }
 0x24e   :  { %6517 = vrot.lane.b32.xlu1 %v6511_v35, %s7177_s27  ;;  %v6285_v29 = vunpack.i.h.bf16 %v6283_v32  ;;  %v6284_v58 = vunpack.i.l.bf16 %v6283_v32  ;;  %v6965_v35 = vld [vmem:[%s10767_s3 + $0x20] ss:$8 sps:$4 sm:$0xff]   ;;  %v6969_v32 = vld [vmem:[%s10767_s3 + $0x44] ss:$8 sps:$4 sm:$0xff]  }
 0x24f   :  { %6532 = vrot.lane.b32.xlu0 %v6531_v19, %s7174_s2  ;;  %4507 = vmatpush1.bf16.msra.mxu0 %v6965_v35 }
 0x250   :  { %v9148_v13 = vmax.f32 %v8633_v38, %v6285_v29  ;;  %v9151_v4 = vmax.f32 %v10851_v14, %v6284_v58  ;;  %v9167_v38 = vsel %vm2215_vm11, %v2380_v7, %v2137_v46  ;;  %4508 = vmatprep.subr.bf16.mxu0 %v6966_v47  ;;  %v6974_v29 = vld [vmem:[%s10767_s3 + $0x50] ss:$8 sps:$4 sm:$0xff]   ;;  %v6975_v58 = vld [vmem:[%s10767_s3 + $0x64] ss:$8 sps:$4 sm:$0xff]   ;;  %v6977_v14 = vld [vmem:[%s10767_s3 + $0x60] ss:$8 sps:$4 sm:$0xff]  }
 0x251   :  { %v6546_v41 = vpack.i.bf16 %v9156_v39, %v9167_v38  ;;  %v6980_v47 = vld [vmem:[%s10767_s3 + $0x70] ss:$8 sps:$4 sm:$0xff]  }
 0x252   :  { %6522 = vrot.lane.b32.xlu1 %v6531_v19, %s7178_s28  ;;  %v6556_v24 = vpack.i.bf16 %v9148_v13, %v9151_v4 }
 0x253   :  { %6537 = vrot.lane.b32.xlu0 %v6531_v19, %s7176_s26  ;;  %4509 = vmatpush1.bf16.msra.mxu0 %v6968_v20 }
 0x254   :  { %v6288_v52 = vpop.permute.xlu0 %6287  ;;  %4510 = vmatprep.subr.bf16.mxu0 %v6969_v32 }
 0x255   :  { %v6290_v42 = vunpack.i.h.bf16 %v6288_v52  ;;  %v6289_v22 = vunpack.i.l.bf16 %v6288_v52 }
 0x256   :  { %6527 = vrot.lane.b32.xlu1 %v6531_v19, %s7179_s0 }
 0x257   :  { %6542 = vrot.lane.b32.xlu0 %v6541_v49, %s7172_s20  ;;  %v2565_v23 = vmax.f32 %v10852_v25, %v6290_v42  ;;  %v2564_v36 = vmax.f32 %v10853_v8, %v6289_v22  ;;  %4511 = vmatpush1.bf16.msra.mxu0 %v6971_v5  ;;  %v6983_v8 = vld [vmem:[%s10767_s3 + $0x80] ss:$8 sps:$4 sm:$0xff]  }
 0x258   :  { %4512 = vmatprep.subr.bf16.mxu0 %v6972_v28 }
 0x259   :  { %v6576_v63 = vpack.i.bf16 %v2565_v23, %v2564_v36  ;;  %v6984_v36 = vld [vmem:[%s10767_s3 + $0x94] ss:$8 sps:$4 sm:$0xff]  }
 0x25a   :  { %6547 = vrot.lane.b32.xlu1 %v6546_v41, %s7172_s20  ;;  %v6293_v19 = vpop.permute.xlu1 %6292 }
 0x25b   :  { %6557 = vrot.lane.b32.xlu0 %v6556_v24, %s7175_s25  ;;  %v6295_v59 = vunpack.i.h.bf16 %v6293_v19  ;;  %v6294_v54 = vunpack.i.l.bf16 %v6293_v19  ;;  %4513 = vmatpush1.bf16.msra.mxu0 %v6974_v29 }
 0x25c   :  { %4514 = vmatprep.subr.bf16.mxu0 %v6975_v58 }
 0x25d   :  { %v9206_v21 = vmax.f32 %v8708_v3, %v6295_v59  ;;  %v9209_v12 = vmax.f32 %v8716_v60, %v6294_v54  ;;  %v6978_v3 = vld [vmem:[%s10767_s3 + $0x74] ss:$8 sps:$4 sm:$0xff]   ;;  %v6986_v59 = vld [vmem:[%s10767_s3 + $0x90] ss:$8 sps:$4 sm:$0xff]   ;;  %v6987_v54 = vld [vmem:[%s10767_s3 + $0xa4] ss:$8 sps:$4 sm:$0xff]  }
 0x25e   :  { %6552 = vrot.lane.b32.xlu1 %v6556_v24, %s7172_s20  ;;  %v6298_v37 = vpop.permute.xlu1 %6297 }
 0x25f   :  { %6562 = vrot.lane.b32.xlu0 %v6556_v24, %s7177_s27  ;;  %v6300_v46 = vunpack.i.h.bf16 %v6298_v37  ;;  %v6299_v7 = vunpack.i.l.bf16 %v6298_v37  ;;  %v6591_v60 = vpack.i.bf16 %v9206_v21, %v9209_v12  ;;  %4515 = vmatpush1.bf16.msra.mxu0 %v6977_v14 }
 0x260   :  { %4516 = vmatprep.subr.bf16.mxu0 %v6978_v3 }
 0x261   :  { %v2567_v49 = vmax.f32 %v8720_v44, %v6300_v46  ;;  %v2566_v18 = vmax.f32 %v8731_v30, %v6299_v7  ;;  %v6981_v44 = vld [vmem:[%s10767_s3 + $0x84] ss:$8 sps:$4 sm:$0xff]  }
 0x262   :  { %6577 = vrot.lane.b32.xlu1 %v6576_v63, %s7174_s2 }
 0x263   :  { %6567 = vrot.lane.b32.xlu0 %v6576_v63, %s7178_s28  ;;  %v6611_v35 = vpack.i.bf16 %v2567_v49, %v2566_v18  ;;  %4517 = vmatpush1.bf16.msra.mxu0 %v6980_v47 }
 0x264   :  { %4518 = vmatprep.subr.bf16.mxu0 %v6981_v44 }
 0x266   :  { %6582 = vrot.lane.b32.xlu1 %v6576_v63, %s7176_s26 }
 0x267   :  { %6572 = vrot.lane.b32.xlu0 %v6576_v63, %s7179_s0  ;;  %v6303_v52 = vpop.permute.xlu0 %6302  ;;  %4519 = vmatpush1.bf16.msra.mxu0 %v6983_v8  ;;  %v6989_v63 = vld [vmem:[%s10767_s3 + $0xa0] ss:$8 sps:$4 sm:$0xff]  }
 0x268   :  { %v6308_v53 = vpop.permute.xlu1 %6307  ;;  %v6305_v22 = vunpack.i.h.bf16 %v6303_v52  ;;  %v6304_v41 = vunpack.i.l.bf16 %v6303_v52  ;;  %4520 = vmatprep.subr.bf16.mxu0 %v6984_v36 }
 0x269   :  { %v6310_v19 = vunpack.i.h.bf16 %v6308_v53  ;;  %v6309_v20 = vunpack.i.l.bf16 %v6308_v53 }
 0x26a   :  { %6592 = vrot.lane.b32.xlu1 %v6591_v60, %s7175_s25  ;;  %v9236_v25 = vmax.f32 %v8767_v1, %v6305_v22  ;;  %v9239_v23 = vmax.f32 %v8747_v9, %v6304_v41 }
 0x26b   :  { %6587 = vrot.lane.b32.xlu0 %v6591_v60, %s7172_s20  ;;  %v6313_v42 = vpop.permute.xlu0 %6312  ;;  %v9264_v5 = vmax.f32 %v8775_v33, %v6310_v19  ;;  %v9268_v29 = vmax.f32 %v8772_v56, %v6309_v20  ;;  %4521 = vmatpush1.bf16.msra.mxu0 %v6986_v59  ;;  %v6990_v33 = vld [vmem:[%s10767_s3 + $0xb4] ss:$8 sps:$4 sm:$0xff]   ;;  %v6992_v56 = vld [vmem:[%s10767_s3 + $0xb0] ss:$8 sps:$4 sm:$0xff]  }
 0x26c   :  { %v6621_v9 = vpack.i.bf16 %v9236_v25, %v9239_v23  ;;  %v6315_v28 = vunpack.i.h.bf16 %v6313_v42  ;;  %v6314_v37 = vunpack.i.l.bf16 %v6313_v42  ;;  %4522 = vmatprep.subr.bf16.mxu0 %v6987_v54  ;;  %v6993_v42 = vld [vmem:[%s10767_s3 + $0xc4] ss:$8 sps:$4 sm:$0xff]  }
 0x26d   :  { %v9233_v30 = vpop.permute.xlu1 %6337 }
 0x26e   :  { %6597 = vrot.lane.b32.xlu1 %v6591_v60, %s7177_s27  ;;  %v3178_v18 = vsel %vm3176_vm12, %v8790_v2, %v6315_v28  ;;  %v3177_v53 = vsel %vm3176_vm12, %v8793_v61, %v6314_v37  ;;  %v9291_v2 = vpack.i.bf16 %v9264_v5, %v9268_v29  ;;  %v6340_v36 = vunpack.i.h.bf16 %v9233_v30 }
 0x26f   :  { %6612 = vrot.lane.b32.xlu0 %v6611_v35, %s7174_s2  ;;  %v6318_v24 = vpop.permute.xlu0 %6317  ;;  %4523 = vmatpush1.bf16.msra.mxu0 %v6989_v63  ;;  %v6339_v19 = vunpack.i.l.bf16 %v9233_v30 }
 0x270   :  { %v6320_v58 = vunpack.i.h.bf16 %v6318_v24  ;;  %v6319_v46 = vunpack.i.l.bf16 %v6318_v24  ;;  %4524 = vmatprep.subr.bf16.mxu0 %v6990_v33  ;;  %v6996_v33 = vld [vmem:[%s10767_s3 + $0xd4] ss:$8 sps:$4 sm:$0xff]  }
 0x271   :  { %v9249_v1 = vpop.permute.xlu1 %6342 }
 0x272   :  { %6602 = vrot.lane.b32.xlu1 %v6611_v35, %s7178_s28  ;;  %v3194_v22 = vsel %vm3193_vm13, %v3177_v53, %v6319_v46  ;;  %v3195_v41 = vsel %vm3193_vm13, %v3178_v18, %v6320_v58  ;;  %v6344_v59 = vunpack.i.l.bf16 %v9249_v1  ;;  %v6995_v46 = vld [vmem:[%s10767_s3 + $0xc0] ss:$8 sps:$4 sm:$0xff]  }
 0x273   :  { %6617 = vrot.lane.b32.xlu0 %v6611_v35, %s7176_s26  ;;  %v6323_v32 = vpop.permute.xlu0 %6322  ;;  %4525 = vmatpush1.bf16.msra.mxu0 %v6992_v56 }
 0x274   :  { %v6325_v3 = vunpack.i.h.bf16 %v6323_v32  ;;  %v6324_v52 = vunpack.i.l.bf16 %v6323_v32  ;;  %4526 = vmatprep.subr.bf16.mxu0 %v6993_v42  ;;  %v6998_v42 = vld [vmem:[%s10767_s3 + $0xd0] ss:$8 sps:$4 sm:$0xff]  }
 0x275   :  { %v9270_v7 = vpop.permute.xlu1 %6347 }
 0x276   :  { %6607 = vrot.lane.b32.xlu1 %v6611_v35, %s7179_s0  ;;  %v3211_v61 = vsel %vm3210_vm14, %v3194_v22, %v6324_v52  ;;  %v3212_v44 = vsel %vm3210_vm14, %v3195_v41, %v6325_v3 }
 0x277   :  { %6622 = vrot.lane.b32.xlu0 %v6621_v9, %s7172_s20  ;;  %v6328_v14 = vpop.permute.xlu0 %6327  ;;  %4527 = vmatpush1.bf16.msra.mxu0 %v6995_v46  ;;  %v7001_v46 = vld [vmem:[%s10767_s3 + $0xe0] ss:$8 sps:$4 sm:$0xff]  }
 0x278   :  { %v6330_v60 = vunpack.i.h.bf16 %v6328_v14  ;;  %v6329_v49 = vunpack.i.l.bf16 %v6328_v14  ;;  %v6349_v14 = vunpack.i.l.bf16 %v9270_v7  ;;  %4528 = vmatprep.subr.bf16.mxu0 %v6996_v33 }
 0x279   :  { %v6353_v35 = vpop.permute.xlu1 %6352 }
 0x27a   :  { %6627 = vrot.lane.b32.xlu1 %v6621_v9, %s7175_s25  ;;  %v3228_v20 = vsel %vm3227_vm15, %v3211_v61, %v6329_v49  ;;  %v3229_v32 = vsel %vm3227_vm15, %v3212_v44, %v6330_v60  ;;  %v6355_v49 = vunpack.i.h.bf16 %v6353_v35  ;;  %v6354_v56 = vunpack.i.l.bf16 %v6353_v35 }
 0x27b   :  { %6632 = vrot.lane.b32.xlu0 %v6621_v9, %s7177_s27  ;;  %v6333_v47 = vpop.permute.xlu0 %6332  ;;  %v6345_v9 = vunpack.i.h.bf16 %v9249_v1  ;;  %v6350_v1 = vunpack.i.h.bf16 %v9270_v7  ;;  %4529 = vmatpush1.bf16.msra.mxu0 %v6998_v42 }
 0x27c   :  { %v6335_v24 = vunpack.i.h.bf16 %v6333_v47  ;;  %v6334_v8 = vunpack.i.l.bf16 %v6333_v47 }
 0x27d   :  { %v6358_v30 = vpop.permute.xlu1 %6357  ;;  %v3180_v44 = vsel %vm3176_vm12, %v8825_v26, %v6350_v1 }
 0x27e   :  { %v3245_v54 = vsel %vm3244_vm4, %v3228_v20, %v6334_v8  ;;  %v3246_v63 = vsel %vm3244_vm4, %v3229_v32, %v6335_v24  ;;  %v6359_v18 = vunpack.i.l.bf16 %v6358_v30  ;;  %v3179_v24 = vsel %vm3176_vm12, %v8828_v48, %v6349_v14 }
 0x27f   :  { %6637 = vrot.lane.b32.xlu0 %v9291_v2, %s7172_s20  ;;  %v3262_v28 = vsel %vm3261_vm5, %v3245_v54, %v6339_v19  ;;  %v3263_v37 = vsel %vm3261_vm5, %v3246_v63, %v6340_v36  ;;  %v6373_v58 = vpop.permute.xlu0 %6372  ;;  %v6360_v8 = vunpack.i.h.bf16 %v6358_v30  ;;  %v6999_v19 = vld [vmem:[%s10767_s3 + $0xe4] ss:$8 sps:$4 sm:$0xff]   ;;  %v3196_v26 = vsel %vm3193_vm13, %v3179_v24, %v6354_v56 }
 0x280   :  { %v9313_v3 = vsel %vm682_vm7, %v3262_v28, %v6344_v59  ;;  %v9316_v52 = vsel %vm682_vm7, %v3263_v37, %v6345_v9  ;;  %v3197_v48 = vsel %vm3193_vm13, %v3180_v44, %v6355_v49  ;;  %v3213_v54 = vsel %vm3210_vm14, %v3196_v26, %v6359_v18  ;;  %4530 = vmatprep.subr.bf16.mxu0 %v6999_v19 }
 0x281   :  { %v3647_v60 = vrot.slane %v9316_v52, 4  ;;  %v3542_v7 = vrot.slane %v9313_v3, 3  ;;  %v6363_v53 = vpop.permute.xlu1 %6362  ;;  %v3543_v41 = vrot.slane %v9316_v52, 3  ;;  %v3478_v47 = vrot.slane %v9313_v3, 2  ;;  %4531 = vmatpush1.bf16.msra.mxu0 %v7001_v46 }
 0x282   :  { %v3479_v61 = vrot.slane %v9316_v52, 2  ;;  %v3646_v35 = vrot.slane %v9313_v3, 4  ;;  %v6365_v36 = vunpack.i.h.bf16 %v6363_v53  ;;  %v6364_v20 = vunpack.i.l.bf16 %v6363_v53 }
 0x283   :  { %6652 = vrot.lane.b32.xlu0 %v9291_v2, %s7177_s27  ;;  %v6378_v22 = vpop.permute.xlu0 %6377  ;;  %v9340_v32 = vsel %vm349_vm1, %v3542_v7, %v3543_v41  ;;  %v6375_v63 = vunpack.i.h.bf16 %v6373_v58  ;;  %v6374_v28 = vunpack.i.l.bf16 %v6373_v58  ;;  %v3374_v30 = vrot.slane %v9313_v3, 1  ;;  %v7002_v58 = vld [vmem:[%s10767_s3 + $0xf4] ss:$8 sps:$4 sm:$0xff]  }
 0x284   :  { %v9343_v9 = vsel %vm220_vm2, %v3478_v47, %v3479_v61  ;;  %v9346_v59 = vsel %vm478_vm3, %v3646_v35, %v3647_v60  ;;  %v3214_v1 = vsel %vm3210_vm14, %v3197_v48, %v6360_v8  ;;  %v3375_v56 = vrot.slane %v9316_v52, 1  ;;  %4532 = vmatprep.subr.bf16.mxu0 %v7002_v58  ;;  %v7004_v48 = vld [vmem:[%s10767_s3 + $0xf0] ss:$8 sps:$4 sm:$0xff]  }
 0x285   :  { %10854 = vst [vmem:[#allocation3_spill] sm:$0xff] %v9346_v59  ;;  %v6368_v37 = vpop.permute.xlu1 %6367  ;;  %v3230_v49 = vsel %vm3227_vm15, %v3213_v54, %v6364_v20  ;;  %v3231_v18 = vsel %vm3227_vm15, %v3214_v1, %v6365_v36  ;;  %v6380_v42 = vunpack.i.h.bf16 %v6378_v22  ;;  %v6379_v41 = vunpack.i.l.bf16 %v6378_v22  ;;  %4533 = vmatpush1.bf16.msra.mxu0 %v7004_v48 }
 0x286   :  { %v6370_v14 = vunpack.i.h.bf16 %v6368_v37  ;;  %v6369_v33 = vunpack.i.l.bf16 %v6368_v37 }
 0x288   :  { %v3247_v47 = vsel %vm3244_vm4, %v3230_v49, %v6369_v33  ;;  %v3248_v61 = vsel %vm3244_vm4, %v3231_v18, %v6370_v14  ;;  %v3376_v14 = vsel %vm91_vm0, %v3374_v30, %v3375_v56 }
 0x289   :  { %v6383_v60 = vpop.permute.xlu0 %6382  ;;  %v3264_v35 = vsel %vm3261_vm5, %v3247_v47, %v6374_v28  ;;  %v3265_v52 = vsel %vm3261_vm5, %v3248_v61, %v6375_v63 }
 0x28a   :  { %v6385_v7 = vunpack.i.h.bf16 %v6383_v60  ;;  %v6384_v53 = vunpack.i.l.bf16 %v6383_v60  ;;  %v9373_v36 = vsel %vm682_vm7, %v3264_v35, %v6379_v41  ;;  %v3281_v22 = vsel %vm682_vm7, %v3265_v52, %v6380_v42 }
 0x28b   :  { %v3380_v63 = vrot.slane %v9373_v36, 1  ;;  %v3381_v28 = vrot.slane %v3281_v22, 1  ;;  %v3653_v60 = vrot.slane %v3281_v22, 4  ;;  %v3484_v58 = vrot.slane %v9373_v36, 2 }
 0x28c   :  { %v9367_v44 = vmax.f32 %v8942_v43, %v6385_v7  ;;  %v9370_v24 = vmax.f32 %v8939_v62, %v6384_v53  ;;  %v6388_v8 = vpop.permute.xlu1 %6387  ;;  %v3485_v49 = vrot.slane %v3281_v22, 2  ;;  %v3548_v7 = vrot.slane %v9373_v36, 3 }
 0x28d   :  { %v6390_v19 = vunpack.i.h.bf16 %v6388_v8  ;;  %v6389_v20 = vunpack.i.l.bf16 %v6388_v8  ;;  %v6393_v26 = vpop.permute.xlu0 %6392  ;;  %v3382_v33 = vsel %vm91_vm0, %v3380_v63, %v3381_v28  ;;  %v3549_v30 = vrot.slane %v3281_v22, 3 }
 0x28e   :  { %v6661_v43 = vpack.i.bf16 %v9367_v44, %v9370_v24  ;;  %v9403_v53 = vsel %vm220_vm2, %v3484_v58, %v3485_v49  ;;  %v3652_v42 = vrot.slane %v9373_v36, 4  ;;  %v6395_v35 = vunpack.i.h.bf16 %v6393_v26 }
 0x28f   :  { %v9382_v62 = vmax.f32 %v8967_v16, %v6390_v19  ;;  %v9385_v54 = vmax.f32 %v8964_v17, %v6389_v20  ;;  %v6641_v16 = vpack.i.bf16 %v3382_v33, %v3376_v14  ;;  %v9409_v47 = vsel %vm349_vm1, %v3548_v7, %v3549_v30 }
 0x290   :  { %6662 = vrot.lane.b32.xlu0 %v6661_v43, %s7175_s25  ;;  %v6418_v37 = vpop.permute.xlu1 %6417  ;;  %v9412_v61 = vsel %vm478_vm3, %v3652_v42, %v3653_v60  ;;  %v6394_v52 = vunpack.i.l.bf16 %v6393_v26 }
 0x291   :  { %v6398_v46 = vpop.permute.xlu0 %6397  ;;  %v9391_v1 = vpack.i.bf16 %v9382_v62, %v9385_v54  ;;  %6642 = vrot.lane.b32.xlu1 %v6641_v16, %s7178_s28  ;;  %10855 = vst [vmem:[#allocation4_spill] sm:$0xff] %v9412_v61  ;;  %v3182_v16 = vsel %vm3176_vm12, %v8922_v6, %v6395_v35  ;;  %v6420_v42 = vunpack.i.h.bf16 %v6418_v37 }
 0x292   :  { %v6400_v19 = vunpack.i.h.bf16 %v6398_v46  ;;  %v6399_v20 = vunpack.i.l.bf16 %v6398_v46  ;;  %v3181_v26 = vsel %vm3176_vm12, %v8925_v40, %v6394_v52 }
 0x294   :  { %6677 = vrot.lane.b32.xlu0 %v9391_v1, %s7175_s25  ;;  %v6423_v18 = vpop.permute.xlu1 %6422  ;;  %v3198_v60 = vsel %vm3193_vm13, %v3181_v26, %v6399_v20  ;;  %v3199_v58 = vsel %vm3193_vm13, %v3182_v16, %v6400_v19 }
 0x295   :  { %v6403_v56 = vpop.permute.xlu0 %6402  ;;  %6647 = vrot.lane.b32.xlu1 %v9291_v2, %s7175_s25  ;;  %v6425_v35 = vunpack.i.h.bf16 %v6423_v18  ;;  %v6424_v52 = vunpack.i.l.bf16 %v6423_v18 }
 0x296   :  { %v6405_v63 = vunpack.i.h.bf16 %v6403_v56  ;;  %v6404_v28 = vunpack.i.l.bf16 %v6403_v56 }
 0x298   :  { %v6428_v8 = vpop.permute.xlu1 %6427  ;;  %v3215_v46 = vsel %vm3210_vm14, %v3198_v60, %v6404_v28  ;;  %v3216_v7 = vsel %vm3210_vm14, %v3199_v58, %v6405_v63 }
 0x299   :  { %v6408_v48 = vpop.permute.xlu0 %6407  ;;  %6657 = vrot.lane.b32.xlu1 %v6661_v43, %s7172_s20  ;;  %v6429_v28 = vunpack.i.l.bf16 %v6428_v8  ;;  %v6430_v18 = vunpack.i.h.bf16 %v6428_v8 }
 0x29a   :  { %v6410_v14 = vunpack.i.h.bf16 %v6408_v48  ;;  %v6409_v33 = vunpack.i.l.bf16 %v6408_v48  ;;  %v6419_v48 = vunpack.i.l.bf16 %v6418_v37 }
 0x29c   :  { %v6433_v2 = vpop.permute.xlu1 %6432  ;;  %v3232_v6 = vsel %vm3227_vm15, %v3215_v46, %v6409_v33  ;;  %v3233_v40 = vsel %vm3227_vm15, %v3216_v7, %v6410_v14 }
 0x29d   :  { %v6413_v49 = vpop.permute.xlu0 %6412  ;;  %6667 = vrot.lane.b32.xlu1 %v6661_v43, %s7177_s27  ;;  %v6435_v33 = vunpack.i.h.bf16 %v6433_v2  ;;  %v6434_v60 = vunpack.i.l.bf16 %v6433_v2 }
 0x29e   :  { %v6415_v30 = vunpack.i.h.bf16 %v6413_v49  ;;  %v6414_v56 = vunpack.i.l.bf16 %v6413_v49 }
 0x2a0   :  { %v3249_v22 = vsel %vm3244_vm4, %v3232_v6, %v6414_v56  ;;  %v3250_v20 = vsel %vm3244_vm4, %v3233_v40, %v6415_v30  ;;  %v6438_v19 = vpop.permute.xlu1 %6437  ;;  %v3183_v30 = vsel %vm3176_vm12, %v9007_v50, %v6429_v28 }
 0x2a1   :  { %v3266_v63 = vsel %vm3261_vm5, %v3249_v22, %v6419_v48  ;;  %v3267_v16 = vsel %vm3261_vm5, %v3250_v20, %v6420_v42  ;;  %v6453_v26 = vpop.permute.xlu0 %6452  ;;  %v6439_v58 = vunpack.i.l.bf16 %v6438_v19  ;;  %6672 = vrot.lane.b32.xlu1 %v9391_v1, %s7172_s20  ;;  %v6440_v56 = vunpack.i.h.bf16 %v6438_v19 }
 0x2a2   :  { %v9435_v37 = vsel %vm682_vm7, %v3266_v63, %v6424_v52  ;;  %v9438_v14 = vsel %vm682_vm7, %v3267_v16, %v6425_v35  ;;  %v3184_v35 = vsel %vm3176_vm12, %v9004_v45, %v6430_v18  ;;  %v3200_v52 = vsel %vm3193_vm13, %v3183_v30, %v6434_v60 }
 0x2a3   :  { %v3554_v49 = vrot.slane %v9435_v37, 3  ;;  %v3555_v22 = vrot.slane %v9438_v14, 3  ;;  %v3490_v46 = vrot.slane %v9435_v37, 2  ;;  %v3491_v7 = vrot.slane %v9438_v14, 2 }
 0x2a4   :  { %v6443_v43 = vpop.permute.xlu1 %6442  ;;  %v3658_v2 = vrot.slane %v9435_v37, 4  ;;  %v3659_v20 = vrot.slane %v9438_v14, 4  ;;  %v3201_v50 = vsel %vm3193_vm13, %v3184_v35, %v6435_v33  ;;  %v3217_v19 = vsel %vm3210_vm14, %v3200_v52, %v6439_v58 }
 0x2a5   :  { %v6458_v8 = vpop.permute.xlu0 %6457  ;;  %v6445_v42 = vunpack.i.h.bf16 %v6443_v43  ;;  %v6444_v48 = vunpack.i.l.bf16 %v6443_v43  ;;  %v9450_v6 = vsel %vm349_vm1, %v3554_v49, %v3555_v22  ;;  %v9453_v40 = vsel %vm220_vm2, %v3490_v46, %v3491_v7  ;;  %6682 = vrot.lane.b32.xlu1 %v9391_v1, %s7177_s27 }
 0x2a6   :  { %v6455_v28 = vunpack.i.h.bf16 %v6453_v26  ;;  %v6454_v63 = vunpack.i.l.bf16 %v6453_v26  ;;  %v3218_v43 = vsel %vm3210_vm14, %v3201_v50, %v6440_v56  ;;  %v9465_v45 = vsel %vm478_vm3, %v3658_v2, %v3659_v20 }
 0x2a7   :  { %10856 = vst [vmem:[#allocation5_spill] sm:$0xff] %v9465_v45  ;;  %v3234_v18 = vsel %vm3227_vm15, %v3217_v19, %v6444_v48  ;;  %v3235_v33 = vsel %vm3227_vm15, %v3218_v43, %v6445_v42  ;;  %v6460_v7 = vunpack.i.h.bf16 %v6458_v8  ;;  %v6459_v26 = vunpack.i.l.bf16 %v6458_v8 }
 0x2a8   :  { %v6448_v16 = vpop.permute.xlu1 %6447 }
 0x2a9   :  { %v6450_v49 = vunpack.i.h.bf16 %v6448_v16  ;;  %v6449_v22 = vunpack.i.l.bf16 %v6448_v16  ;;  %v6463_v46 = vpop.permute.xlu0 %6462 }
 0x2aa   :  { %v6465_v60 = vunpack.i.h.bf16 %v6463_v46  ;;  %v6464_v58 = vunpack.i.l.bf16 %v6463_v46 }
 0x2ab   :  { %v3251_v30 = vsel %vm3244_vm4, %v3234_v18, %v6449_v22  ;;  %v3252_v1 = vsel %vm3244_vm4, %v3235_v33, %v6450_v49 }
 0x2ac   :  { %v3268_v56 = vsel %vm3261_vm5, %v3251_v30, %v6454_v63  ;;  %v3269_v35 = vsel %vm3261_vm5, %v3252_v1, %v6455_v28  ;;  %v9474_v52 = vmax.f32 %v9050_v55, %v6465_v60  ;;  %v9477_v2 = vmax.f32 %v9044_v11, %v6464_v58  ;;  %v6468_v48 = vpop.permute.xlu1 %6467 }
 0x2ad   :  { %v9480_v42 = vsel %vm682_vm7, %v3268_v56, %v6459_v26  ;;  %v3285_v8 = vsel %vm682_vm7, %v3269_v35, %v6460_v7  ;;  %v6470_v20 = vunpack.i.h.bf16 %v6468_v48  ;;  %v6469_v50 = vunpack.i.l.bf16 %v6468_v48  ;;  %v6478_v19 = vpop.permute.xlu0 %6477 }
 0x2ae   :  { %v6686_v63 = vpack.i.bf16 %v9474_v52, %v9477_v2  ;;  %v3386_v11 = vrot.slane %v9435_v37, 1  ;;  %v3392_v16 = vrot.slane %v9480_v42, 1  ;;  %v3393_v49 = vrot.slane %v3285_v8, 1 }
 0x2af   :  { %v9486_v28 = vmax.f32 %v9093_v51, %v6470_v20  ;;  %v9489_v55 = vmax.f32 %v9098_v27, %v6469_v50  ;;  %v3560_v46 = vrot.slane %v9480_v42, 3  ;;  %v3561_v51 = vrot.slane %v3285_v8, 3 }
 0x2b0   :  { %6687 = vrot.lane.b32.xlu0 %v6686_v63, %s7172_s20  ;;  %6692 = vrot.lane.b32.xlu1 %v6686_v63, %s7175_s25  ;;  %v6473_v43 = vpop.permute.xlu1 %6472  ;;  %v3387_v58 = vrot.slane %v9438_v14, 1  ;;  %v6480_v7 = vunpack.i.h.bf16 %v6478_v19  ;;  %v6479_v26 = vunpack.i.l.bf16 %v6478_v19  ;;  %v3394_v56 = vsel %vm91_vm0, %v3392_v16, %v3393_v49 }
 0x2b1   :  { %v6475_v18 = vunpack.i.h.bf16 %v6473_v43  ;;  %v6474_v33 = vunpack.i.l.bf16 %v6473_v43  ;;  %v6483_v27 = vpop.permute.xlu0 %6482  ;;  %v6711_v60 = vpack.i.bf16 %v9486_v28, %v9489_v55  ;;  %v9507_v35 = vsel %vm349_vm1, %v3560_v46, %v3561_v51 }
 0x2b2   :  { %v3496_v14 = vrot.slane %v9480_v42, 2  ;;  %v3497_v20 = vrot.slane %v3285_v8, 2  ;;  %v6485_v50 = vunpack.i.h.bf16 %v6483_v27  ;;  %v6484_v16 = vunpack.i.l.bf16 %v6483_v27 }
 0x2b3   :  { %v3186_v30 = vsel %vm3176_vm12, %v9085_v0, %v6475_v18  ;;  %v3185_v1 = vsel %vm3176_vm12, %v9088_v15, %v6474_v33  ;;  %v3388_v15 = vsel %vm91_vm0, %v3386_v11, %v3387_v58  ;;  %v3665_v41 = vrot.slane %v3285_v8, 4 }
 0x2b4   :  { %6697 = vrot.lane.b32.xlu0 %v6686_v63, %s7177_s27  ;;  %6712 = vrot.lane.b32.xlu1 %v6711_v60, %s7175_s25  ;;  %v6498_v48 = vpop.permute.xlu1 %6497  ;;  %v3202_v19 = vsel %vm3193_vm13, %v3185_v1, %v6479_v26  ;;  %v3203_v0 = vsel %vm3193_vm13, %v3186_v30, %v6480_v7  ;;  %v6701_v49 = vpack.i.bf16 %v3394_v56, %v3388_v15  ;;  %v3664_v63 = vrot.slane %v9480_v42, 4 }
 0x2b5   :  { %v6488_v43 = vpop.permute.xlu0 %6487  ;;  %v9516_v46 = vsel %vm220_vm2, %v3496_v14, %v3497_v20  ;;  %v3219_v26 = vsel %vm3210_vm14, %v3202_v19, %v6484_v16  ;;  %v3220_v7 = vsel %vm3210_vm14, %v3203_v0, %v6485_v50  ;;  %v6500_v14 = vunpack.i.h.bf16 %v6498_v48 }
 0x2b6   :  { %v6490_v51 = vunpack.i.h.bf16 %v6488_v43  ;;  %v6489_v18 = vunpack.i.l.bf16 %v6488_v43  ;;  %v9525_v58 = vsel %vm478_vm3, %v3664_v63, %v3665_v41  ;;  %v6499_v20 = vunpack.i.l.bf16 %v6498_v48 }
 0x2b7   :  { %10857 = vst [vmem:[#allocation6_spill] sm:$0xff] %v9525_v58 }
 0x2b8   :  { %6702 = vrot.lane.b32.xlu0 %v6701_v49, %s7178_s28  ;;  %v6503_v11 = vpop.permute.xlu1 %6502  ;;  %v3236_v8 = vsel %vm3227_vm15, %v3219_v26, %v6489_v18  ;;  %v3237_v19 = vsel %vm3227_vm15, %v3220_v7, %v6490_v51 }
 0x2b9   :  { %v6493_v27 = vpop.permute.xlu0 %6492  ;;  %v6505_v43 = vunpack.i.h.bf16 %v6503_v11  ;;  %v6504_v50 = vunpack.i.l.bf16 %v6503_v11 }
 0x2ba   :  { %v6495_v30 = vunpack.i.h.bf16 %v6493_v27  ;;  %v6494_v1 = vunpack.i.l.bf16 %v6493_v27 }
 0x2bc   :  { %v3253_v0 = vsel %vm3244_vm4, %v3236_v8, %v6494_v1  ;;  %v3254_v15 = vsel %vm3244_vm4, %v3237_v19, %v6495_v30  ;;  %6707 = vrot.lane.b32.xlu0 %v6711_v60, %s7172_s20  ;;  %v6513_v41 = vpop.permute.xlu1 %6512 }
 0x2bd   :  { %v3270_v16 = vsel %vm3261_vm5, %v3253_v0, %v6499_v20  ;;  %v3271_v49 = vsel %vm3261_vm5, %v3254_v15, %v6500_v14  ;;  %v6508_v63 = vpop.permute.xlu0 %6507 }
 0x2be   :  { %v9537_v48 = vsel %vm682_vm7, %v3270_v16, %v6504_v50  ;;  %v3287_v18 = vsel %vm682_vm7, %v3271_v49, %v6505_v43  ;;  %v6510_v30 = vunpack.i.h.bf16 %v6508_v63  ;;  %v6509_v1 = vunpack.i.l.bf16 %v6508_v63 }
 0x2bf   :  { %v3566_v51 = vrot.slane %v9537_v48, 3  ;;  %v3567_v26 = vrot.slane %v3287_v18, 3  ;;  %v3502_v11 = vrot.slane %v9537_v48, 2  ;;  %v3503_v27 = vrot.slane %v3287_v18, 2 }
 0x2c0   :  { %6717 = vrot.lane.b32.xlu0 %v6711_v60, %s7177_s27  ;;  %v6518_v7 = vpop.permute.xlu1 %6517  ;;  %v3670_v19 = vrot.slane %v9537_v48, 4  ;;  %v6515_v43 = vunpack.i.h.bf16 %v6513_v41  ;;  %v6514_v50 = vunpack.i.l.bf16 %v6513_v41  ;;  %v3671_v15 = vrot.slane %v3287_v18, 4 }
 0x2c1   :  { %v6533_v20 = vpop.permute.xlu0 %6532  ;;  %v9544_v14 = vsel %vm349_vm1, %v3566_v51, %v3567_v26  ;;  %v9547_v8 = vsel %vm220_vm2, %v3502_v11, %v3503_v27  ;;  %v3188_v60 = vsel %vm3176_vm12, %v9117_v10, %v6510_v30  ;;  %v3187_v16 = vsel %vm3176_vm12, %v9120_v31, %v6509_v1 }
 0x2c2   :  { %v6520_v49 = vunpack.i.h.bf16 %v6518_v7  ;;  %v6519_v63 = vunpack.i.l.bf16 %v6518_v7  ;;  %v9555_v11 = vsel %vm478_vm3, %v3670_v19, %v3671_v15  ;;  %v3398_v27 = vrot.slane %v9537_v48, 1 }
 0x2c3   :  { %10858 = vst [vmem:[#allocation7_spill] sm:$0xff] %v9555_v11  ;;  %v3399_v33 = vrot.slane %v3287_v18, 1  ;;  %v3204_v41 = vsel %vm3193_vm13, %v3187_v16, %v6514_v50  ;;  %v3205_v22 = vsel %vm3193_vm13, %v3188_v60, %v6515_v43  ;;  %v6535_v17 = vunpack.i.h.bf16 %v6533_v20 }
 0x2c4   :  { %v6523_v0 = vpop.permute.xlu1 %6522  ;;  %v6534_v10 = vunpack.i.l.bf16 %v6533_v20  ;;  %v3221_v31 = vsel %vm3210_vm14, %v3204_v41, %v6519_v63  ;;  %v3222_v7 = vsel %vm3210_vm14, %v3205_v22, %v6520_v49 }
 0x2c5   :  { %v6538_v56 = vpop.permute.xlu0 %6537  ;;  %v6525_v51 = vunpack.i.h.bf16 %v6523_v0  ;;  %v6524_v26 = vunpack.i.l.bf16 %v6523_v0  ;;  %v3400_v41 = vsel %vm91_vm0, %v3398_v27, %v3399_v33 }
 0x2c6   :  { %v6540_v59 = vunpack.i.h.bf16 %v6538_v56  ;;  %v6539_v50 = vunpack.i.l.bf16 %v6538_v56 }
 0x2c7   :  { %v3238_v19 = vsel %vm3227_vm15, %v3221_v31, %v6524_v26  ;;  %v3239_v15 = vsel %vm3227_vm15, %v3222_v7, %v6525_v51 }
 0x2c8   :  { %v6528_v30 = vpop.permute.xlu1 %6527 }
 0x2c9   :  { %v6530_v1 = vunpack.i.h.bf16 %v6528_v30  ;;  %v6529_v45 = vunpack.i.l.bf16 %v6528_v30  ;;  %v6543_v0 = vpop.permute.xlu0 %6542 }
 0x2ca   :  { %v6545_v58 = vunpack.i.h.bf16 %v6543_v0  ;;  %v6544_v18 = vunpack.i.l.bf16 %v6543_v0 }
 0x2cb   :  { %v3255_v43 = vsel %vm3244_vm4, %v3238_v19, %v6529_v45  ;;  %v3256_v20 = vsel %vm3244_vm4, %v3239_v15, %v6530_v1 }
 0x2cc   :  { %v3272_v60 = vsel %vm3261_vm5, %v3255_v43, %v6534_v10  ;;  %v3273_v16 = vsel %vm3261_vm5, %v3256_v20, %v6535_v17  ;;  %v9569_v22 = vmax.f32 %v9070_v57, %v6545_v58  ;;  %v9572_v49 = vmax.f32 %v9065_v34, %v6544_v18  ;;  %v6548_v63 = vpop.permute.xlu1 %6547  ;;  %v7007_v34 = vld [vmem:[%s10767_s3 + $0x104] ss:$8 sps:$4 sm:$0xff]  }
 0x2cd   :  { %v9575_v51 = vsel %vm682_vm7, %v3272_v60, %v6539_v50  ;;  %v3289_v56 = vsel %vm682_vm7, %v3273_v16, %v6540_v59  ;;  %v6558_v26 = vpop.permute.xlu0 %6557  ;;  %v6550_v57 = vunpack.i.h.bf16 %v6548_v63  ;;  %v6549_v33 = vunpack.i.l.bf16 %v6548_v63  ;;  %4575 = vmatprep.subr.bf16.mxu0 %v7007_v34 }
 0x2ce   :  { %v6726_v45 = vpack.i.bf16 %v9569_v22, %v9572_v49  ;;  %v3404_v17 = vrot.slane %v9575_v51, 1  ;;  %v3405_v10 = vrot.slane %v3289_v56, 1  ;;  %v3572_v30 = vrot.slane %v9575_v51, 3 }
 0x2cf   :  { %v3573_v31 = vrot.slane %v3289_v56, 3  ;;  %v6560_v19 = vunpack.i.h.bf16 %v6558_v26  ;;  %v6559_v18 = vunpack.i.l.bf16 %v6558_v26  ;;  %v9599_v60 = vmax.f32 %v9156_v39, %v6550_v57 }
 0x2d0   :  { %6727 = vrot.lane.b32.xlu0 %v6726_v45, %s7175_s25  ;;  %6722 = vrot.lane.b32.xlu1 %v6726_v45, %s7172_s20  ;;  %v6553_v58 = vpop.permute.xlu1 %6552  ;;  %v3406_v0 = vsel %vm91_vm0, %v3404_v17, %v3405_v10  ;;  %v9603_v63 = vmax.f32 %v9167_v38, %v6549_v33  ;;  %v3509_v34 = vrot.slane %v3289_v56, 2  ;;  %v3676_v39 = vrot.slane %v9575_v51, 4 }
 0x2d1   :  { %v6555_v27 = vunpack.i.h.bf16 %v6553_v58  ;;  %v6554_v7 = vunpack.i.l.bf16 %v6553_v58  ;;  %v6563_v1 = vpop.permute.xlu0 %6562  ;;  %v6731_v15 = vpack.i.bf16 %v3406_v0, %v3400_v41  ;;  %v9596_v20 = vsel %vm349_vm1, %v3572_v30, %v3573_v31 }
 0x2d2   :  { %v6565_v17 = vunpack.i.h.bf16 %v6563_v1  ;;  %v6564_v10 = vunpack.i.l.bf16 %v6563_v1  ;;  %v3677_v57 = vrot.slane %v3289_v56, 4  ;;  %v9622_v56 = vpack.i.bf16 %v9599_v60, %v9603_v63 }
 0x2d3   :  { %v3190_v50 = vsel %vm3176_vm12, %v9148_v13, %v6555_v27  ;;  %v3189_v43 = vsel %vm3176_vm12, %v9151_v4, %v6554_v7  ;;  %v3508_v4 = vrot.slane %v9575_v51, 2 }
 0x2d4   :  { %6732 = vrot.lane.b32.xlu1 %v6731_v15, %s7178_s28  ;;  %v6578_v16 = vpop.permute.xlu1 %6577  ;;  %v3206_v26 = vsel %vm3193_vm13, %v3189_v43, %v6559_v18  ;;  %v3207_v41 = vsel %vm3193_vm13, %v3190_v50, %v6560_v19  ;;  %v9618_v0 = vsel %vm478_vm3, %v3676_v39, %v3677_v57 }
 0x2d5   :  { %v6568_v13 = vpop.permute.xlu0 %6567  ;;  %v3223_v31 = vsel %vm3210_vm14, %v3206_v26, %v6564_v10  ;;  %v3224_v38 = vsel %vm3210_vm14, %v3207_v41, %v6565_v17  ;;  %v9613_v27 = vsel %vm220_vm2, %v3508_v4, %v3509_v34  ;;  %10859 = vst [vmem:[#allocation8_spill] sm:$0xff] %v9618_v0  ;;  %v6580_v18 = vunpack.i.h.bf16 %v6578_v16 }
 0x2d6   :  { %v6570_v58 = vunpack.i.h.bf16 %v6568_v13  ;;  %v6569_v30 = vunpack.i.l.bf16 %v6568_v13  ;;  %v6579_v50 = vunpack.i.l.bf16 %v6578_v16 }
 0x2d8   :  { %6737 = vrot.lane.b32.xlu1 %v6726_v45, %s7177_s27  ;;  %v6583_v33 = vpop.permute.xlu1 %6582  ;;  %v3240_v43 = vsel %vm3227_vm15, %v3223_v31, %v6569_v30  ;;  %v3241_v26 = vsel %vm3227_vm15, %v3224_v38, %v6570_v58 }
 0x2d9   :  { %v6573_v7 = vpop.permute.xlu0 %6572  ;;  %v6585_v41 = vunpack.i.h.bf16 %v6583_v33  ;;  %v6584_v13 = vunpack.i.l.bf16 %v6583_v33 }
 0x2da   :  { %v6575_v19 = vunpack.i.h.bf16 %v6573_v7  ;;  %v6574_v15 = vunpack.i.l.bf16 %v6573_v7 }
 0x2dc   :  { %v3257_v17 = vsel %vm3244_vm4, %v3240_v43, %v6574_v15  ;;  %v3258_v10 = vsel %vm3244_vm4, %v3241_v26, %v6575_v19  ;;  %6742 = vrot.lane.b32.xlu1 %v9622_v56, %s7172_s20  ;;  %v6593_v4 = vpop.permute.xlu1 %6592 }
 0x2dd   :  { %v3274_v34 = vsel %vm3261_vm5, %v3257_v17, %v6579_v50  ;;  %v3275_v39 = vsel %vm3261_vm5, %v3258_v10, %v6580_v18  ;;  %v6588_v57 = vpop.permute.xlu0 %6587 }
 0x2de   :  { %v9635_v16 = vsel %vm682_vm7, %v3274_v34, %v6584_v13  ;;  %v3291_v58 = vsel %vm682_vm7, %v3275_v39, %v6585_v41  ;;  %v6590_v19 = vunpack.i.h.bf16 %v6588_v57  ;;  %v6589_v15 = vunpack.i.l.bf16 %v6588_v57 }
 0x2df   :  { %v3578_v30 = vrot.slane %v9635_v16, 3  ;;  %v3579_v31 = vrot.slane %v3291_v58, 3  ;;  %v3514_v33 = vrot.slane %v9635_v16, 2  ;;  %v3515_v7 = vrot.slane %v3291_v58, 2 }
 0x2e0   :  { %6757 = vrot.lane.b32.xlu1 %v9622_v56, %s7177_s27  ;;  %v6598_v38 = vpop.permute.xlu1 %6597  ;;  %v3682_v26 = vrot.slane %v9635_v16, 4  ;;  %v6595_v41 = vunpack.i.h.bf16 %v6593_v4  ;;  %v6594_v13 = vunpack.i.l.bf16 %v6593_v4  ;;  %v3683_v10 = vrot.slane %v3291_v58, 4 }
 0x2e1   :  { %v6613_v50 = vpop.permute.xlu0 %6612  ;;  %v9643_v18 = vsel %vm349_vm1, %v3578_v30, %v3579_v31  ;;  %v9646_v43 = vsel %vm220_vm2, %v3514_v33, %v3515_v7  ;;  %v3192_v34 = vsel %vm3176_vm12, %v9206_v21, %v6590_v19  ;;  %v3191_v39 = vsel %vm3176_vm12, %v9209_v12, %v6589_v15 }
 0x2e2   :  { %v6600_v57 = vunpack.i.h.bf16 %v6598_v38  ;;  %v6599_v45 = vunpack.i.l.bf16 %v6598_v38  ;;  %v9654_v31 = vsel %vm478_vm3, %v3682_v26, %v3683_v10  ;;  %v3208_v33 = vsel %vm3193_vm13, %v3191_v39, %v6594_v13 }
 0x2e3   :  { %10860 = vst [vmem:[#allocation9_spill] sm:$0xff] %v9654_v31  ;;  %v3209_v7 = vsel %vm3193_vm13, %v3192_v34, %v6595_v41  ;;  %v6615_v12 = vunpack.i.h.bf16 %v6613_v50  ;;  %v6614_v15 = vunpack.i.l.bf16 %v6613_v50  ;;  %v3410_v50 = vrot.slane %v9635_v16, 1 }
 0x2e4   :  { %v6603_v17 = vpop.permute.xlu1 %6602  ;;  %v3225_v11 = vsel %vm3210_vm14, %v3208_v33, %v6599_v45  ;;  %v3226_v21 = vsel %vm3210_vm14, %v3209_v7, %v6600_v57 }
 0x2e5   :  { %v6605_v1 = vunpack.i.h.bf16 %v6603_v17  ;;  %v6604_v30 = vunpack.i.l.bf16 %v6603_v17  ;;  %v6618_v4 = vpop.permute.xlu0 %6617 }
 0x2e6   :  { %v6620_v26 = vunpack.i.h.bf16 %v6618_v4  ;;  %v6619_v10 = vunpack.i.l.bf16 %v6618_v4 }
 0x2e7   :  { %v3242_v38 = vsel %vm3227_vm15, %v3225_v11, %v6604_v30  ;;  %v3243_v17 = vsel %vm3227_vm15, %v3226_v21, %v6605_v1  ;;  %v3411_v11 = vrot.slane %v3291_v58, 1 }
 0x2e8   :  { %v6608_v59 = vpop.permute.xlu1 %6607 }
 0x2e9   :  { %v6610_v19 = vunpack.i.h.bf16 %v6608_v59  ;;  %v6609_v0 = vunpack.i.l.bf16 %v6608_v59  ;;  %v3412_v4 = vsel %vm91_vm0, %v3410_v50, %v3411_v11 }
 0x2eb   :  { %v3259_v13 = vsel %vm3244_vm4, %v3242_v38, %v6609_v0  ;;  %v3260_v41 = vsel %vm3244_vm4, %v3243_v17, %v6610_v19 }
 0x2ec   :  { %v3276_v34 = vsel %vm3261_vm5, %v3259_v13, %v6614_v15  ;;  %v3277_v45 = vsel %vm3261_vm5, %v3260_v41, %v6615_v12 }
 0x2ed   :  { %v9667_v39 = vsel %vm682_vm7, %v3276_v34, %v6619_v10  ;;  %v3293_v59 = vsel %vm682_vm7, %v3277_v45, %v6620_v26  ;;  %v6623_v10 = vpop.permute.xlu0 %6622  ;;  %v6628_v45 = vpop.permute.xlu1 %6627  ;;  %vm5250_vm7 = vcmask 1046534  }
 0x2ee   :  { %v3416_v1 = vrot.slane %v9667_v39, 1  ;;  %v3417_v57 = vrot.slane %v3293_v59, 1  ;;  %v3584_v30 = vrot.slane %v9667_v39, 3  ;;  %v3585_v7 = vrot.slane %v3293_v59, 3 }
 0x2ef   :  { %v3520_v12 = vrot.slane %v9667_v39, 2  ;;  %v3521_v58 = vrot.slane %v3293_v59, 2  ;;  %v3688_v15 = vrot.slane %v9667_v39, 4  ;;  %v3689_v38 = vrot.slane %v3293_v59, 4 }
 0x2f0   :  { %v3418_v33 = vsel %vm91_vm0, %v3416_v1, %v3417_v57  ;;  %v9678_v19 = vsel %vm349_vm1, %v3584_v30, %v3585_v7  ;;  %v6625_v59 = vunpack.i.h.bf16 %v6623_v10  ;;  %v6624_v50 = vunpack.i.l.bf16 %v6623_v10 }
 0x2f1   :  { %v6746_v21 = vpack.i.bf16 %v3418_v33, %v3412_v4  ;;  %v9684_v17 = vsel %vm220_vm2, %v3520_v12, %v3521_v58  ;;  %v9687_v26 = vsel %vm478_vm3, %v3688_v15, %v3689_v38  ;;  %v6633_v34 = vpop.permute.xlu0 %6632  ;;  %v6630_v11 = vunpack.i.h.bf16 %v6628_v45 }
 0x2f2   :  { %10861 = vst [vmem:[#allocation10_spill] sm:$0xff] %v9687_v26  ;;  %v6629_v1 = vunpack.i.l.bf16 %v6628_v45  ;;  %v3296_v30 = vsel %vm3176_vm12, %v9236_v25, %v6625_v59  ;;  %v3294_v33 = vsel %vm3176_vm12, %v9239_v23, %v6624_v50  ;;  %v6635_v7 = vunpack.i.h.bf16 %v6633_v34 }
 0x2f3   :  { %6747 = vrot.lane.b32.xlu0 %v6746_v21, %s7178_s28  ;;  %v6634_v4 = vunpack.i.l.bf16 %v6633_v34  ;;  %v3312_v12 = vsel %vm3193_vm13, %v3296_v30, %v6630_v11 }
 0x2f4   :  { %v3310_v21 = vsel %vm3193_vm13, %v3294_v33, %v6629_v1  ;;  %v9709_v25 = vsel %vm3210_vm14, %v3312_v12, %v6635_v7  ;;  %v7005_v1 = vld [vmem:[%s10767_s3 + $0x100] ss:$8 sps:$4 sm:$0xff]  }
 0x2f5   :  { %v6638_v57 = vpop.permute.xlu0 %6637  ;;  %v9706_v38 = vsel %vm3210_vm14, %v3310_v21, %v6634_v4  ;;  %v3383_v13 = vrot.slane %v9709_v25, 1 }
 0x2f6   :  { %v6640_v10 = vunpack.i.h.bf16 %v6638_v57  ;;  %v6639_v23 = vunpack.i.l.bf16 %v6638_v57  ;;  %v7010_v57 = vld [vmem:[%s10767_s3 + $0x114] ss:$8 sps:$4 sm:$0xff]   ;;  %v3377_v41 = vrot.slane %v9706_v38, 1 }
 0x2f7   :  { %6752 = vrot.lane.b32.xlu0 %v9622_v56, %s7175_s25 }
 0x2f8   :  { %v3297_v7 = vsel %vm3176_vm12, %v9264_v5, %v6640_v10  ;;  %v3295_v4 = vsel %vm3176_vm12, %v9268_v29, %v6639_v23  ;;  %v7008_v23 = vld [vmem:[%s10767_s3 + $0x110] ss:$8 sps:$4 sm:$0xff]  }
 0x2f9   :  { %v6653_v45 = vpop.permute.xlu0 %6652 }
 0x2fa   :  { %v6655_v21 = vunpack.i.h.bf16 %v6653_v45  ;;  %v6654_v12 = vunpack.i.l.bf16 %v6653_v45  ;;  %v3481_v45 = vrot.slane %v9706_v38, 2 }
 0x303   :  { %v9701_v56 = vpop.permute.xlu1 %6642 }
 0x304   :  { %v10791_v58 = vunpack.i.h.bf16 %v9701_v56  ;;  %v10792_v15 = vunpack.i.l.bf16 %v9701_v56 }
 0x306   :  { %v3710_v34 = vsel %vm3227_vm15, %v9706_v38, %v10792_v15  ;;  %v3711_v59 = vsel %vm3227_vm15, %v9709_v25, %v10791_v58  ;;  %v7011_v15 = vld [vmem:[%s10767_s3 + $0x120] ss:$8 sps:$4 sm:$0xff]  }
 0x307   :  { %v6648_v50 = vpop.permute.xlu1 %6647  ;;  %v3727_v11 = vpack.c.bf16 %v3711_v59, %v3710_v34 }
 0x308   :  { %v6650_v30 = vunpack.i.h.bf16 %v6648_v50  ;;  %v6649_v33 = vunpack.i.l.bf16 %v6648_v50  ;;  %v10862_v50 = vpack.c.bf16 %v9373_v36, %v9313_v3  ;;  %v3551_v3 = vrot.slane %v9709_v25, 3 }
 0x309   :  { %4534 = vmatprep.mubr.bf16.mxu0 %v3727_v11 }
 0x30a   :  { %v3313_v34 = vsel %vm3193_vm13, %v3297_v7, %v6650_v30  ;;  %v3311_v59 = vsel %vm3193_vm13, %v3295_v4, %v6649_v33  ;;  %4535 = vmatmul.mubr.bf16.vlgmr.msra.gmra.mrb[0].mxu0 %v10862_v50  ;;  %v7013_v30 = vld [vmem:[%s10767_s3 + $0x124] ss:$8 sps:$4 sm:$0xff]  }
 0x30b   :  { %v3329_v5 = vsel %vm3210_vm14, %v3313_v34, %v6655_v21  ;;  %v9738_v10 = vsel %vm3210_vm14, %v3311_v59, %v6654_v12  ;;  %v6658_v29 = vpop.permute.xlu1 %6657  ;;  %4576 = vmatpush1.bf16.msra.mxu0 %v7005_v1  ;;  %v6663_v21 = vpop.permute.xlu0 %6662 }
 0x30c   :  { %v3384_v36 = vrot.slane %v3329_v5, 1  ;;  %v3552_v11 = vrot.slane %v3329_v5, 3  ;;  %4577 = vmatprep.subr.bf16.mxu0 %v7010_v57  ;;  %v3488_v33 = vrot.slane %v3329_v5, 2  ;;  %v3378_v7 = vrot.slane %v9738_v10, 1 }
 0x30d   :  { %v3482_v1 = vrot.slane %v9738_v10, 2  ;;  %v3650_v4 = vrot.slane %v9738_v10, 4  ;;  %v6660_v12 = vunpack.i.h.bf16 %v6658_v29  ;;  %v6659_v34 = vunpack.i.l.bf16 %v6658_v29 }
 0x30e   :  { %v3385_v59 = vsel %vm91_vm0, %v3383_v13, %v3384_v36  ;;  %v9753_v50 = vsel %vm349_vm1, %v3551_v3, %v3552_v11  ;;  %v3379_v58 = vsel %vm91_vm0, %v3377_v41, %v3378_v7  ;;  %v3487_v29 = vrot.slane %v9709_v25, 2  ;;  %v7016_v41 = vld [vmem:[%s10767_s3 + $0x134] ss:$8 sps:$4 sm:$0xff]  }
 0x30f   :  { %v6668_v57 = vpop.permute.xlu1 %6667  ;;  %4578 = vmatpush1.bf16.msra.mxu0 %v7008_v23  ;;  %v9762_v31 = vsel %vm220_vm2, %v3481_v45, %v3482_v1  ;;  %v3649_v13 = vrot.slane %v9706_v38, 4  ;;  %v3656_v3 = vrot.slane %v3329_v5, 4  ;;  %v3300_v36 = vsel %vm3176_vm12, %v9367_v44, %v6660_v12  ;;  %v6678_v12 = vpop.permute.xlu0 %6677 }
 0x310   :  { %4579 = vmatprep.subr.bf16.mxu0 %v7013_v30  ;;  %v3298_v23 = vsel %vm3176_vm12, %v9370_v24, %v6659_v34  ;;  %v6670_v11 = vunpack.i.h.bf16 %v6668_v57  ;;  %v6669_v7 = vunpack.i.l.bf16 %v6668_v57  ;;  %v6761_v45 = vpack.i.bf16 %v3385_v59, %v3379_v58  ;;  %v7014_v24 = vld [vmem:[%s10767_s3 + $0x130] ss:$8 sps:$4 sm:$0xff]  }
 0x311   :  { %v6665_v1 = vunpack.i.h.bf16 %v6663_v21  ;;  %v6664_v0 = vunpack.i.l.bf16 %v6663_v21  ;;  %v9774_v26 = vsel %vm220_vm2, %v3487_v29, %v3488_v33  ;;  %v9777_v5 = vsel %vm478_vm3, %v3649_v13, %v3650_v4 }
 0x312   :  { %10863 = vst [vmem:[#allocation11_spill] sm:$0xff] %v9777_v5  ;;  %v3655_v44 = vrot.slane %v9709_v25, 4  ;;  %6762 = vrot.lane.b32.xlu0 %v6761_v45, %s7178_s28  ;;  %v7019_v25 = vld [vmem:[%s10767_s3 + $0x144] ss:$8 sps:$4 sm:$0xff]   ;;  %v6680_v13 = vunpack.i.h.bf16 %v6678_v12 }
 0x313   :  { %v6673_v30 = vpop.permute.xlu1 %6672  ;;  %4580 = vmatpush1.bf16.msra.mxu0 %v7011_v15  ;;  %v3314_v58 = vsel %vm3193_vm13, %v3298_v23, %v6664_v0  ;;  %v3316_v21 = vsel %vm3193_vm13, %v3300_v36, %v6665_v1  ;;  %v6679_v36 = vunpack.i.l.bf16 %v6678_v12  ;;  %v7017_v23 = vld [vmem:[%s10767_s3 + $0x140] ss:$8 sps:$4 sm:$0xff]  }
 0x314   :  { %v6675_v33 = vunpack.i.h.bf16 %v6673_v30  ;;  %v6674_v34 = vunpack.i.l.bf16 %v6673_v30  ;;  %4581 = vmatprep.subr.bf16.mxu0 %v7016_v41  ;;  %v9790_v4 = vsel %vm3210_vm14, %v3314_v58, %v6669_v7  ;;  %v9793_v15 = vsel %vm3210_vm14, %v3316_v21, %v6670_v11 }
 0x315   :  { %v9796_v59 = vsel %vm478_vm3, %v3655_v44, %v3656_v3  ;;  %v3389_v3 = vrot.slane %v9790_v4, 1  ;;  %v3395_v11 = vrot.slane %v9793_v15, 1  ;;  %v3563_v45 = vrot.slane %v9793_v15, 3 }
 0x316   :  { %10864 = vst [vmem:[#allocation12_spill] sm:$0xff] %v9796_v59  ;;  %v3301_v0 = vsel %vm3176_vm12, %v9382_v62, %v6675_v33  ;;  %v3299_v57 = vsel %vm3176_vm12, %v9385_v54, %v6674_v34  ;;  %v7022_v54 = vld [vmem:[%s10767_s3 + $0x154] ss:$8 sps:$4 sm:$0xff]   ;;  %v3661_v1 = vrot.slane %v9790_v4, 4  ;;  %v3493_v58 = vrot.slane %v9790_v4, 2 }
 0x317   :  { %v6683_v41 = vpop.permute.xlu1 %6682  ;;  %4582 = vmatpush1.bf16.msra.mxu0 %v7014_v24  ;;  %v3315_v44 = vsel %vm3193_vm13, %v3299_v57, %v6679_v36  ;;  %v3317_v30 = vsel %vm3193_vm13, %v3301_v0, %v6680_v13  ;;  %v3499_v21 = vrot.slane %v9793_v15, 2  ;;  %v7020_v0 = vld [vmem:[%s10767_s3 + $0x150] ss:$8 sps:$4 sm:$0xff]   ;;  %v3667_v57 = vrot.slane %v9793_v15, 4 }
 0x318   :  { %v6685_v7 = vunpack.i.h.bf16 %v6683_v41  ;;  %v6684_v62 = vunpack.i.l.bf16 %v6683_v41  ;;  %4583 = vmatprep.subr.bf16.mxu0 %v7019_v25 }
 0x31a   :  { %v9817_v24 = vsel %vm3210_vm14, %v3315_v44, %v6684_v62  ;;  %v3333_v12 = vsel %vm3210_vm14, %v3317_v30, %v6685_v7  ;;  %v7025_v62 = vld [vmem:[%s10767_s3 + $0x164] ss:$8 sps:$4 sm:$0xff]  }
 0x31b   :  { %v3390_v33 = vrot.slane %v9817_v24, 1  ;;  %v3396_v34 = vrot.slane %v3333_v12, 1  ;;  %v3494_v25 = vrot.slane %v9817_v24, 2  ;;  %v3500_v41 = vrot.slane %v3333_v12, 2  ;;  %4584 = vmatpush1.bf16.msra.mxu0 %v7017_v23 }
 0x31c   :  { %v3564_v13 = vrot.slane %v3333_v12, 3  ;;  %v3662_v36 = vrot.slane %v9817_v24, 4  ;;  %v3668_v7 = vrot.slane %v3333_v12, 4  ;;  %4585 = vmatprep.subr.bf16.mxu0 %v7022_v54 }
 0x31d   :  { %v3391_v44 = vsel %vm91_vm0, %v3389_v3, %v3390_v33  ;;  %v3397_v30 = vsel %vm91_vm0, %v3395_v11, %v3396_v34  ;;  %v9835_v23 = vsel %vm220_vm2, %v3493_v58, %v3494_v25  ;;  %v9838_v29 = vsel %vm220_vm2, %v3499_v21, %v3500_v41  ;;  %v7023_v3 = vld [vmem:[%s10767_s3 + $0x160] ss:$8 sps:$4 sm:$0xff]   ;;  %v7026_v33 = vld [vmem:[%s10767_s3 + $0x170] ss:$8 sps:$4 sm:$0xff]   ;;  %v7031_v34 = vld [vmem:[%s10767_s3 + $0x184] ss:$8 sps:$4 sm:$0xff]  }
 0x31e   :  { %v6766_v61 = vpack.i.bf16 %v3397_v30, %v3391_v44  ;;  %v9841_v5 = vsel %vm349_vm1, %v3563_v45, %v3564_v13  ;;  %v9844_v54 = vsel %vm478_vm3, %v3661_v1, %v3662_v36  ;;  %v9852_v58 = vsel %vm478_vm3, %v3667_v57, %v3668_v7  ;;  %v7028_v45 = vld [vmem:[%s10767_s3 + $0x174] ss:$8 sps:$4 sm:$0xff]   ;;  %v7029_v57 = vld [vmem:[%s10767_s3 + $0x180] ss:$8 sps:$4 sm:$0xff]  }
 0x31f   :  { %10865 = vst [vmem:[#allocation13_spill] sm:$0xff] %v9844_v54  ;;  %4586 = vmatpush1.bf16.msra.mxu0 %v7020_v0  ;;  %10866 = vst [vmem:[#allocation14_spill] sm:$0xff] %v9852_v58  ;;  %v7034_v44 = vld [vmem:[%s10767_s3 + $0x194] ss:$8 sps:$4 sm:$0xff]  }
 0x320   :  { %6767 = vrot.lane.b32.xlu1 %v6766_v61, %s7178_s28  ;;  %4587 = vmatprep.subr.bf16.mxu0 %v7025_v62 }
 0x322   :  { %v6688_v12 = vpop.permute.xlu0 %6687  ;;  %v6693_v41 = vpop.permute.xlu1 %6692 }
 0x323   :  { %4588 = vmatpush1.bf16.msra.mxu0 %v7023_v3  ;;  %v6690_v61 = vunpack.i.h.bf16 %v6688_v12  ;;  %v6689_v25 = vunpack.i.l.bf16 %v6688_v12  ;;  %v6695_v13 = vunpack.i.h.bf16 %v6693_v41  ;;  %v6694_v36 = vunpack.i.l.bf16 %v6693_v41 }
 0x324   :  { %4589 = vmatprep.subr.bf16.mxu0 %v7028_v45 }
 0x325   :  { %v3304_v30 = vsel %vm3176_vm12, %v9474_v52, %v6690_v61  ;;  %v3302_v12 = vsel %vm3176_vm12, %v9477_v2, %v6689_v25  ;;  %v7032_v52 = vld [vmem:[%s10767_s3 + $0x190] ss:$8 sps:$4 sm:$0xff]  }
 0x326   :  { %v6698_v21 = vpop.permute.xlu0 %6697  ;;  %v3320_v2 = vsel %vm3193_vm13, %v3304_v30, %v6695_v13  ;;  %v6713_v61 = vpop.permute.xlu1 %6712  ;;  %v3545_v30 = vrot.slane %v9706_v38, 3 }
 0x327   :  { %4590 = vmatpush1.bf16.msra.mxu0 %v7026_v33  ;;  %v6700_v3 = vunpack.i.h.bf16 %v6698_v21  ;;  %v6699_v45 = vunpack.i.l.bf16 %v6698_v21  ;;  %v3318_v21 = vsel %vm3193_vm13, %v3302_v12, %v6694_v36  ;;  %v3546_v12 = vrot.slane %v9738_v10, 3 }
 0x328   :  { %4591 = vmatprep.subr.bf16.mxu0 %v7031_v34 }
 0x329   :  { %v3547_v59 = vsel %vm349_vm1, %v3545_v30, %v3546_v12  ;;  %v3557_v30 = vrot.slane %v9790_v4, 3 }
 0x32a   :  { %v9866_v0 = vpop.permute.xlu0 %6702  ;;  %v6781_v12 = vpack.i.bf16 %v3547_v59, %v9340_v32 }
 0x32b   :  { %v10798_v7 = vunpack.i.h.bf16 %v9866_v0  ;;  %v10797_v62 = vunpack.i.l.bf16 %v9866_v0  ;;  %4592 = vmatpush1.bf16.msra.mxu0 %v7029_v57  ;;  %v9900_v57 = vsel %vm3210_vm14, %v3320_v2, %v6700_v3 }
 0x32c   :  { %4593 = vmatprep.subr.bf16.mxu0 %v7034_v44  ;;  %v10867_v44 = vpack.c.bf16 %v9480_v42, %v9435_v37  ;;  %v7040_v37 = vld [vmem:[%s10767_s3 + $0x1b4] ss:$8 sps:$4 sm:$0xff]   ;;  %v3575_v42 = vrot.slane %v9900_v57, 3 }
 0x32d   :  { %v3712_v33 = vsel %vm3227_vm15, %v9790_v4, %v10797_v62  ;;  %v3713_v34 = vsel %vm3227_vm15, %v9793_v15, %v10798_v7  ;;  %v7037_v62 = vld [vmem:[%s10767_s3 + $0x1a4] ss:$8 sps:$4 sm:$0xff]   ;;  %v9897_v15 = vsel %vm3210_vm14, %v3318_v21, %v6699_v45  ;;  %v6715_v45 = vunpack.i.h.bf16 %v6713_v61  ;;  %v7038_v7 = vld [vmem:[%s10767_s3 + $0x1b0] ss:$8 sps:$4 sm:$0xff]  }
 0x32e   :  { %v6708_v41 = vpop.permute.xlu0 %6707  ;;  %v3735_v1 = vpack.c.bf16 %v3713_v34, %v3712_v33  ;;  %v6714_v33 = vunpack.i.l.bf16 %v6713_v61  ;;  %v3673_v38 = vrot.slane %v9897_v15, 4  ;;  %v3505_v21 = vrot.slane %v9897_v15, 2 }
 0x32f   :  { %v6710_v25 = vunpack.i.h.bf16 %v6708_v41  ;;  %v6709_v11 = vunpack.i.l.bf16 %v6708_v41  ;;  %4594 = vmatpush1.bf16.msra.mxu0 %v7032_v52 }
 0x330   :  { %4544 = vmatprep.mubr.bf16.mxu0 %v3735_v1  ;;  %v7035_v1 = vld [vmem:[%s10767_s3 + $0x1a0] ss:$8 sps:$4 sm:$0xff]   ;;  %4595 = vmatprep.subr.bf16.mxu0 %v7037_v62  ;;  %v3511_v62 = vrot.slane %v9900_v57, 2 }
 0x331   :  { %v3305_v13 = vsel %vm3176_vm12, %v9486_v28, %v6710_v25  ;;  %v3303_v36 = vsel %vm3176_vm12, %v9489_v55, %v6709_v11  ;;  %4545 = vmatmul.mubr.bf16.gmra.mrb[4].mxu0 %v10867_v44  ;;  %v3401_v28 = vrot.slane %v9897_v15, 1  ;;  %v3407_v55 = vrot.slane %v9900_v57, 1 }
 0x332   :  { %v6718_v34 = vpop.permute.xlu0 %6717  ;;  %v3319_v10 = vsel %vm3193_vm13, %v3303_v36, %v6714_v33  ;;  %v3321_v41 = vsel %vm3193_vm13, %v3305_v13, %v6715_v45  ;;  %v3679_v36 = vrot.slane %v9900_v57, 4 }
 0x333   :  { %v6720_v11 = vunpack.i.h.bf16 %v6718_v34  ;;  %v6719_v3 = vunpack.i.l.bf16 %v6718_v34  ;;  %4596 = vmatpush1.bf16.msra.mxu0 %v7035_v1 }
 0x334   :  { %4597 = vmatprep.subr.bf16.mxu0 %v7040_v37 }
 0x335   :  { %v3335_v52 = vsel %vm3210_vm14, %v3319_v10, %v6719_v3  ;;  %v3337_v2 = vsel %vm3210_vm14, %v3321_v41, %v6720_v11  ;;  %v7043_v11 = vld [vmem:[%s10767_s3 + $0x1c4] ss:$8 sps:$4 sm:$0xff]  }
 0x336   :  { %v3402_v61 = vrot.slane %v3335_v52, 1  ;;  %v3408_v25 = vrot.slane %v3337_v2, 1  ;;  %v3506_v44 = vrot.slane %v3335_v52, 2  ;;  %v3512_v34 = vrot.slane %v3337_v2, 2 }
 0x337   :  { %v3576_v13 = vrot.slane %v3337_v2, 3  ;;  %v3674_v45 = vrot.slane %v3335_v52, 4  ;;  %v3680_v33 = vrot.slane %v3337_v2, 4  ;;  %v3558_v2 = vrot.slane %v9817_v24, 3  ;;  %4598 = vmatpush1.bf16.msra.mxu0 %v7038_v7  ;;  %v7046_v24 = vld [vmem:[%s10767_s3 + $0x1d4] ss:$8 sps:$4 sm:$0xff]  }
 0x338   :  { %v3403_v3 = vsel %vm91_vm0, %v3401_v28, %v3402_v61  ;;  %v3409_v10 = vsel %vm91_vm0, %v3407_v55, %v3408_v25  ;;  %v9937_v1 = vsel %vm220_vm2, %v3505_v21, %v3506_v44  ;;  %v9940_v41 = vsel %vm220_vm2, %v3511_v62, %v3512_v34  ;;  %v7041_v28 = vld [vmem:[%s10767_s3 + $0x1c0] ss:$8 sps:$4 sm:$0xff]   ;;  %4599 = vmatprep.subr.bf16.mxu0 %v7043_v11  ;;  %v7049_v62 = vld [vmem:[%s10767_s3 + $0x1e4] ss:$8 sps:$4 sm:$0xff]   ;;  %v7052_v25 = vld [vmem:[%s10767_s3 + $0x1f4] ss:$8 sps:$4 sm:$0xff]  }
 0x339   :  { %v6771_v54 = vpack.i.bf16 %v3409_v10, %v3403_v3  ;;  %v9943_v58 = vsel %vm349_vm1, %v3575_v42, %v3576_v13  ;;  %v9946_v37 = vsel %vm478_vm3, %v3673_v38, %v3674_v45  ;;  %v9956_v21 = vsel %vm478_vm3, %v3679_v36, %v3680_v33  ;;  %v7055_v45 = vld [vmem:[%s10767_s3 + $0x204] ss:$8 sps:$4 sm:$0xff]  }
 0x33a   :  { %v6806_v55 = vpack.i.bf16 %v9943_v58, %v9596_v20  ;;  %v3749_v7 = vpack.c.bf16 %v9956_v21, %v9946_v37  ;;  %v3570_v42 = vrot.slane %v3335_v52, 3  ;;  %v3559_v38 = vsel %vm349_vm1, %v3557_v30, %v3558_v2  ;;  %v7047_v52 = vld [vmem:[%s10767_s3 + $0x1e0] ss:$8 sps:$4 sm:$0xff]  }
 0x33b   :  { %6772 = vrot.lane.b32.xlu0 %v6771_v54, %s7178_s28  ;;  %4600 = vmatpush1.bf16.msra.mxu0 %v7041_v28  ;;  %v7044_v54 = vld [vmem:[%s10767_s3 + $0x1d0] ss:$8 sps:$4 sm:$0xff]   ;;  %v3569_v61 = vrot.slane %v9897_v15, 3  ;;  %v6791_v4 = vpack.i.bf16 %v3559_v38, %v9450_v6  ;;  %v10868_v3 = vpack.c.bf16 %v9575_v51, %v9537_v48  ;;  %v7053_v20 = vld [vmem:[%s10767_s3 + $0x200] ss:$8 sps:$4 sm:$0xff]  }
 0x33c   :  { %4601 = vmatprep.subr.bf16.mxu0 %v7046_v24  ;;  %v7050_v6 = vld [vmem:[%s10767_s3 + $0x1f0] ss:$8 sps:$4 sm:$0xff]   ;;  %v10898_v37 = vld [vmem:[#allocation2_spill] sm:$0xff] }
 0x33d   :  { %v3571_v59 = vsel %vm349_vm1, %v3569_v61, %v3570_v42  ;;  %v10899_v21 = vsub.s32 0, %v10898_v37 }
 0x33e   :  { %v6801_v44 = vpack.i.bf16 %v3571_v59, %v9544_v14 }
 0x33f   :  { %6782 = vrot.lane.b32.xlu0 %v6781_v12, %s7178_s28  ;;  %4602 = vmatpush1.bf16.msra.mxu0 %v7044_v54 }
 0x340   :  { %4603 = vmatprep.subr.bf16.mxu0 %v7049_v62 }
 0x342   :  { %v6723_v32 = vpop.permute.xlu1 %6722  ;;  %v6728_v2 = vpop.permute.xlu0 %6727 }
 0x343   :  { %6792 = vrot.lane.b32.xlu0 %v6791_v4, %s7178_s28  ;;  %4604 = vmatpush1.bf16.msra.mxu0 %v7047_v52  ;;  %v6725_v28 = vunpack.i.h.bf16 %v6723_v32  ;;  %v6724_v24 = vunpack.i.l.bf16 %v6723_v32  ;;  %v6730_v30 = vunpack.i.h.bf16 %v6728_v2  ;;  %v6729_v12 = vunpack.i.l.bf16 %v6728_v2 }
 0x344   :  { %4605 = vmatprep.subr.bf16.mxu0 %v7052_v25 }
 0x345   :  { %v3308_v42 = vsel %vm3176_vm12, %v9569_v22, %v6725_v28 }
 0x346   :  { %v9985_v34 = vpop.permute.xlu1 %6732  ;;  %v3324_v51 = vsel %vm3193_vm13, %v3308_v42, %v6730_v30  ;;  %v10869_v42 = vpack.c.bf16 %v9667_v39, %v9635_v16 }
 0x347   :  { %v6735_v36 = vunpack.i.h.bf16 %v9985_v34  ;;  %v6734_v13 = vunpack.i.l.bf16 %v9985_v34  ;;  %6802 = vrot.lane.b32.xlu0 %v6801_v44, %s7178_s28  ;;  %4606 = vmatpush1.bf16.msra.mxu0 %v7050_v6  ;;  %v7083_v34 = vld [vmem:[%s10767_s3 + $0x2a0] ss:$8 sps:$4 sm:$0xff]  }
 0x348   :  { %4648 = vmatprep.subr.bf16.mxu0 %v7055_v45 }
 0x349   :  { %v3714_v14 = vsel %vm3227_vm15, %v9897_v15, %v6734_v13  ;;  %v3715_v33 = vsel %vm3227_vm15, %v9900_v57, %v6735_v36  ;;  %v3306_v57 = vsel %vm3176_vm12, %v9572_v49, %v6724_v24 }
 0x34a   :  { %v3743_v11 = vpack.c.bf16 %v3715_v33, %v3714_v14  ;;  %v6738_v10 = vpop.permute.xlu1 %6737  ;;  %v3322_v48 = vsel %vm3193_vm13, %v3306_v57, %v6729_v12 }
 0x34b   :  { %v6740_v38 = vunpack.i.h.bf16 %v6738_v10  ;;  %v6739_v54 = vunpack.i.l.bf16 %v6738_v10 }
 0x34c   :  { %4554 = vmatprep.mubr.bf16.mxu0 %v3743_v11 }
 0x34d   :  { %4555 = vmatmul.mubr.bf16.gmra.mrb[8].mxu0 %v10868_v3  ;;  %v3338_v32 = vsel %vm3210_vm14, %v3322_v48, %v6739_v54  ;;  %v3340_v59 = vsel %vm3210_vm14, %v3324_v51, %v6740_v38 }
 0x34e   :  { %v6743_v15 = vpop.permute.xlu1 %6742  ;;  %v3413_v14 = vrot.slane %v3338_v32, 1  ;;  %v3419_v24 = vrot.slane %v3340_v59, 1  ;;  %v3581_v30 = vrot.slane %v3338_v32, 3  ;;  %v3685_v57 = vrot.slane %v3338_v32, 4 }
 0x34f   :  { %v6745_v22 = vunpack.i.h.bf16 %v6743_v15  ;;  %v6744_v52 = vunpack.i.l.bf16 %v6743_v15  ;;  %v3691_v38 = vrot.slane %v3340_v59, 4 }
 0x351   :  { %v3309_v3 = vsel %vm3176_vm12, %v9599_v60, %v6745_v22  ;;  %v3307_v10 = vsel %vm3176_vm12, %v9603_v63, %v6744_v52  ;;  %v10870_v63 = vpack.c.bf16 %v9403_v53, %v9343_v9  ;;  %v3517_v52 = vrot.slane %v3338_v32, 2 }
 0x352   :  { %v6758_v25 = vpop.permute.xlu1 %6757 }
 0x353   :  { %v6760_v2 = vunpack.i.h.bf16 %v6758_v25  ;;  %v6759_v28 = vunpack.i.l.bf16 %v6758_v25 }
 0x365   :  { %v10011_v62 = vpop.permute.xlu0 %6747 }
 0x366   :  { %v6750_v61 = vunpack.i.h.bf16 %v10011_v62  ;;  %v6749_v4 = vunpack.i.l.bf16 %v10011_v62 }
 0x368   :  { %v3716_v49 = vsel %vm3227_vm15, %v3338_v32, %v6749_v4  ;;  %v3717_v44 = vsel %vm3227_vm15, %v3340_v59, %v6750_v61 }
 0x369   :  { %v6753_v6 = vpop.permute.xlu0 %6752  ;;  %v3751_v45 = vpack.c.bf16 %v3717_v44, %v3716_v49 }
 0x36a   :  { %v6755_v33 = vunpack.i.h.bf16 %v6753_v6  ;;  %v6754_v11 = vunpack.i.l.bf16 %v6753_v6 }
 0x36b   :  { %4564 = vmatprep.mubr.bf16.mxu0 %v3751_v45 }
 0x36c   :  { %v3323_v12 = vsel %vm3193_vm13, %v3307_v10, %v6754_v11  ;;  %v3325_v15 = vsel %vm3193_vm13, %v3309_v3, %v6755_v33  ;;  %4565 = vmatmul.mubr.bf16.gmra.mrb[12].mxu0 %v10869_v42  ;;  %v3523_v33 = vrot.slane %v3340_v59, 2  ;;  %v10873_v42 = vunpack.i.l.bf16 %v9701_v56 }
 0x36d   :  { %v3339_v60 = vsel %vm3210_vm14, %v3323_v12, %v6759_v28  ;;  %v3341_v54 = vsel %vm3210_vm14, %v3325_v15, %v6760_v2  ;;  %4607 = vmatprep.mubr.bf16.mxu0 %v10870_v63  ;;  %v10872_v28 = vpack.i.bf16 %v9841_v5, %v9507_v35  ;;  %v10874_v5 = vunpack.i.h.bf16 %v9701_v56  ;;  %v7056_v56 = vld [vmem:[%s10767_s3 + $0x210] ss:$8 sps:$4 sm:$0xff]  }
 0x36e   :  { %v3414_v48 = vrot.slane %v3339_v60, 1  ;;  %v3420_v51 = vrot.slane %v3341_v54, 1  ;;  %v3582_v22 = vrot.slane %v3339_v60, 3  ;;  %v3686_v25 = vrot.slane %v3339_v60, 4 }
 0x36f   :  { %v3692_v49 = vrot.slane %v3341_v54, 4  ;;  %v3518_v44 = vrot.slane %v3339_v60, 2  ;;  %v3524_v6 = vrot.slane %v3341_v54, 2  ;;  %v3588_v2 = vrot.slane %v3341_v54, 3 }
 0x370   :  { %v3415_v16 = vsel %vm91_vm0, %v3413_v14, %v3414_v48  ;;  %v3421_v39 = vsel %vm91_vm0, %v3419_v24, %v3420_v51  ;;  %v3583_v45 = vsel %vm349_vm1, %v3581_v30, %v3582_v22  ;;  %v10050_v32 = vsel %vm478_vm3, %v3685_v57, %v3686_v25  ;;  %v7061_v57 = vld [vmem:[%s10767_s3 + $0x224] ss:$8 sps:$4 sm:$0xff]  }
 0x371   :  { %v6776_v11 = vpack.i.bf16 %v3421_v39, %v3415_v16  ;;  %v6811_v3 = vpack.i.bf16 %v3583_v45, %v9643_v18  ;;  %v10044_v9 = vsel %vm220_vm2, %v3517_v52, %v3518_v44  ;;  %v10047_v53 = vsel %vm220_vm2, %v3523_v33, %v3524_v6  ;;  %v7062_v52 = vld [vmem:[%s10767_s3 + $0x230] ss:$8 sps:$4 sm:$0xff]   ;;  %v7070_v6 = vld [vmem:[%s10767_s3 + $0x254] ss:$8 sps:$4 sm:$0xff]   ;;  %v7079_v33 = vld [vmem:[%s10767_s3 + $0x284] ss:$8 sps:$4 sm:$0xff]  }
 0x372   :  { %v10053_v10 = vsel %vm478_vm3, %v3691_v38, %v3692_v49  ;;  %v10871_v18 = vpack.i.bf16 %v9753_v50, %v9409_v47  ;;  %v3587_v24 = vrot.slane %v3340_v59, 3  ;;  %v7059_v38 = vld [vmem:[%s10767_s3 + $0x220] ss:$8 sps:$4 sm:$0xff]   ;;  %v10876_v63 = vunpack.i.l.bf16 %v9866_v0  ;;  %v7067_v49 = vld [vmem:[%s10767_s3 + $0x244] ss:$8 sps:$4 sm:$0xff]  }
 0x373   :  { %6777 = vrot.lane.b32.xlu1 %v6776_v11, %s7178_s28  ;;  %6812 = vrot.lane.b32.xlu0 %v6811_v3, %s7178_s28  ;;  %v3757_v14 = vpack.c.bf16 %v10053_v10, %v10050_v32  ;;  %v10877_v51 = vunpack.i.h.bf16 %v9866_v0  ;;  %v10878_v44 = vpack.c.bf16 %v9613_v27, %v9547_v8  ;;  %v7065_v0 = vld [vmem:[%s10767_s3 + $0x240] ss:$8 sps:$4 sm:$0xff]   ;;  %v7068_v16 = vld [vmem:[%s10767_s3 + $0x250] ss:$8 sps:$4 sm:$0xff]   ;;  %vm5235_vm0 = vcmask 1041409  }
 0x374   :  { %v3589_v30 = vsel %vm349_vm1, %v3587_v24, %v3588_v2  ;;  %v7073_v8 = vld [vmem:[%s10767_s3 + $0x264] ss:$8 sps:$4 sm:$0xff]   ;;  %v7071_v27 = vld [vmem:[%s10767_s3 + $0x260] ss:$8 sps:$4 sm:$0xff]   ;;  %v7076_v39 = vld [vmem:[%s10767_s3 + $0x274] ss:$8 sps:$4 sm:$0xff]  }
 0x375   :  { %v6816_v12 = vpack.i.bf16 %v3589_v30, %v9678_v19  ;;  %v7058_v19 = vld [vmem:[%s10767_s3 + $0x214] ss:$8 sps:$4 sm:$0xff]   ;;  %v7074_v45 = vld [vmem:[%s10767_s3 + $0x270] ss:$8 sps:$4 sm:$0xff]   ;;  %v7077_v11 = vld [vmem:[%s10767_s3 + $0x280] ss:$8 sps:$4 sm:$0xff]  }
 0x376   :  { %vm5238_vm1 = vcmask 1042434   ;;  %vm5241_vm2 = vcmask 1043459   ;;  %vm5244_vm3 = vcmask 1044484  }
 0x377   :  { %6787 = vrot.lane.b32.xlu1 %v10871_v18, %s7178_s28  ;;  %v7082_v18 = vld [vmem:[%s10767_s3 + $0x294] ss:$8 sps:$4 sm:$0xff]  }
 0x37b   :  { %6797 = vrot.lane.b32.xlu1 %v10872_v28, %s7178_s28 }
 0x37f   :  { %6807 = vrot.lane.b32.xlu1 %v6806_v55, %s7178_s28  ;;  %v10875_v55 = vpack.c.bf16 %v9516_v46, %v9453_v40  ;;  %v7064_v40 = vld [vmem:[%s10767_s3 + $0x234] ss:$8 sps:$4 sm:$0xff]  }
 0x383   :  { %6817 = vrot.lane.b32.xlu1 %v6816_v12, %s7178_s28  ;;  %v7080_v12 = vld [vmem:[%s10767_s3 + $0x290] ss:$8 sps:$4 sm:$0xff]  }
 0x384   :  { %v6763_v47 = vpop.permute.xlu0 %6762 }
 0x385   :  { %v6765_v50 = vunpack.i.h.bf16 %v6763_v47  ;;  %v6764_v15 = vunpack.i.l.bf16 %v6763_v47 }
 0x387   :  { %v3454_v35 = vsel %vm3227_vm15, %v10873_v42, %v6764_v15  ;;  %v3455_v59 = vsel %vm3227_vm15, %v10874_v5, %v6765_v50  ;;  %v7085_v50 = vld [vmem:[%s10767_s3 + $0x2a4] ss:$8 sps:$4 sm:$0xff]   ;;  %v10879_v15 = vpack.c.bf16 %v9684_v17, %v9646_v43  ;;  %v7089_v17 = vld [vmem:[%s10767_s3 + $0x2c0] ss:$8 sps:$4 sm:$0xff]   ;;  %v7094_v42 = vld [vmem:[%s10767_s3 + $0x2d4] ss:$8 sps:$4 sm:$0xff]  }
 0x388   :  { %v3728_v58 = vpack.c.bf16 %v3455_v59, %v3454_v35  ;;  %v7091_v43 = vld [vmem:[%s10767_s3 + $0x2c4] ss:$8 sps:$4 sm:$0xff]   ;;  %v7092_v35 = vld [vmem:[%s10767_s3 + $0x2d0] ss:$8 sps:$4 sm:$0xff]   ;;  %v7095_v59 = vld [vmem:[%s10767_s3 + $0x2e0] ss:$8 sps:$4 sm:$0xff]  }
 0x389   :  { %v7097_v5 = vld [vmem:[%s10767_s3 + $0x2e4] ss:$8 sps:$4 sm:$0xff]  }
 0x38a   :  { %4608 = vmatmul.mubr.bf16.vlgmr.msra.gmra.mrb[0].mxu0 %v3728_v58  ;;  %v7098_v58 = vld [vmem:[%s10767_s3 + $0x2f0] ss:$8 sps:$4 sm:$0xff]  }
 0x38b   :  { %4617 = vmatprep.mubr.bf16.mxu0 %v10875_v55  ;;  %4649 = vmatpush1.bf16.msra.mxu0 %v7053_v20  ;;  %v7100_v20 = vld [vmem:[%s10767_s3 + $0x2f4] ss:$8 sps:$4 sm:$0xff]  }
 0x38c   :  { %4650 = vmatprep.subr.bf16.mxu0 %v7058_v19  ;;  %v7103_v19 = vld [vmem:[%s10767_s3 + $0x304] ss:$8 sps:$4 sm:$0xff]  }
 0x38f   :  { %4651 = vmatpush1.bf16.msra.mxu0 %v7056_v56 }
 0x390   :  { %4652 = vmatprep.subr.bf16.mxu0 %v7061_v57 }
 0x392   :  { %v6768_v46 = vpop.permute.xlu1 %6767 }
 0x393   :  { %v6770_v60 = vunpack.i.h.bf16 %v6768_v46  ;;  %v6769_v54 = vunpack.i.l.bf16 %v6768_v46  ;;  %4653 = vmatpush1.bf16.msra.mxu0 %v7059_v38 }
 0x394   :  { %4654 = vmatprep.subr.bf16.mxu0 %v7064_v40 }
 0x395   :  { %v3456_v48 = vsel %vm3227_vm15, %v10876_v63, %v6769_v54  ;;  %v3457_v22 = vsel %vm3227_vm15, %v10877_v51, %v6770_v60 }
 0x396   :  { %v3736_v25 = vpack.c.bf16 %v3457_v22, %v3456_v48 }
 0x397   :  { %4655 = vmatpush1.bf16.msra.mxu0 %v7062_v52 }
 0x398   :  { %4618 = vmatmul.mubr.bf16.gmra.mrb[4].mxu0 %v3736_v25  ;;  %4656 = vmatprep.subr.bf16.mxu0 %v7067_v49 }
 0x399   :  { %4627 = vmatprep.mubr.bf16.mxu0 %v10878_v44 }
 0x39b   :  { %4657 = vmatpush1.bf16.msra.mxu0 %v7065_v0 }
 0x39c   :  { %4658 = vmatprep.subr.bf16.mxu0 %v7070_v6 }
 0x39f   :  { %4659 = vmatpush1.bf16.msra.mxu0 %v7068_v16 }
 0x3a0   :  { %4660 = vmatprep.subr.bf16.mxu0 %v7073_v8 }
 0x3a3   :  { %4661 = vmatpush1.bf16.msra.mxu0 %v7071_v27 }
 0x3a4   :  { %4662 = vmatprep.subr.bf16.mxu0 %v7076_v39 }
 0x3a7   :  { %4663 = vmatpush1.bf16.msra.mxu0 %v7074_v45 }
 0x3a8   :  { %4664 = vmatprep.subr.bf16.mxu0 %v7079_v33 }
 0x3ab   :  { %4665 = vmatpush1.bf16.msra.mxu0 %v7077_v11 }
 0x3ac   :  { %4666 = vmatprep.subr.bf16.mxu0 %v7082_v18 }
 0x3ad   :  { %v6773_v3 = vpop.permute.xlu0 %6772 }
 0x3ae   :  { %v6775_v2 = vunpack.i.h.bf16 %v6773_v3  ;;  %v6774_v28 = vunpack.i.l.bf16 %v6773_v3 }
 0x3af   :  { %4667 = vmatpush1.bf16.msra.mxu0 %v7080_v12 }
 0x3b0   :  { %v3458_v24 = vsel %vm3227_vm15, %v6734_v13, %v6774_v28  ;;  %v3459_v30 = vsel %vm3227_vm15, %v6735_v36, %v6775_v2  ;;  %4668 = vmatprep.subr.bf16.mxu0 %v7085_v50  ;;  %v7088_v36 = vld [vmem:[%s10767_s3 + $0x2b4] ss:$8 sps:$4 sm:$0xff]   ;;  %v7086_v13 = vld [vmem:[%s10767_s3 + $0x2b0] ss:$8 sps:$4 sm:$0xff]  }
 0x3b1   :  { %v3744_v47 = vpack.c.bf16 %v3459_v30, %v3458_v24  ;;  %v6783_v55 = vpop.permute.xlu0 %6782  ;;  %v7106_v24 = vld [vmem:[%s10767_s3 + $0x314] ss:$8 sps:$4 sm:$0xff]  }
 0x3b2   :  { %v6785_v46 = vunpack.i.h.bf16 %v6783_v55  ;;  %v6784_v60 = vunpack.i.l.bf16 %v6783_v55 }
 0x3b3   :  { %4628 = vmatmul.mubr.bf16.gmra.mrb[8].mxu0 %v3744_v47 }
 0x3b4   :  { %4637 = vmatprep.mubr.bf16.mxu0 %v10879_v15  ;;  %4669 = vmatpush1.bf16.msra.mxu0 %v7083_v34  ;;  %v3718_v44 = vsel %vm3227_vm15, %v9762_v31, %v6784_v60  ;;  %v3622_v6 = vsel %vm3227_vm15, %v6784_v60, %v6785_v46  ;;  %v7101_v31 = vld [vmem:[%s10767_s3 + $0x300] ss:$8 sps:$4 sm:$0xff]   ;;  %v7116_v60 = vld [vmem:[%s10767_s3 + $0x350] ss:$8 sps:$4 sm:$0xff]  }
 0x3b5   :  { %4670 = vmatprep.subr.bf16.mxu0 %v7088_v36  ;;  %v6793_v40 = vpop.permute.xlu0 %6792 }
 0x3b6   :  { %v6795_v25 = vunpack.i.h.bf16 %v6793_v40  ;;  %v6794_v49 = vunpack.i.l.bf16 %v6793_v40  ;;  %v7118_v40 = vld [vmem:[%s10767_s3 + $0x354] ss:$8 sps:$4 sm:$0xff]  }
 0x3b8   :  { %4671 = vmatpush1.bf16.msra.mxu0 %v7086_v13  ;;  %v3624_v45 = vsel %vm3227_vm15, %v6794_v49, %v6795_v25  ;;  %v3720_v11 = vsel %vm3227_vm15, %v9835_v23, %v6794_v49  ;;  %v7104_v23 = vld [vmem:[%s10767_s3 + $0x310] ss:$8 sps:$4 sm:$0xff]   ;;  %v7109_v13 = vld [vmem:[%s10767_s3 + $0x324] ss:$8 sps:$4 sm:$0xff]  }
 0x3b9   :  { %4672 = vmatprep.subr.bf16.mxu0 %v7091_v43  ;;  %v6803_v62 = vpop.permute.xlu0 %6802  ;;  %v7122_v25 = vld [vmem:[%s10767_s3 + $0x370] ss:$8 sps:$4 sm:$0xff]   ;;  %v7127_v49 = vld [vmem:[%s10767_s3 + $0x384] ss:$8 sps:$4 sm:$0xff]  }
 0x3ba   :  { %v6804_v33 = vunpack.i.l.bf16 %v6803_v62  ;;  %v6805_v34 = vunpack.i.h.bf16 %v6803_v62  ;;  %v7131_v62 = vld [vmem:[%s10767_s3 + $0x3a0] ss:$8 sps:$4 sm:$0xff]  }
 0x3bc   :  { %4673 = vmatpush1.bf16.msra.mxu0 %v7089_v17 }
 0x3bd   :  { %4674 = vmatprep.subr.bf16.mxu0 %v7094_v42 }
 0x3c0   :  { %4675 = vmatpush1.bf16.msra.mxu0 %v7092_v35  ;;  %v7107_v35 = vld [vmem:[%s10767_s3 + $0x320] ss:$8 sps:$4 sm:$0xff]  }
 0x3c1   :  { %4676 = vmatprep.subr.bf16.mxu0 %v7097_v5  ;;  %v3626_v5 = vsel %vm3227_vm15, %v6804_v33, %v6805_v34 }
 0x3c4   :  { %4677 = vmatpush1.bf16.msra.mxu0 %v7095_v59  ;;  %v7112_v59 = vld [vmem:[%s10767_s3 + $0x334] ss:$8 sps:$4 sm:$0xff]  }
 0x3c5   :  { %4678 = vmatprep.subr.bf16.mxu0 %v7100_v20 }
 0x3c8   :  { %4679 = vmatpush1.bf16.msra.mxu0 %v7098_v58 }
 0x3c9   :  { %4721 = vmatprep.subr.bf16.mxu0 %v7103_v19 }
 0x3e5   :  { %v6778_v56 = vpop.permute.xlu1 %6777  ;;  %v6813_v18 = vpop.permute.xlu0 %6812 }
 0x3e6   :  { %v6780_v57 = vunpack.i.h.bf16 %v6778_v56  ;;  %v6779_v38 = vunpack.i.l.bf16 %v6778_v56  ;;  %v6814_v50 = vunpack.i.l.bf16 %v6813_v18  ;;  %v6815_v55 = vunpack.i.h.bf16 %v6813_v18  ;;  %v10892_v18 = vld [vmem:[#allocation8_spill] sm:$0xff] }
 0x3e8   :  { %v3460_v54 = vsel %vm3227_vm15, %v6749_v4, %v6779_v38  ;;  %v3461_v63 = vsel %vm3227_vm15, %v6750_v61, %v6780_v57  ;;  %v7113_v57 = vld [vmem:[%s10767_s3 + $0x340] ss:$8 sps:$4 sm:$0xff]   ;;  %v3628_v38 = vsel %vm3227_vm15, %v6814_v50, %v6815_v55 }
 0x3e9   :  { %v6788_v48 = vpop.permute.xlu1 %6787  ;;  %v3752_v51 = vpack.c.bf16 %v3461_v63, %v3460_v54  ;;  %v7121_v54 = vld [vmem:[%s10767_s3 + $0x364] ss:$8 sps:$4 sm:$0xff]   ;;  %v7119_v63 = vld [vmem:[%s10767_s3 + $0x360] ss:$8 sps:$4 sm:$0xff]  }
 0x3ea   :  { %v6790_v22 = vunpack.i.h.bf16 %v6788_v48  ;;  %v6789_v52 = vunpack.i.l.bf16 %v6788_v48  ;;  %v7124_v48 = vld [vmem:[%s10767_s3 + $0x374] ss:$8 sps:$4 sm:$0xff]  }
 0x3eb   :  { %4638 = vmatmul.mubr.bf16.gmra.mrb[12].mxu0 %v3752_v51  ;;  %v10880_v51 = vld [vmem:[#allocation12_spill] sm:$0xff] }
 0x3ec   :  { %v3719_v0 = vsel %vm3227_vm15, %v9774_v26, %v6789_v52  ;;  %v3623_v4 = vsel %vm3227_vm15, %v6789_v52, %v6790_v22  ;;  %v10881_v22 = vld [vmem:[#allocation11_spill] sm:$0xff] }
 0x3ed   :  { %v3730_v16 = vpack.c.bf16 %v3719_v0, %v3718_v44  ;;  %v6798_v61 = vpop.permute.xlu1 %6797  ;;  %v3731_v8 = vpack.c.bf16 %v3623_v4, %v3622_v6  ;;  %v10882_v52 = vpack.c.bf16 %v10880_v51, %v10881_v22  ;;  %v7125_v44 = vld [vmem:[%s10767_s3 + $0x380] ss:$8 sps:$4 sm:$0xff]   ;;  %v7130_v0 = vld [vmem:[%s10767_s3 + $0x394] ss:$8 sps:$4 sm:$0xff]   ;;  %v7128_v6 = vld [vmem:[%s10767_s3 + $0x390] ss:$8 sps:$4 sm:$0xff]  }
 0x3ee   :  { %v6800_v27 = vunpack.i.h.bf16 %v6798_v61  ;;  %v6799_v39 = vunpack.i.l.bf16 %v6798_v61  ;;  %v7133_v4 = vld [vmem:[%s10767_s3 + $0x3a4] ss:$8 sps:$4 sm:$0xff]   ;;  %v7134_v61 = vld [vmem:[%s10767_s3 + $0x3b0] ss:$8 sps:$4 sm:$0xff]  }
 0x3ef   :  { %4680 = vmatprep.mubr.bf16.mxu0 %v3731_v8  ;;  %v10883_v8 = vld [vmem:[#allocation4_spill] sm:$0xff] }
 0x3f0   :  { %v3625_v26 = vsel %vm3227_vm15, %v6799_v39, %v6800_v27  ;;  %v3721_v3 = vsel %vm3227_vm15, %v9838_v29, %v6799_v39  ;;  %v3722_v29 = vsel %vm3227_vm15, %v9937_v1, %v6804_v33  ;;  %v3724_v1 = vsel %vm3227_vm15, %v10044_v9, %v6814_v50  ;;  %v7110_v9 = vld [vmem:[%s10767_s3 + $0x330] ss:$8 sps:$4 sm:$0xff]   ;;  %v10884_v27 = vld [vmem:[#allocation3_spill] sm:$0xff] }
 0x3f1   :  { %v6808_v2 = vpop.permute.xlu1 %6807  ;;  %v3739_v28 = vpack.c.bf16 %v3625_v26, %v3624_v45  ;;  %v3738_v30 = vpack.c.bf16 %v3721_v3, %v3720_v11  ;;  %v10885_v39 = vpack.c.bf16 %v10883_v8, %v10884_v27  ;;  %v10886_v45 = vld [vmem:[#allocation14_spill] sm:$0xff]  ;;  %v10887_v33 = vld [vmem:[#allocation13_spill] sm:$0xff]  ;;  %v10900_v50 = vsub.s32 1, %v10898_v37 }
 0x3f2   :  { %v6809_v12 = vunpack.i.l.bf16 %v6808_v2  ;;  %v6810_v47 = vunpack.i.h.bf16 %v6808_v2  ;;  %v10889_v26 = vld [vmem:[#allocation6_spill] sm:$0xff]  ;;  %v10890_v11 = vld [vmem:[#allocation5_spill] sm:$0xff]  ;;  %v10893_v2 = vld [vmem:[#allocation7_spill] sm:$0xff] }
 0x3f3   :  { %4681 = vmatmul.mubr.bf16.vlgmr.msra.gmra.mrb[0].mxu0 %v3730_v16  ;;  %v7136_v16 = vld [vmem:[%s10767_s3 + $0x3b4] ss:$8 sps:$4 sm:$0xff]   ;;  %v10891_v3 = vpack.c.bf16 %v10889_v26, %v10890_v11 }
 0x3f4   :  { %4722 = vmatpush1.bf16.msra.mxu0 %v7101_v31  ;;  %4690 = vmatprep.mubr.bf16.mxu0 %v3739_v28  ;;  %v3723_v15 = vsel %vm3227_vm15, %v9940_v41, %v6809_v12  ;;  %v3627_v42 = vsel %vm3227_vm15, %v6809_v12, %v6810_v47  ;;  %v10888_v31 = vpack.c.bf16 %v10886_v45, %v10887_v33  ;;  %v3878_v47 = vld [vmem:[%s10768_s4] sm:$0x3] }
 0x3f5   :  { %v6818_v36 = vpop.permute.xlu1 %6817  ;;  %4723 = vmatprep.subr.bf16.mxu0 %v7106_v24  ;;  %v3746_v43 = vpack.c.bf16 %v3723_v15, %v3722_v29  ;;  %v3747_v58 = vpack.c.bf16 %v3627_v42, %v3626_v5  ;;  %v10894_v28 = vpack.c.bf16 %v10892_v18, %v10893_v2  ;;  %v10895_v24 = vld [vmem:[#allocation10_spill] sm:$0xff] }
 0x3f6   :  { %v6819_v17 = vunpack.i.l.bf16 %v6818_v36  ;;  %v6820_v19 = vunpack.i.h.bf16 %v6818_v36 }
 0x3f8   :  { %4724 = vmatpush1.bf16.msra.mxu0 %v7104_v23  ;;  %v3725_v41 = vsel %vm3227_vm15, %v10047_v53, %v6819_v17  ;;  %v7115_v53 = vld [vmem:[%s10767_s3 + $0x344] ss:$8 sps:$4 sm:$0xff]   ;;  %v3629_v56 = vsel %vm3227_vm15, %v6819_v17, %v6820_v19  ;;  %v10333_v23 = vrot.slane %v3878_v47, %v10900_v50 }
 0x3f9   :  { %4725 = vmatprep.subr.bf16.mxu0 %v7109_v13  ;;  %v3754_v20 = vpack.c.bf16 %v3725_v41, %v3724_v1  ;;  %v3755_v46 = vpack.c.bf16 %v3629_v56, %v3628_v38 }
 0x3fb   :  { %4691 = vmatmul.mubr.bf16.gmra.mrb[4].mxu0 %v3738_v30  ;;  %v10896_v30 = vld [vmem:[#allocation9_spill] sm:$0xff] }
 0x3fc   :  { %4726 = vmatpush1.bf16.msra.mxu0 %v7107_v35  ;;  %4700 = vmatprep.mubr.bf16.mxu0 %v3747_v58  ;;  %v10897_v12 = vpack.c.bf16 %v10895_v24, %v10896_v30 }
 0x3fd   :  { %4727 = vmatprep.subr.bf16.mxu0 %v7112_v59 }
 0x400   :  { %4728 = vmatpush1.bf16.msra.mxu0 %v7110_v9 }
 0x401   :  { %4729 = vmatprep.subr.bf16.mxu0 %v7115_v53 }
 0x403   :  { %4701 = vmatmul.mubr.bf16.gmra.mrb[8].mxu0 %v3746_v43 }
 0x404   :  { %4730 = vmatpush1.bf16.msra.mxu0 %v7113_v57  ;;  %4710 = vmatprep.mubr.bf16.mxu0 %v3755_v46 }
 0x405   :  { %4731 = vmatprep.subr.bf16.mxu0 %v7118_v40 }
 0x408   :  { %4732 = vmatpush1.bf16.msra.mxu0 %v7116_v60 }
 0x409   :  { %4733 = vmatprep.subr.bf16.mxu0 %v7121_v54 }
 0x40b   :  { %4711 = vmatmul.mubr.bf16.gmra.mrb[12].mxu0 %v3754_v20 }
 0x40c   :  { %4734 = vmatpush1.bf16.msra.mxu0 %v7119_v63  ;;  %5825 = vmatprep.mubr.msk.bf16.mxu0 %vm3227_vm15, %v10882_v52 }
 0x40d   :  { %4735 = vmatprep.subr.bf16.mxu0 %v7124_v48 }
 0x410   :  { %4736 = vmatpush1.bf16.msra.mxu0 %v7122_v25 }
 0x411   :  { %4737 = vmatprep.subr.bf16.mxu0 %v7127_v49 }
 0x414   :  { %4738 = vmatpush1.bf16.msra.mxu0 %v7125_v44 }
 0x415   :  { %4739 = vmatprep.subr.bf16.mxu0 %v7130_v0 }
 0x418   :  { %4740 = vmatpush1.bf16.msra.mxu0 %v7128_v6 }
 0x419   :  { %4741 = vmatprep.subr.bf16.mxu0 %v7133_v4 }
 0x41c   :  { %4742 = vmatpush1.bf16.msra.mxu0 %v7131_v62 }
 0x41d   :  { %4743 = vmatprep.subr.bf16.mxu0 %v7136_v16 }
 0x420   :  { %4744 = vmatpush1.bf16.msra.mxu0 %v7134_v61 }
 0x423   :  { %4754 = vmatmul.mubr.bf16.vlgmr.msra.gmra.mrb[0].mxu0 %v10885_v39 }
 0x424   :  { %5826 = vmatprep.mubr.msk.bf16.mxu0 %vm3227_vm15, %v10888_v31 }
 0x42b   :  { %4764 = vmatmul.mubr.bf16.gmra.mrb[4].mxu0 %v10891_v3 }
 0x42c   :  { %5827 = vmatprep.mubr.msk.bf16.mxu0 %vm3227_vm15, %v3749_v7  ;;  %v10329_v7 = vrot.slane %v3878_v47, %v10899_v21 }
 0x433   :  { %4774 = vmatmul.mubr.bf16.gmra.mrb[8].mxu0 %v10894_v28 }
 0x434   :  { %5828 = vmatprep.mubr.msk.bf16.mxu0 %vm3227_vm15, %v3757_v14 }
 0x43b   :  { %4784 = vmatmul.mubr.bf16.gmra.mrb[12].mxu0 %v10897_v12 }
 0x4f6   :  { %v4755_v29 = vpop.f32.mrb[0].mxu0 }
 0x4f7   :  { %v5906_v32 = vadd.f32 %v4755_v29, %v10329_v7  ;;  %v4757_v10 = vpop.f32.mrb[1].mxu0 }
 0x4f8   :  { %v5907_v14 = vadd.f32 %v4757_v10, %v10333_v23  ;;  %v4759_v15 = vpop.f32.mrb[2].mxu0 }
 0x4f9   :  { %v4794_v34 = vmax.f32 %v5906_v32, 0.0  ;;  %v5908_v36 = vadd.f32 %v4759_v15, %v10329_v7  ;;  %v4761_v13 = vpop.f32.mrb[3].mxu0 }
 0x4fa   :  { %v4795_v43 = vmax.f32 %v5907_v14, 0.0  ;;  %v5909_v17 = vadd.f32 %v4761_v13, %v10333_v23 }
 0x4fb   :  { %v4826_v42 = vrot.slane %v4794_v34, 1  ;;  %v4796_v35 = vmax.f32 %v5908_v36, 0.0 }
 0x4fc   :  { %v4827_v1 = vrot.slane %v4795_v43, 1  ;;  %v4797_v41 = vmax.f32 %v5909_v17, 0.0 }
 0x4fd   :  { %v4858_v5 = vmax.f32 %v4794_v34, %v4826_v42  ;;  %v4828_v59 = vrot.slane %v4796_v35, 1 }
 0x4fe   :  { %v4859_v20 = vmax.f32 %v4795_v43, %v4827_v1  ;;  %v4829_v58 = vrot.slane %v4797_v41, 1  ;;  %v4765_v19 = vpop.f32.mrb[4].mxu0 }
 0x4ff   :  { %v4890_v9 = vrot.slane %v4858_v5, 1  ;;  %v4860_v55 = vmax.f32 %v4796_v35, %v4828_v59  ;;  %v4767_v53 = vpop.f32.mrb[5].mxu0  ;;  %v4922_v56 = vrot.slane %v4858_v5, 2  ;;  %v4954_v57 = vrot.slane %v4858_v5, 3 }
 0x500   :  { %v4891_v38 = vrot.slane %v4859_v20, 1  ;;  %v10339_v40 = vmax.f32 %v4797_v41, %v4829_v58  ;;  %v4769_v46 = vpop.f32.mrb[6].mxu0  ;;  %v4923_v54 = vrot.slane %v4859_v20, 2  ;;  %v4955_v22 = vrot.slane %v4859_v20, 3 }
 0x501   :  { %v4986_v60 = vsel %vm2165_vm9, %v4858_v5, %v4890_v9  ;;  %v4892_v63 = vrot.slane %v4860_v55, 1  ;;  %v4924_v48 = vrot.slane %v4860_v55, 2  ;;  %v4771_v51 = vpop.f32.mrb[7].mxu0  ;;  %v4956_v25 = vrot.slane %v4860_v55, 3 }
 0x502   :  { %v4987_v52 = vsel %vm2165_vm9, %v4859_v20, %v4891_v38  ;;  %v4893_v49 = vrot.slane %v10339_v40, 1  ;;  %v5910_v0 = vadd.f32 %v4765_v19, %v10329_v7  ;;  %v5911_v6 = vadd.f32 %v4767_v53, %v10333_v23 }
 0x503   :  { %v4988_v44 = vsel %vm2165_vm9, %v4860_v55, %v4892_v63  ;;  %v5912_v4 = vadd.f32 %v4769_v46, %v10329_v7  ;;  %v4925_v62 = vrot.slane %v10339_v40, 2  ;;  %v5913_v16 = vadd.f32 %v4771_v51, %v10333_v23 }
 0x504   :  { %v5002_v61 = vsel %vm2190_vm10, %v4986_v60, %v4922_v56  ;;  %v5004_v8 = vsel %vm2190_vm10, %v4988_v44, %v4924_v48  ;;  %v4989_v27 = vsel %vm2165_vm9, %v10339_v40, %v4893_v49  ;;  %v4798_v39 = vmax.f32 %v5910_v0, 0.0 }
 0x505   :  { %v4799_v45 = vmax.f32 %v5911_v6, 0.0  ;;  %v4800_v33 = vmax.f32 %v5912_v4, 0.0  ;;  %v4801_v31 = vmax.f32 %v5913_v16, 0.0  ;;  %v10355_v11 = vsel %vm2215_vm11, %v5002_v61, %v4954_v57 }
 0x506   :  { %v4775_v26 = vpop.f32.mrb[8].mxu0  ;;  %v10358_v3 = vsel %vm2215_vm11, %v5004_v8, %v4956_v25  ;;  %v5003_v18 = vsel %vm2190_vm10, %v4987_v52, %v4923_v54  ;;  %v4830_v2 = vrot.slane %v4798_v39, 1  ;;  %v4957_v47 = vrot.slane %v10339_v40, 3 }
 0x507   :  { %v4831_v28 = vrot.slane %v4799_v45, 1  ;;  %v4832_v24 = vrot.slane %v4800_v33, 1  ;;  %v5914_v30 = vadd.f32 %v4775_v26, %v10329_v7  ;;  %v4777_v12 = vpop.f32.mrb[9].mxu0  ;;  %v4833_v37 = vrot.slane %v4801_v31, 1 }
 0x508   :  { %v5915_v21 = vadd.f32 %v4777_v12, %v10333_v23  ;;  %v4779_v50 = vpop.f32.mrb[10].mxu0  ;;  %v6821_v29 = vpack.i.bf16 %v10358_v3, %v10355_v11  ;;  %v4862_v32 = vmax.f32 %v4798_v39, %v4830_v2  ;;  %v10371_v34 = vsel %vm2190_vm10, %v4989_v27, %v4925_v62 }
 0x509   :  { %v10366_v10 = vmax.f32 %v4799_v45, %v4831_v28  ;;  %v10368_v14 = vmax.f32 %v4800_v33, %v4832_v24  ;;  %v4781_v15 = vpop.f32.mrb[11].mxu0  ;;  %v10373_v36 = vmax.f32 %v4801_v31, %v4833_v37  ;;  %v4802_v13 = vmax.f32 %v5914_v30, 0.0 }
 0x50a   :  { %v4803_v43 = vmax.f32 %v5915_v21, 0.0  ;;  %6822 = vrot.lane.b32.xlu0 %v6821_v29, %s7175_s25  ;;  %v10377_v17 = vsel %vm2215_vm11, %v5003_v18, %v4955_v22  ;;  %v4894_v42 = vrot.slane %v4862_v32, 1  ;;  %v5916_v1 = vadd.f32 %v4779_v50, %v10329_v7 }
 0x50b   :  { %v4895_v35 = vrot.slane %v10366_v10, 1  ;;  %v5917_v41 = vadd.f32 %v4781_v15, %v10333_v23  ;;  %v4926_v5 = vrot.slane %v4862_v32, 2  ;;  %v4958_v59 = vrot.slane %v4862_v32, 3 }
 0x50c   :  { %v4927_v20 = vrot.slane %v10366_v10, 2  ;;  %v4896_v58 = vrot.slane %v10368_v14, 1  ;;  %v4990_v19 = vsel %vm2165_vm9, %v4862_v32, %v4894_v42  ;;  %v4959_v9 = vrot.slane %v10366_v10, 3 }
 0x50d   :  { %v4991_v55 = vsel %vm2165_vm9, %v10366_v10, %v4895_v35  ;;  %v4928_v53 = vrot.slane %v10368_v14, 2  ;;  %v4960_v56 = vrot.slane %v10368_v14, 3  ;;  %v4897_v38 = vrot.slane %v10373_v36, 1 }
 0x50e   :  { %v4992_v57 = vsel %vm2165_vm9, %v10368_v14, %v4896_v58  ;;  %v4834_v46 = vrot.slane %v4802_v13, 1  ;;  %v4785_v60 = vpop.f32.mrb[12].mxu0  ;;  %v4929_v54 = vrot.slane %v10373_v36, 2  ;;  %v4835_v63 = vrot.slane %v4803_v43, 1 }
 0x50f   :  { %v4804_v48 = vmax.f32 %v5916_v1, 0.0  ;;  %v4805_v51 = vmax.f32 %v5917_v41, 0.0  ;;  %v4787_v22 = vpop.f32.mrb[13].mxu0  ;;  %v4961_v52 = vrot.slane %v10373_v36, 3  ;;  %v5918_v49 = vadd.f32 %v4785_v60, %v10329_v7 }
 0x510   :  { %v4866_v25 = vmax.f32 %v4802_v13, %v4834_v46  ;;  %v5006_v44 = vsel %vm2190_vm10, %v4990_v19, %v4926_v5  ;;  %v4789_v0 = vpop.f32.mrb[14].mxu0  ;;  %v10397_v6 = vmax.f32 %v4803_v43, %v4835_v63  ;;  %v4993_v8 = vsel %vm2165_vm9, %v10373_v36, %v4897_v38 }
 0x511   :  { %v4836_v4 = vrot.slane %v4804_v48, 1  ;;  %v4837_v62 = vrot.slane %v4805_v51, 1  ;;  %v10400_v16 = vsel %vm2215_vm11, %v5006_v44, %v4958_v59  ;;  %v4791_v61 = vpop.f32.mrb[15].mxu0  ;;  %v4806_v39 = vmax.f32 %v5918_v49, 0.0 }
 0x512   :  { %v4898_v27 = vrot.slane %v4866_v25, 1  ;;  %v5919_v45 = vadd.f32 %v4787_v22, %v10333_v23  ;;  %v4930_v33 = vrot.slane %v4866_v25, 2  ;;  %v4962_v31 = vrot.slane %v4866_v25, 3 }
 0x513   :  { %v4899_v26 = vrot.slane %v10397_v6, 1  ;;  %v4868_v18 = vmax.f32 %v4804_v48, %v4836_v4  ;;  %v4931_v2 = vrot.slane %v10397_v6, 2  ;;  %v10407_v28 = vmax.f32 %v4805_v51, %v4837_v62 }
 0x514   :  { %v4838_v24 = vrot.slane %v4806_v39, 1  ;;  %v6826_v30 = vpack.i.bf16 %v10377_v17, %v10400_v16  ;;  %v4994_v12 = vsel %vm2165_vm9, %v4866_v25, %v4898_v27  ;;  %v4963_v37 = vrot.slane %v10397_v6, 3 }
 0x515   :  { %v4995_v21 = vsel %vm2165_vm9, %v10397_v6, %v4899_v26  ;;  %v4900_v50 = vrot.slane %v4868_v18, 1  ;;  %v4932_v29 = vrot.slane %v4868_v18, 2  ;;  %v4964_v32 = vrot.slane %v4868_v18, 3 }
 0x516   :  { %v4901_v14 = vrot.slane %v10407_v28, 1  ;;  %v4870_v15 = vmax.f32 %v4806_v39, %v4838_v24  ;;  %6827 = vrot.lane.b32.xlu1 %v6826_v30, %s7175_s25  ;;  %v4933_v13 = vrot.slane %v10407_v28, 2  ;;  %v4807_v43 = vmax.f32 %v5919_v45, 0.0 }
 0x517   :  { %v5920_v42 = vadd.f32 %v4789_v0, %v10329_v7  ;;  %v5008_v35 = vsel %vm2190_vm10, %v4992_v57, %v4928_v53  ;;  %v4996_v1 = vsel %vm2165_vm9, %v4868_v18, %v4900_v50  ;;  %v4965_v41 = vrot.slane %v10407_v28, 3 }
 0x518   :  { %v4997_v5 = vsel %vm2165_vm9, %v10407_v28, %v4901_v14  ;;  %v4902_v59 = vrot.slane %v4870_v15, 1  ;;  %v4839_v58 = vrot.slane %v4807_v43, 1  ;;  %v10428_v38 = vsel %vm2215_vm11, %v10371_v34, %v4957_v47 }
 0x519   :  { %v4808_v19 = vmax.f32 %v5920_v42, 0.0  ;;  %v10431_v7 = vsel %vm2215_vm11, %v5008_v35, %v4960_v56  ;;  %v4934_v53 = vrot.slane %v4870_v15, 2  ;;  %v5921_v46 = vadd.f32 %v4791_v61, %v10333_v23  ;;  %v7139_v42 = vld [vmem:[%s10769_s5 + $0x48] sm:$0xff]  }
 0x51a   :  { %v6831_v57 = vpack.i.bf16 %v10428_v38, %v10431_v7  ;;  %v5007_v60 = vsel %vm2190_vm10, %v4991_v55, %v4927_v20  ;;  %v4966_v63 = vrot.slane %v4870_v15, 3  ;;  %v4871_v48 = vmax.f32 %v4807_v43, %v4839_v58  ;;  %v7138_v43 = vld [vmem:[%s10769_s5] sm:$0xff]   ;;  %v7140_v35 = vld [vmem:[%s10769_s5 + $0x8] sm:$0xff]  }
 0x51b   :  { %v4840_v40 = vrot.slane %v4808_v19, 1  ;;  %v5010_v51 = vsel %vm2190_vm10, %v4994_v12, %v4930_v33  ;;  %v4809_v47 = vmax.f32 %v5921_v46, 0.0  ;;  %v5009_v56 = vsel %vm2190_vm10, %v4993_v8, %v4929_v54  ;;  %v7145_v58 = vld [vmem:[%s10769_s5 + $0x60] sm:$0xff]  }
 0x51c   :  { %6832 = vrot.lane.b32.xlu0 %v6831_v57, %s7175_s25  ;;  %v10442_v34 = vsel %vm2215_vm11, %v5010_v51, %v4962_v31  ;;  %v5012_v22 = vsel %vm2190_vm10, %v4996_v1, %v4932_v29  ;;  %v4998_v23 = vsel %vm2165_vm9, %v4870_v15, %v4902_v59  ;;  %v4903_v25 = vrot.slane %v4871_v48, 1  ;;  %v7141_v1 = vld [vmem:[%s10769_s5 + $0x50] sm:$0xff]   ;;  %v7144_v59 = vld [vmem:[%s10769_s5 + $0x18] sm:$0xff]   ;;  %v7148_v57 = vld [vmem:[%s10769_s5 + $0x28] sm:$0xff]  }
 0x51d   :  { %v4872_v49 = vmax.f32 %v4808_v19, %v4840_v40  ;;  %v10450_v20 = vsel %vm2215_vm11, %v5007_v60, %v4959_v9  ;;  %v4935_v55 = vrot.slane %v4871_v48, 2  ;;  %v4841_v44 = vrot.slane %v4809_v47, 1  ;;  %v7146_v19 = vld [vmem:[%s10769_s5 + $0x20] sm:$0xff]  }
 0x51e   :  { %v6836_v0 = vpack.i.bf16 %v10442_v34, %v10450_v20  ;;  %v10455_v6 = vsel %vm2215_vm11, %v5012_v22, %v4964_v32  ;;  %v4999_v54 = vsel %vm2165_vm9, %v4871_v48, %v4903_v25  ;;  %v10461_v61 = vsel %vm2215_vm11, %v5009_v56, %v4961_v52 }
 0x51f   :  { %v4904_v4 = vrot.slane %v4872_v49, 1  ;;  %v4936_v62 = vrot.slane %v4872_v49, 2  ;;  %v4873_v10 = vmax.f32 %v4809_v47, %v4841_v44  ;;  %v6841_v9 = vpack.i.bf16 %v10455_v6, %v10461_v61 }
 0x520   :  { %6837 = vrot.lane.b32.xlu1 %v6836_v0, %s7175_s25  ;;  %v5011_v8 = vsel %vm2190_vm10, %v4995_v21, %v4931_v2  ;;  %v5014_v27 = vsel %vm2190_vm10, %v4998_v23, %v4934_v53  ;;  %v5013_v52 = vsel %vm2190_vm10, %v4997_v5, %v4933_v13  ;;  %v4968_v33 = vrot.slane %v4872_v49, 3  ;;  %v7137_v13 = vld [vmem:[%s10769_s5 + $0x40] sm:$0xff]   ;;  %v7143_v5 = vld [vmem:[%s10769_s5 + $0x58] sm:$0xff]   ;;  %v7147_v53 = vld [vmem:[%s10769_s5 + $0x68] sm:$0xff]  }
 0x521   :  { %v5000_v39 = vsel %vm2165_vm9, %v4872_v49, %v4904_v4  ;;  %v10470_v45 = vsel %vm2215_vm11, %v5011_v8, %v4963_v37  ;;  %v10473_v36 = vsel %vm2215_vm11, %v5014_v27, %v4966_v63  ;;  %v4905_v31 = vrot.slane %v4873_v10, 1  ;;  %6842 = vrot.lane.b32.xlu0 %v6841_v9, %s7175_s25  ;;  %5862 = vmatprep.subr.bf16.mxu1 %v7137_v13 }
 0x522   :  { %v4937_v26 = vrot.slane %v4873_v10, 2  ;;  %v6846_v18 = vpack.i.bf16 %v10473_v36, %v10470_v45  ;;  %v4967_v2 = vrot.slane %v4871_v48, 3  ;;  %v5016_v28 = vsel %vm2190_vm10, %v5000_v39, %v4936_v62  ;;  %5863 = vmatpush3.bf16.msra.mxu1 %v7138_v43  ;;  %v7149_v39 = vld [vmem:[%s10769_s5 + $0x70] sm:$0xff]  }
 0x523   :  { %v5015_v24 = vsel %vm2190_vm10, %v4999_v54, %v4935_v55  ;;  %v4969_v30 = vrot.slane %v4873_v10, 3  ;;  %v5001_v12 = vsel %vm2165_vm9, %v4873_v10, %v4905_v31  ;;  %v10484_v37 = vsel %vm2215_vm11, %v5013_v52, %v4965_v41  ;;  %5864 = vmatprep.subr.bf16.mxu1 %v7139_v42  ;;  %v7142_v41 = vld [vmem:[%s10769_s5 + $0x10] sm:$0xff]  }
 0x524   :  { %6847 = vrot.lane.b32.xlu1 %v6846_v18, %s7175_s25  ;;  %v10487_v21 = vsel %vm2215_vm11, %v5016_v28, %v4968_v33  ;;  %v5017_v29 = vsel %vm2190_vm10, %v5001_v12, %v4937_v26  ;;  %v10493_v32 = vsel %vm2215_vm11, %v5015_v24, %v4967_v2  ;;  %v7150_v52 = vld [vmem:[%s10769_s5 + $0x30] sm:$0xff]  }
 0x525   :  { %v6851_v50 = vpack.i.bf16 %v10487_v21, %v10484_v37  ;;  %v10496_v14 = vsel %vm2215_vm11, %v5017_v29, %v4969_v30 }
 0x526   :  { %v6856_v15 = vpack.i.bf16 %v10496_v14, %v10493_v32  ;;  %5865 = vmatpush3.bf16.msra.mxu1 %v7140_v35 }
 0x527   :  { %6852 = vrot.lane.b32.xlu0 %v6851_v50, %s7175_s25  ;;  %5866 = vmatprep.subr.bf16.mxu1 %v7141_v1 }
 0x528   :  { %6857 = vrot.lane.b32.xlu1 %v6856_v15, %s7175_s25 }
 0x52a   :  { %5867 = vmatpush3.bf16.msra.mxu1 %v7142_v41 }
 0x52b   :  { %5868 = vmatprep.subr.bf16.mxu1 %v7143_v5 }
 0x52e   :  { %5869 = vmatpush3.bf16.msra.mxu1 %v7144_v59 }
 0x52f   :  { %5870 = vmatprep.subr.bf16.mxu1 %v7145_v58 }
 0x532   :  { %5871 = vmatpush3.bf16.msra.mxu1 %v7146_v19 }
 0x533   :  { %5872 = vmatprep.subr.bf16.mxu1 %v7147_v53 }
 0x536   :  { %5873 = vmatpush3.bf16.msra.mxu1 %v7148_v57 }
 0x537   :  { %5874 = vmatprep.subr.bf16.mxu1 %v7149_v39 }
 0x53a   :  { %5875 = vmatpush3.bf16.msra.mxu1 %v7150_v52 }
 0x57c   :  { %v6823_v46 = vpop.permute.xlu0 %6822 }
 0x57d   :  { %v6825_v60 = vunpack.i.h.bf16 %v6823_v46  ;;  %v6824_v63 = vunpack.i.l.bf16 %v6823_v46 }
 0x57f   :  { %v10539_v48 = vmax.f32 %v10358_v3, %v6825_v60  ;;  %v10542_v40 = vmax.f32 %v10355_v11, %v6824_v63 }
 0x581   :  { %v6861_v51 = vpack.i.bf16 %v10539_v48, %v10542_v40 }
 0x583   :  { %6862 = vrot.lane.b32.xlu0 %v6861_v51, %s7175_s25 }
 0x588   :  { %v6828_v47 = vpop.permute.xlu1 %6827 }
 0x589   :  { %v6830_v56 = vunpack.i.h.bf16 %v6828_v47  ;;  %v6829_v22 = vunpack.i.l.bf16 %v6828_v47 }
 0x58b   :  { %v5106_v55 = vmax.f32 %v10377_v17, %v6830_v56  ;;  %v10549_v44 = vmax.f32 %v10400_v16, %v6829_v22 }
 0x58e   :  { %v6833_v23 = vpop.permute.xlu0 %6832 }
 0x58f   :  { %v6835_v25 = vunpack.i.h.bf16 %v6833_v23  ;;  %v6834_v49 = vunpack.i.l.bf16 %v6833_v23 }
 0x591   :  { %v5107_v3 = vmax.f32 %v10428_v38, %v6835_v25  ;;  %v10553_v11 = vmax.f32 %v10431_v7, %v6834_v49 }
 0x592   :  { %v6838_v0 = vpop.permute.xlu1 %6837 }
 0x593   :  { %v6866_v54 = vpack.i.bf16 %v5107_v3, %v5106_v55  ;;  %v6876_v4 = vpack.i.bf16 %v10553_v11, %v10549_v44  ;;  %v6839_v62 = vunpack.i.l.bf16 %v6838_v0  ;;  %v6843_v10 = vpop.permute.xlu0 %6842  ;;  %v6840_v8 = vunpack.i.h.bf16 %v6838_v0 }
 0x594   :  { %v6845_v17 = vunpack.i.h.bf16 %v6843_v10  ;;  %v6844_v9 = vunpack.i.l.bf16 %v6843_v10 }
 0x595   :  { %6877 = vrot.lane.b32.xlu1 %v6876_v4, %s7175_s25  ;;  %6867 = vrot.lane.b32.xlu0 %v6866_v54, %s7178_s28  ;;  %v5108_v38 = vmax.f32 %v10450_v20, %v6839_v62 }
 0x596   :  { %v6848_v16 = vpop.permute.xlu1 %6847  ;;  %v5109_v7 = vmax.f32 %v10461_v61, %v6844_v9  ;;  %v10568_v33 = vmax.f32 %v10455_v6, %v6845_v17  ;;  %v10572_v61 = vmax.f32 %v10442_v34, %v6840_v8 }
 0x597   :  { %v6850_v27 = vunpack.i.h.bf16 %v6848_v16  ;;  %v6849_v26 = vunpack.i.l.bf16 %v6848_v16 }
 0x598   :  { %v6886_v31 = vpack.i.bf16 %v5109_v7, %v5108_v38  ;;  %v6891_v29 = vpack.i.bf16 %v10568_v33, %v10572_v61 }
 0x599   :  { %6872 = vrot.lane.b32.xlu0 %v6866_v54, %s7174_s2  ;;  %v6853_v18 = vpop.permute.xlu0 %6852  ;;  %v10575_v28 = vmax.f32 %v10473_v36, %v6850_v27  ;;  %v5110_v34 = vmax.f32 %v10470_v45, %v6849_v26  ;;  %v7152_v45 = vld [vmem:[%s10769_s5 + $0x38] sm:$0xff]  }
 0x59a   :  { %v6855_v20 = vunpack.i.h.bf16 %v6853_v18  ;;  %v6854_v2 = vunpack.i.l.bf16 %v6853_v18  ;;  %6882 = vrot.lane.b32.xlu1 %v6886_v31, %s7178_s28  ;;  %v6858_v24 = vpop.permute.xlu1 %6857 }
 0x59b   :  { %v6860_v12 = vunpack.i.h.bf16 %v6858_v24  ;;  %v6859_v50 = vunpack.i.l.bf16 %v6858_v24 }
 0x59c   :  { %v10579_v6 = vmax.f32 %v10487_v21, %v6855_v20  ;;  %v5111_v30 = vmax.f32 %v10484_v37, %v6854_v2  ;;  %v7151_v37 = vld [vmem:[%s10769_s5 + $0x78] sm:$0xff]  }
 0x59d   :  { %6887 = vrot.lane.b32.xlu0 %v6886_v31, %s7174_s2  ;;  %v5113_v13 = vmax.f32 %v10496_v14, %v6860_v12  ;;  %v5112_v21 = vmax.f32 %v10493_v32, %v6859_v50  ;;  %5876 = vmatprep.subr.bf16.mxu1 %v7151_v37  ;;  %v7153_v32 = vld [vmem:[%s10769_s5 + $0xc0] sm:$0xff]  }
 0x59e   :  { %v6906_v36 = vpack.i.bf16 %v10579_v6, %v10575_v28  ;;  %v6896_v15 = vpack.i.bf16 %v5111_v30, %v5110_v34  ;;  %6892 = vrot.lane.b32.xlu1 %v6891_v29, %s7175_s25  ;;  %5877 = vmatpush3.bf16.msra.mxu1 %v7152_v45 }
 0x59f   :  { %v6911_v43 = vpack.i.bf16 %v5113_v13, %v5112_v21  ;;  %5884 = vmatprep.subr.bf16.mxu1 %v7153_v32 }
 0x5a1   :  { %6907 = vrot.lane.b32.xlu0 %v6906_v36, %s7175_s25 }
 0x5a2   :  { %6897 = vrot.lane.b32.xlu1 %v6896_v15, %s7178_s28 }
 0x5a5   :  { %6912 = vrot.lane.b32.xlu0 %v6911_v43, %s7178_s28 }
 0x5a6   :  { %6902 = vrot.lane.b32.xlu1 %v6896_v15, %s7174_s2 }
 0x5aa   :  { %6917 = vrot.lane.b32.xlu1 %v6911_v43, %s7174_s2 }
 0x5f5   :  { %v6863_v14 = vpop.permute.xlu0 %6862 }
 0x5f6   :  { %v6865_v1 = vunpack.i.h.bf16 %v6863_v14  ;;  %v6864_v41 = vunpack.i.l.bf16 %v6863_v14 }
 0x5f8   :  { %v5203_v63 = vsel %vm3193_vm13, %v10539_v48, %v6865_v1  ;;  %v5202_v51 = vsel %vm3193_vm13, %v10542_v40, %v6864_v41 }
 0x607   :  { %v6868_v42 = vpop.permute.xlu0 %6867  ;;  %v6878_v35 = vpop.permute.xlu1 %6877 }
 0x608   :  { %v6879_v5 = vunpack.i.l.bf16 %v6878_v35  ;;  %v6870_v59 = vunpack.i.h.bf16 %v6868_v42  ;;  %v6869_v58 = vunpack.i.l.bf16 %v6868_v42  ;;  %v6880_v53 = vunpack.i.h.bf16 %v6878_v35 }
 0x60a   :  { %v5204_v22 = vsel %vm3193_vm13, %v10549_v44, %v6879_v5  ;;  %v5210_v23 = vsel %vm3227_vm15, %v5202_v51, %v6869_v58  ;;  %v5211_v25 = vsel %vm3227_vm15, %v5203_v63, %v6870_v59  ;;  %v5205_v55 = vsel %vm3193_vm13, %v10553_v11, %v6880_v53 }
 0x60b   :  { %v6873_v19 = vpop.permute.xlu0 %6872 }
 0x60c   :  { %v6875_v57 = vunpack.i.h.bf16 %v6873_v19  ;;  %v6874_v46 = vunpack.i.l.bf16 %v6873_v19  ;;  %v6883_v60 = vpop.permute.xlu1 %6882 }
 0x60d   :  { %v6885_v47 = vunpack.i.h.bf16 %v6883_v60  ;;  %v6884_v56 = vunpack.i.l.bf16 %v6883_v60 }
 0x60e   :  { %v10616_v3 = vsel %vm3261_vm5, %v5210_v23, %v6874_v46  ;;  %v10619_v48 = vsel %vm3261_vm5, %v5211_v25, %v6875_v57 }
 0x60f   :  { %v6888_v49 = vpop.permute.xlu0 %6887  ;;  %v5212_v40 = vsel %vm3227_vm15, %v5204_v22, %v6884_v56  ;;  %v5213_v0 = vsel %vm3227_vm15, %v5205_v55, %v6885_v47  ;;  %v5234_v62 = vrot.slane %v10619_v48, 7  ;;  %v5256_v10 = vrot.slane %v10616_v3, 1 }
 0x610   :  { %v6890_v54 = vunpack.i.h.bf16 %v6888_v49  ;;  %v6889_v44 = vunpack.i.l.bf16 %v6888_v49  ;;  %v6893_v4 = vpop.permute.xlu1 %6892  ;;  %v5286_v9 = vrot.slane %v10616_v3, 3  ;;  %v5287_v16 = vrot.slane %v10619_v48, 2 }
 0x611   :  { %v6895_v39 = vunpack.i.h.bf16 %v6893_v4  ;;  %v6894_v52 = vunpack.i.l.bf16 %v6893_v4  ;;  %v5236_v26 = vsel %vm5235_vm0, %v5234_v62, %v10616_v3  ;;  %v5257_v24 = vsel %vm5235_vm0, %v10619_v48, %v5256_v10 }
 0x612   :  { %v10626_v11 = vsel %vm3261_vm5, %v5212_v40, %v6889_v44  ;;  %v10631_v8 = vsel %vm3261_vm5, %v5213_v0, %v6890_v54  ;;  %v5288_v50 = vsel %vm5235_vm0, %v5287_v16, %v5286_v9 }
 0x613   :  { %v6908_v17 = vpop.permute.xlu0 %6907  ;;  %v5237_v38 = vrot.slane %v10626_v11, 6  ;;  %v5258_v7 = vrot.slane %v10626_v11, 7  ;;  %v5289_v27 = vrot.slane %v10626_v11, 1  ;;  %v5240_v18 = vrot.slane %v10631_v8, 5 }
 0x614   :  { %v6898_v31 = vpop.permute.xlu1 %6897  ;;  %v5260_v30 = vrot.slane %v10631_v8, 6  ;;  %v5207_v36 = vsel %vm3193_vm13, %v10568_v33, %v6895_v39  ;;  %v5206_v15 = vsel %vm3193_vm13, %v10572_v61, %v6894_v52  ;;  %v6910_v37 = vunpack.i.h.bf16 %v6908_v17 }
 0x615   :  { %v6900_v20 = vunpack.i.h.bf16 %v6898_v31  ;;  %v6899_v2 = vunpack.i.l.bf16 %v6898_v31  ;;  %v5239_v12 = vsel %vm5238_vm1, %v5237_v38, %v5236_v26  ;;  %v5259_v29 = vsel %vm5238_vm1, %v5258_v7, %v5257_v24 }
 0x616   :  { %v5290_v34 = vsel %vm5238_vm1, %v5289_v27, %v5288_v50  ;;  %v6909_v45 = vunpack.i.l.bf16 %v6908_v17  ;;  %v5242_v14 = vsel %vm5241_vm2, %v5240_v18, %v5239_v12  ;;  %v5261_v53 = vsel %vm5241_vm2, %v5260_v30, %v5259_v29  ;;  %v7154_v18 = vld [vmem:[%s10769_s5 + $0x80] sm:$0xff]   ;;  %v7156_v30 = vld [vmem:[%s10769_s5 + $0x88] sm:$0xff]   ;;  %v7157_v12 = vld [vmem:[%s10769_s5 + $0xd0] sm:$0xff]  }
 0x617   :  { %v6913_v21 = vpop.permute.xlu0 %6912  ;;  %v5214_v42 = vsel %vm3227_vm15, %v5206_v15, %v6899_v2  ;;  %v5215_v35 = vsel %vm3227_vm15, %v5207_v36, %v6900_v20  ;;  %v5291_v5 = vsel %vm5241_vm2, %v10631_v8, %v5290_v34  ;;  %v5209_v57 = vsel %vm3193_vm13, %v10579_v6, %v6910_v37  ;;  %v7155_v2 = vld [vmem:[%s10769_s5 + $0xc8] sm:$0xff]   ;;  %v7158_v50 = vld [vmem:[%s10769_s5 + $0x90] sm:$0xff]   ;;  %v7159_v29 = vld [vmem:[%s10769_s5 + $0xd8] sm:$0xff]  }
 0x618   :  { %v6903_v13 = vpop.permute.xlu1 %6902  ;;  %v6915_v61 = vunpack.i.h.bf16 %v6913_v21  ;;  %v6914_v41 = vunpack.i.l.bf16 %v6913_v21  ;;  %v5208_v46 = vsel %vm3193_vm13, %v10575_v28, %v6909_v45  ;;  %v7160_v34 = vld [vmem:[%s10769_s5 + $0x98] sm:$0xff]   ;;  %v7161_v36 = vld [vmem:[%s10769_s5 + $0xe0] sm:$0xff]   ;;  %v5271_v15 = vrot.slane %v10616_v3, 2  ;;  %v7163_v37 = vld [vmem:[%s10769_s5 + $0xe8] sm:$0xff]  }
 0x619   :  { %v6905_v43 = vunpack.i.h.bf16 %v6903_v13  ;;  %v6904_v32 = vunpack.i.l.bf16 %v6903_v13  ;;  %v5272_v13 = vrot.slane %v10619_v48, 1  ;;  %v7162_v21 = vld [vmem:[%s10769_s5 + $0xa0] sm:$0xff]   ;;  %v5275_v45 = vrot.slane %v10631_v8, 7  ;;  %v7164_v48 = vld [vmem:[%s10769_s5 + $0xa8] sm:$0xff]  }
 0x61a   :  { %v5216_v49 = vsel %vm3227_vm15, %v5208_v46, %v6914_v41  ;;  %v5217_v6 = vsel %vm3227_vm15, %v5209_v57, %v6915_v61  ;;  %v7167_v61 = vld [vmem:[%s10769_s5 + $0xf8] sm:$0xff]  }
 0x61b   :  { %v10654_v1 = vsel %vm3261_vm5, %v5214_v42, %v6904_v32  ;;  %v10657_v33 = vsel %vm3261_vm5, %v5215_v35, %v6905_v43  ;;  %v5273_v43 = vsel %vm5235_vm0, %v5272_v13, %v5271_v15 }
 0x61c   :  { %v5243_v59 = vrot.slane %v10654_v1, 4  ;;  %v5262_v58 = vrot.slane %v10654_v1, 5  ;;  %v6918_v19 = vpop.permute.xlu1 %6917  ;;  %v5264_v60 = vrot.slane %v10657_v33, 4  ;;  %v5292_v63 = vrot.slane %v10654_v1, 7 }
 0x61d   :  { %v5246_v51 = vrot.slane %v10657_v33, 3  ;;  %v6920_v47 = vunpack.i.h.bf16 %v6918_v19  ;;  %v6919_v56 = vunpack.i.l.bf16 %v6918_v19  ;;  %v5294_v25 = vrot.slane %v10657_v33, 6 }
 0x61e   :  { %v5263_v22 = vsel %vm5244_vm3, %v5262_v58, %v5261_v53  ;;  %v5245_v23 = vsel %vm5244_vm3, %v5243_v59, %v5242_v14  ;;  %v5293_v40 = vsel %vm5244_vm3, %v5292_v63, %v5291_v5  ;;  %v5274_v32 = vsel %vm5238_vm1, %v10626_v11, %v5273_v43  ;;  %v7165_v14 = vld [vmem:[%s10769_s5 + $0xf0] sm:$0xff]   ;;  %v7168_v59 = vld [vmem:[%s10769_s5 + $0xb8] sm:$0xff]  }
 0x61f   :  { %v10677_v28 = vsel %vm3261_vm5, %v5216_v49, %v6919_v56  ;;  %v10680_v55 = vsel %vm3261_vm5, %v5217_v6, %v6920_v47  ;;  %v5265_v4 = vsel %vm5247_vm6, %v5264_v60, %v5263_v22  ;;  %v5248_v17 = vsel %vm5247_vm6, %v5246_v51, %v5245_v23  ;;  %v5829_v51 = vld [vmem:[%s10770_s6] ss:$0 sm:$0xff] }
 0x620   :  { %v5249_v0 = vrot.slane %v10677_v28, 2  ;;  %v5252_v54 = vrot.slane %v10680_v55, 1  ;;  %v5266_v44 = vrot.slane %v10677_v28, 3  ;;  %v5296_v62 = vrot.slane %v10677_v28, 5 }
 0x621   :  { %v5268_v10 = vrot.slane %v10680_v55, 2  ;;  %v5298_v9 = vrot.slane %v10680_v55, 4  ;;  %v5295_v7 = vsel %vm5247_vm6, %v5294_v25, %v5293_v40  ;;  %v5277_v3 = vrot.slane %v10654_v1, 6  ;;  %v7166_v1 = vld [vmem:[%s10769_s5 + $0xb0] sm:$0xff]  }
 0x622   :  { %v5267_v16 = vsel %vm5250_vm7, %v5266_v44, %v5265_v4  ;;  %v5251_v38 = vsel %vm5250_vm7, %v5249_v0, %v5248_v17  ;;  %v5297_v52 = vsel %vm5250_vm7, %v5296_v62, %v5295_v7  ;;  %v5276_v42 = vsel %vm5241_vm2, %v5275_v45, %v5274_v32 }
 0x623   :  { %v5269_v27 = vsel %vm5253_vm8, %v5268_v10, %v5267_v16  ;;  %v5254_v39 = vsel %vm5253_vm8, %v5252_v54, %v5251_v38  ;;  %v5299_v20 = vsel %vm5253_vm8, %v5298_v9, %v5297_v52  ;;  %v5279_v8 = vrot.slane %v10657_v33, 5 }
 0x624   :  { %v5302_v31 = vpack.c.bf16 %v5269_v27, %v5269_v27  ;;  %v5301_v26 = vpack.c.bf16 %v5254_v39, %v5254_v39  ;;  %v5304_v24 = vpack.c.bf16 %v5299_v20, %v5299_v20  ;;  %v5281_v35 = vrot.slane %v10677_v28, 4 }
 0x625   :  { %v5278_v11 = vsel %vm5244_vm3, %v5277_v3, %v5276_v42  ;;  %v5283_v41 = vrot.slane %v10680_v55, 3 }
 0x626   :  { %5600 = vmatprep.mubr.bf16.mxu1 %v5302_v31  ;;  %v5280_v5 = vsel %vm5247_vm6, %v5279_v8, %v5278_v11 }
 0x627   :  { %5601 = vmatmul.mubr.bf16.vlgmr.msra.gmra.mrb[96].mxu1 %v5301_v26  ;;  %v5282_v33 = vsel %vm5250_vm7, %v5281_v35, %v5280_v5 }
 0x628   :  { %5885 = vmatpush3.bf16.msra.mxu1 %v7154_v18  ;;  %5640 = vmatprep.mubr.bf16.mxu1 %v5304_v24  ;;  %v5284_v58 = vsel %vm5253_vm8, %v5283_v41, %v5282_v33 }
 0x629   :  { %5886 = vmatprep.subr.bf16.mxu1 %v7155_v2  ;;  %v5303_v19 = vpack.c.bf16 %v5284_v58, %v5284_v58 }
 0x62c   :  { %5887 = vmatpush3.bf16.msra.mxu1 %v7156_v30 }
 0x62d   :  { %5888 = vmatprep.subr.bf16.mxu1 %v7157_v12 }
 0x630   :  { %5889 = vmatpush3.bf16.msra.mxu1 %v7158_v50 }
 0x631   :  { %5890 = vmatprep.subr.bf16.mxu1 %v7159_v29 }
 0x634   :  { %5891 = vmatpush3.bf16.msra.mxu1 %v7160_v34 }
 0x635   :  { %5892 = vmatprep.subr.bf16.mxu1 %v7161_v36 }
 0x638   :  { %5893 = vmatpush3.bf16.msra.mxu1 %v7162_v21 }
 0x639   :  { %5894 = vmatprep.subr.bf16.mxu1 %v7163_v37 }
 0x63c   :  { %5895 = vmatpush3.bf16.msra.mxu1 %v7164_v48 }
 0x63d   :  { %5896 = vmatprep.subr.bf16.mxu1 %v7165_v14 }
 0x640   :  { %5897 = vmatpush3.bf16.msra.mxu1 %v7166_v1 }
 0x641   :  { %5898 = vmatprep.subr.bf16.mxu1 %v7167_v61 }
 0x644   :  { %5899 = vmatpush3.bf16.msra.mxu1 %v7168_v59 }
 0x647   :  { %5641 = vmatmul.mubr.bf16.vlgmr.msra.gmra.mrb[100].mxu1 %v5303_v19 }
 0x6fa   :  { %v5878_v53 = vpop.f32.mrb[96].mxu1 }
 0x6fb   :  { %v5879_v57 = vpop.f32.mrb[97].mxu1 }
 0x6fc   :  { %v5880_v46 = vadd.f32 %v5879_v57, %v5878_v53  ;;  %v5881_v60 = vpop.f32.mrb[98].mxu1 }
 0x6fd   :  { %v5882_v63 = vpop.f32.mrb[99].mxu1 }
 0x6fe   :  { %v5603_v22 = vadd.f32 %v5880_v46, %v5829_v51 }
 0x71a   :  { %v5900_v47 = vpop.f32.mrb[100].mxu1 }
 0x71b   :  { %v5901_v56 = vpop.f32.mrb[101].mxu1 }
 0x71c   :  { %v5902_v23 = vadd.f32 %v5901_v56, %v5900_v47  ;;  %v5903_v25 = vpop.f32.mrb[102].mxu1 }
 0x71d   :  { %v5904_v49 = vpop.f32.mrb[103].mxu1 }
 0x71e   :  { %v5643_v6 = vadd.f32 %v5902_v23, %v5603_v22 }
 0x720   :  { %5648 = vst [vmem:[%s10771_s7] sm:$0xff] %v5643_v6 }

</bundles_post_ra>
